<compile_context>
chip_gen: v7x
topology: tpu7x:2x2x1
jax: 0.10.0
libtpu: 0.0.40
codegen_flags: <defaults>
</compile_context>

<pallas_src>
import functools

import jax
import jax.numpy as jnp
from jax import lax
from jax.experimental import pallas as pl
from jax.experimental.pallas import tpu as pltpu


# ----------------------------- fused Pallas kernel -----------------------------

def _genshin_fused_kernel(src_e_ref, dec_e_ref,
                          enc_wih_ref, enc_whh_ref, enc_b_ref,
                          dec_wih_ref, dec_whh_ref, dec_b_ref,
                          out_w_ref, out_b_ref,
                          o_ref, *, B, S_src, T1):
    """Encoder LSTM -> decoder LSTM (teacher forcing) -> output Linear, fused.

    src_e_ref: (S_src*B, E) time-major-flat embedded source (row = t*B + b).
    dec_e_ref: (T1*B, E)    time-major-flat embedded tgt[:, :-1].
    *_wih_ref: (E, 4H), *_whh_ref: (H, 4H), *_b_ref: (1, 4H) (= b_ih + b_hh).
    out_w_ref: (H, V), out_b_ref: (1, V).
    o_ref:     (B, T1*V) logits; lane block [t*V, (t+1)*V) holds decoder step t.
    """
    H = enc_whh_ref.shape[0]
    V = out_w_ref.shape[1]

    # Input projections hoisted out of the serial recurrences: one big matmul
    # per LSTM (good MXU row utilization) instead of one tiny matmul per step.
    src_proj = (jnp.dot(src_e_ref[...], enc_wih_ref[...],
                        preferred_element_type=jnp.float32)
                + enc_b_ref[...])                          # (S_src*B, 4H)
    dec_proj = (jnp.dot(dec_e_ref[...], dec_wih_ref[...],
                        preferred_element_type=jnp.float32)
                + dec_b_ref[...])                          # (T1*B, 4H)

    def lstm_cell(proj_t, h, c, whh):
        gates = proj_t + jnp.dot(h, whh, preferred_element_type=jnp.float32)
        # PyTorch gate order: i, f, g, o (slices land on 128-lane boundaries).
        i = jax.nn.sigmoid(gates[:, 0:H])
        f = jax.nn.sigmoid(gates[:, H:2 * H])
        g = jnp.tanh(gates[:, 2 * H:3 * H])
        o = jax.nn.sigmoid(gates[:, 3 * H:4 * H])
        c_new = f * c + i * g
        h_new = o * jnp.tanh(c_new)
        return h_new, c_new

    h = jnp.zeros((B, H), jnp.float32)
    c = jnp.zeros((B, H), jnp.float32)

    # --- LightEncoder: statically unrolled time loop, (h, c) carried in vregs.
    enc_whh = enc_whh_ref[...]
    for t in range(S_src):
        h, c = lstm_cell(src_proj[t * B:(t + 1) * B, :], h, c, enc_whh)

    # --- LightDecoder: statically unrolled; collect per-step hidden states.
    dec_whh = dec_whh_ref[...]
    h_steps = []
    for t in range(T1):
        h, c = lstm_cell(dec_proj[t * B:(t + 1) * B, :], h, c, dec_whh)
        h_steps.append(h)

    # --- Output Linear: one batched (T1*B, H) x (H, V) MXU matmul, then
    #     per-step stores to 128-aligned lane offsets of the dense output.
    h_all = jnp.concatenate(h_steps, axis=0)               # (T1*B, H)
    logits = (jnp.dot(h_all, out_w_ref[...],
                      preferred_element_type=jnp.float32)
              + out_b_ref[...])                            # (T1*B, V)
    for t in range(T1):
        o_ref[:, t * V:(t + 1) * V] = logits[t * B:(t + 1) * B, :]


def genshin_assistant_forward(params, src, tgt):
    """failover=True path of GenshinAssistant.forward (eval mode, dropout=identity)."""
    emb = params["embedding"]
    B, S_src = src.shape
    S_tgt = tgt.shape[1]
    assert S_tgt >= 2, "teacher forcing uses tgt[:, :-1]; need S_tgt >= 2"
    T1 = S_tgt - 1
    V = params["out_w_T"].shape[1]

    # Embedding lookups emitted directly in time-major-flat order (row = t*B + b),
    # folding the batch-first -> time-major transpose into the gather indices.
    src_e = jnp.take(emb, src.T.reshape(-1), axis=0)          # (S_src*B, E)
    dec_e = jnp.take(emb, tgt[:, :-1].T.reshape(-1), axis=0)  # (T1*B, E)

    vmem = pl.BlockSpec(memory_space=pltpu.MemorySpace.VMEM)
    kernel = functools.partial(_genshin_fused_kernel, B=B, S_src=S_src, T1=T1)
    logits_flat = pl.pallas_call(
        kernel,
        out_shape=jax.ShapeDtypeStruct((B, T1 * V), jnp.float32),
        in_specs=[vmem] * 10,
        out_specs=vmem,
    )(src_e, dec_e,
      params["enc_w_ih_T"], params["enc_w_hh_T"], params["enc_b"],
      params["dec_w_ih_T"], params["dec_w_hh_T"], params["dec_b"],
      params["out_w_T"], params["out_b"])
    # Free reshape: (B, T1*V) is the row-major layout of (B, T1, V).
    return logits_flat.reshape(B, T1, V)


# ----------------------------- params -----------------------------

def init_params(key, vocab_size, embedding_dim, hidden_dim):
    ks = jax.random.split(key, 11)
    k = 1.0 / jnp.sqrt(jnp.float32(hidden_dim))

    def unif(kk, shape):
        return jax.random.uniform(kk, shape, jnp.float32, -k, k)

    emb = jax.random.normal(ks[0], (vocab_size, embedding_dim), jnp.float32)
    enc_w_ih = unif(ks[1], (4 * hidden_dim, embedding_dim))
    enc_w_hh = unif(ks[2], (4 * hidden_dim, hidden_dim))
    enc_b_ih = unif(ks[3], (4 * hidden_dim,))
    enc_b_hh = unif(ks[4], (4 * hidden_dim,))
    dec_w_ih = unif(ks[5], (4 * hidden_dim, embedding_dim))
    dec_w_hh = unif(ks[6], (4 * hidden_dim, hidden_dim))
    dec_b_ih = unif(ks[7], (4 * hidden_dim,))
    dec_b_hh = unif(ks[8], (4 * hidden_dim,))
    out_w = unif(ks[9], (vocab_size, hidden_dim))
    out_b = unif(ks[10], (vocab_size,))

    return dict(
        embedding=emb,
        enc_w_ih_T=enc_w_ih.T, enc_w_hh_T=enc_w_hh.T,
        enc_b=(enc_b_ih + enc_b_hh)[None, :],
        dec_w_ih_T=dec_w_ih.T, dec_w_hh_T=dec_w_hh.T,
        dec_b=(dec_b_ih + dec_b_hh)[None, :],
        out_w_T=out_w.T, out_b=out_b[None, :],
    )


# ----------------------------- pure-JAX reference -----------------------------

def _lstm_ref(x_bse, h0, c0, w_ih_T, w_hh_T, bias):
    def step(carry, x_t):
        h, c = carry
        H = h.shape[-1]
        gates = x_t @ w_ih_T + h @ w_hh_T + bias
        i = jax.nn.sigmoid(gates[:, :H])
        f = jax.nn.sigmoid(gates[:, H:2 * H])
        g = jnp.tanh(gates[:, 2 * H:3 * H])
        o = jax.nn.sigmoid(gates[:, 3 * H:])
        c = f * c + i * g
        h = o * jnp.tanh(c)
        return (h, c), h

    (hf, cf), ys = lax.scan(step, (h0, c0), jnp.transpose(x_bse, (1, 0, 2)))
    return jnp.transpose(ys, (1, 0, 2)), hf, cf


def reference_forward(params, src, tgt):
    emb = params["embedding"]
    src_e = jnp.take(emb, src, axis=0)
    tgt_e = jnp.take(emb, tgt, axis=0)
    B = src.shape[0]
    H = params["enc_w_hh_T"].shape[0]
    h0 = jnp.zeros((B, H), jnp.float32)
    c0 = jnp.zeros((B, H), jnp.float32)
    _eo, he, ce = _lstm_ref(src_e, h0, c0, params["enc_w_ih_T"],
                            params["enc_w_hh_T"], params["enc_b"])
    do, _, _ = _lstm_ref(tgt_e[:, :-1, :], he, ce, params["dec_w_ih_T"],
                         params["dec_w_hh_T"], params["dec_b"])
    return do @ params["out_w_T"] + params["out_b"]


# ----------------------------- main -----------------------------

if __name__ == "__main__":
    vocab_size, embedding_dim, hidden_dim = 256, 128, 128
    B, S_src, S_tgt = 8, 8, 8   # B=8 fills full (8,128) vregs

    key = jax.random.PRNGKey(0)
    kp, ksrc, ktgt = jax.random.split(key, 3)
    params = init_params(kp, vocab_size, embedding_dim, hidden_dim)
    src = jax.random.randint(ksrc, (B, S_src), 0, vocab_size, dtype=jnp.int32)
    tgt = jax.random.randint(ktgt, (B, S_tgt), 0, vocab_size, dtype=jnp.int32)

    out = genshin_assistant_forward(params, src, tgt)
    out = jax.block_until_ready(out)
    assert out.shape == (B, S_tgt - 1, vocab_size), out.shape

    ref = jax.block_until_ready(reference_forward(params, src, tgt))
    assert jnp.allclose(out, ref, rtol=1e-4, atol=1e-4), (
        float(jnp.max(jnp.abs(out - ref))))

    print("KERNEL_OK")
</pallas_src>

<mosaic_0001>
module attributes {stable_mosaic.version = 11 : i64} {
  func.func @_genshin_fused_kernel(%arg0: memref<64x128xf32, #tpu.memory_space<vmem>>, %arg1: memref<56x128xf32, #tpu.memory_space<vmem>>, %arg2: memref<128x512xf32, #tpu.memory_space<vmem>>, %arg3: memref<128x512xf32, #tpu.memory_space<vmem>>, %arg4: memref<1x512xf32, #tpu.memory_space<vmem>>, %arg5: memref<128x512xf32, #tpu.memory_space<vmem>>, %arg6: memref<128x512xf32, #tpu.memory_space<vmem>>, %arg7: memref<1x512xf32, #tpu.memory_space<vmem>>, %arg8: memref<128x256xf32, #tpu.memory_space<vmem>>, %arg9: memref<1x256xf32, #tpu.memory_space<vmem>>, %arg10: memref<8x1792xf32, #tpu.memory_space<vmem>>) attributes {dimension_semantics = [], scalar_prefetch = 0 : i64, scratch_operands = 0 : i64, tpu.core_type = #tpu.core_type<tc>} {
    %c0 = arith.constant 0 : index
    %c0_0 = arith.constant 0 : index
    %0 = vector.load %arg0[%c0, %c0_0] : memref<64x128xf32, #tpu.memory_space<vmem>>, vector<64x128xf32>
    %c0_1 = arith.constant 0 : index
    %c0_2 = arith.constant 0 : index
    %1 = vector.load %arg2[%c0_1, %c0_2] : memref<128x512xf32, #tpu.memory_space<vmem>>, vector<128x512xf32>
    %cst = arith.constant dense<0.000000e+00> : vector<64x512xf32>
    %2 = tpu.matmul %0, %1, %cst {dimension_numbers = #tpu.dot_dimension_numbers<[1], [0], [0], [1], [0, 0, 1, 1], [], []>} : vector<64x128xf32>, vector<128x512xf32>, vector<64x512xf32> -> vector<64x512xf32>
    %c0_3 = arith.constant 0 : index
    %c0_4 = arith.constant 0 : index
    %3 = vector.load %arg4[%c0_3, %c0_4] : memref<1x512xf32, #tpu.memory_space<vmem>>, vector<1x512xf32>
    %4 = vector.broadcast %3 : vector<1x512xf32> to vector<64x512xf32>
    %5 = arith.addf %2, %4 : vector<64x512xf32>
    %c0_5 = arith.constant 0 : index
    %c0_6 = arith.constant 0 : index
    %6 = vector.load %arg1[%c0_5, %c0_6] : memref<56x128xf32, #tpu.memory_space<vmem>>, vector<56x128xf32>
    %c0_7 = arith.constant 0 : index
    %c0_8 = arith.constant 0 : index
    %7 = vector.load %arg5[%c0_7, %c0_8] : memref<128x512xf32, #tpu.memory_space<vmem>>, vector<128x512xf32>
    %cst_9 = arith.constant dense<0.000000e+00> : vector<56x512xf32>
    %8 = tpu.matmul %6, %7, %cst_9 {dimension_numbers = #tpu.dot_dimension_numbers<[1], [0], [0], [1], [0, 0, 1, 1], [], []>} : vector<56x128xf32>, vector<128x512xf32>, vector<56x512xf32> -> vector<56x512xf32>
    %c0_10 = arith.constant 0 : index
    %c0_11 = arith.constant 0 : index
    %9 = vector.load %arg7[%c0_10, %c0_11] : memref<1x512xf32, #tpu.memory_space<vmem>>, vector<1x512xf32>
    %10 = vector.broadcast %9 : vector<1x512xf32> to vector<56x512xf32>
    %11 = arith.addf %8, %10 : vector<56x512xf32>
    %cst_12 = arith.constant 0.000000e+00 : f32
    %12 = vector.broadcast %cst_12 : f32 to vector<8x128xf32>
    %cst_13 = arith.constant 0.000000e+00 : f32
    %13 = vector.broadcast %cst_13 : f32 to vector<8x128xf32>
    %c0_14 = arith.constant 0 : index
    %c0_15 = arith.constant 0 : index
    %14 = vector.load %arg3[%c0_14, %c0_15] : memref<128x512xf32, #tpu.memory_space<vmem>>, vector<128x512xf32>
    %15 = vector.extract_strided_slice %5 {offsets = [0, 0], sizes = [8, 512], strides = [1, 1]} : vector<64x512xf32> to vector<8x512xf32>
    %cst_16 = arith.constant dense<0.000000e+00> : vector<8x512xf32>
    %16 = tpu.matmul %12, %14, %cst_16 {dimension_numbers = #tpu.dot_dimension_numbers<[1], [0], [0], [1], [0, 0, 1, 1], [], []>} : vector<8x128xf32>, vector<128x512xf32>, vector<8x512xf32> -> vector<8x512xf32>
    %17 = arith.addf %15, %16 : vector<8x512xf32>
    %18 = vector.extract_strided_slice %17 {offsets = [0, 0], sizes = [8, 128], strides = [1, 1]} : vector<8x512xf32> to vector<8x128xf32>
    %19 = arith.negf %18 : vector<8x128xf32>
    %20 = math.exp %19 : vector<8x128xf32>
    %cst_17 = arith.constant 1.000000e+00 : f32
    %21 = vector.broadcast %cst_17 : f32 to vector<8x128xf32>
    %22 = arith.addf %21, %20 : vector<8x128xf32>
    %23 = arith.divf %21, %22 : vector<8x128xf32>
    %24 = vector.extract_strided_slice %17 {offsets = [0, 128], sizes = [8, 128], strides = [1, 1]} : vector<8x512xf32> to vector<8x128xf32>
    %25 = arith.negf %24 : vector<8x128xf32>
    %26 = math.exp %25 : vector<8x128xf32>
    %cst_18 = arith.constant 1.000000e+00 : f32
    %27 = vector.broadcast %cst_18 : f32 to vector<8x128xf32>
    %28 = arith.addf %27, %26 : vector<8x128xf32>
    %29 = arith.divf %27, %28 : vector<8x128xf32>
    %30 = vector.extract_strided_slice %17 {offsets = [0, 256], sizes = [8, 128], strides = [1, 1]} : vector<8x512xf32> to vector<8x128xf32>
    %31 = math.tanh %30 : vector<8x128xf32>
    %32 = vector.extract_strided_slice %17 {offsets = [0, 384], sizes = [8, 128], strides = [1, 1]} : vector<8x512xf32> to vector<8x128xf32>
    %33 = arith.negf %32 : vector<8x128xf32>
    %34 = math.exp %33 : vector<8x128xf32>
    %cst_19 = arith.constant 1.000000e+00 : f32
    %35 = vector.broadcast %cst_19 : f32 to vector<8x128xf32>
    %36 = arith.addf %35, %34 : vector<8x128xf32>
    %37 = arith.divf %35, %36 : vector<8x128xf32>
    %38 = arith.mulf %29, %13 : vector<8x128xf32>
    %39 = arith.mulf %23, %31 : vector<8x128xf32>
    %40 = arith.addf %38, %39 : vector<8x128xf32>
    %41 = math.tanh %40 : vector<8x128xf32>
    %42 = arith.mulf %37, %41 : vector<8x128xf32>
    %43 = vector.extract_strided_slice %5 {offsets = [8, 0], sizes = [8, 512], strides = [1, 1]} : vector<64x512xf32> to vector<8x512xf32>
    %cst_20 = arith.constant dense<0.000000e+00> : vector<8x512xf32>
    %44 = tpu.matmul %42, %14, %cst_20 {dimension_numbers = #tpu.dot_dimension_numbers<[1], [0], [0], [1], [0, 0, 1, 1], [], []>} : vector<8x128xf32>, vector<128x512xf32>, vector<8x512xf32> -> vector<8x512xf32>
    %45 = arith.addf %43, %44 : vector<8x512xf32>
    %46 = vector.extract_strided_slice %45 {offsets = [0, 0], sizes = [8, 128], strides = [1, 1]} : vector<8x512xf32> to vector<8x128xf32>
    %47 = arith.negf %46 : vector<8x128xf32>
    %48 = math.exp %47 : vector<8x128xf32>
    %cst_21 = arith.constant 1.000000e+00 : f32
    %49 = vector.broadcast %cst_21 : f32 to vector<8x128xf32>
    %50 = arith.addf %49, %48 : vector<8x128xf32>
    %51 = arith.divf %49, %50 : vector<8x128xf32>
    %52 = vector.extract_strided_slice %45 {offsets = [0, 128], sizes = [8, 128], strides = [1, 1]} : vector<8x512xf32> to vector<8x128xf32>
    %53 = arith.negf %52 : vector<8x128xf32>
    %54 = math.exp %53 : vector<8x128xf32>
    %cst_22 = arith.constant 1.000000e+00 : f32
    %55 = vector.broadcast %cst_22 : f32 to vector<8x128xf32>
    %56 = arith.addf %55, %54 : vector<8x128xf32>
    %57 = arith.divf %55, %56 : vector<8x128xf32>
    %58 = vector.extract_strided_slice %45 {offsets = [0, 256], sizes = [8, 128], strides = [1, 1]} : vector<8x512xf32> to vector<8x128xf32>
    %59 = math.tanh %58 : vector<8x128xf32>
    %60 = vector.extract_strided_slice %45 {offsets = [0, 384], sizes = [8, 128], strides = [1, 1]} : vector<8x512xf32> to vector<8x128xf32>
    %61 = arith.negf %60 : vector<8x128xf32>
    %62 = math.exp %61 : vector<8x128xf32>
    %cst_23 = arith.constant 1.000000e+00 : f32
    %63 = vector.broadcast %cst_23 : f32 to vector<8x128xf32>
    %64 = arith.addf %63, %62 : vector<8x128xf32>
    %65 = arith.divf %63, %64 : vector<8x128xf32>
    %66 = arith.mulf %57, %40 : vector<8x128xf32>
    %67 = arith.mulf %51, %59 : vector<8x128xf32>
    %68 = arith.addf %66, %67 : vector<8x128xf32>
    %69 = math.tanh %68 : vector<8x128xf32>
    %70 = arith.mulf %65, %69 : vector<8x128xf32>
    %71 = vector.extract_strided_slice %5 {offsets = [16, 0], sizes = [8, 512], strides = [1, 1]} : vector<64x512xf32> to vector<8x512xf32>
    %cst_24 = arith.constant dense<0.000000e+00> : vector<8x512xf32>
    %72 = tpu.matmul %70, %14, %cst_24 {dimension_numbers = #tpu.dot_dimension_numbers<[1], [0], [0], [1], [0, 0, 1, 1], [], []>} : vector<8x128xf32>, vector<128x512xf32>, vector<8x512xf32> -> vector<8x512xf32>
    %73 = arith.addf %71, %72 : vector<8x512xf32>
    %74 = vector.extract_strided_slice %73 {offsets = [0, 0], sizes = [8, 128], strides = [1, 1]} : vector<8x512xf32> to vector<8x128xf32>
    %75 = arith.negf %74 : vector<8x128xf32>
    %76 = math.exp %75 : vector<8x128xf32>
    %cst_25 = arith.constant 1.000000e+00 : f32
    %77 = vector.broadcast %cst_25 : f32 to vector<8x128xf32>
    %78 = arith.addf %77, %76 : vector<8x128xf32>
    %79 = arith.divf %77, %78 : vector<8x128xf32>
    %80 = vector.extract_strided_slice %73 {offsets = [0, 128], sizes = [8, 128], strides = [1, 1]} : vector<8x512xf32> to vector<8x128xf32>
    %81 = arith.negf %80 : vector<8x128xf32>
    %82 = math.exp %81 : vector<8x128xf32>
    %cst_26 = arith.constant 1.000000e+00 : f32
    %83 = vector.broadcast %cst_26 : f32 to vector<8x128xf32>
    %84 = arith.addf %83, %82 : vector<8x128xf32>
    %85 = arith.divf %83, %84 : vector<8x128xf32>
    %86 = vector.extract_strided_slice %73 {offsets = [0, 256], sizes = [8, 128], strides = [1, 1]} : vector<8x512xf32> to vector<8x128xf32>
    %87 = math.tanh %86 : vector<8x128xf32>
    %88 = vector.extract_strided_slice %73 {offsets = [0, 384], sizes = [8, 128], strides = [1, 1]} : vector<8x512xf32> to vector<8x128xf32>
    %89 = arith.negf %88 : vector<8x128xf32>
    %90 = math.exp %89 : vector<8x128xf32>
    %cst_27 = arith.constant 1.000000e+00 : f32
    %91 = vector.broadcast %cst_27 : f32 to vector<8x128xf32>
    %92 = arith.addf %91, %90 : vector<8x128xf32>
    %93 = arith.divf %91, %92 : vector<8x128xf32>
    %94 = arith.mulf %85, %68 : vector<8x128xf32>
    %95 = arith.mulf %79, %87 : vector<8x128xf32>
    %96 = arith.addf %94, %95 : vector<8x128xf32>
    %97 = math.tanh %96 : vector<8x128xf32>
    %98 = arith.mulf %93, %97 : vector<8x128xf32>
    %99 = vector.extract_strided_slice %5 {offsets = [24, 0], sizes = [8, 512], strides = [1, 1]} : vector<64x512xf32> to vector<8x512xf32>
    %cst_28 = arith.constant dense<0.000000e+00> : vector<8x512xf32>
    %100 = tpu.matmul %98, %14, %cst_28 {dimension_numbers = #tpu.dot_dimension_numbers<[1], [0], [0], [1], [0, 0, 1, 1], [], []>} : vector<8x128xf32>, vector<128x512xf32>, vector<8x512xf32> -> vector<8x512xf32>
    %101 = arith.addf %99, %100 : vector<8x512xf32>
    %102 = vector.extract_strided_slice %101 {offsets = [0, 0], sizes = [8, 128], strides = [1, 1]} : vector<8x512xf32> to vector<8x128xf32>
    %103 = arith.negf %102 : vector<8x128xf32>
    %104 = math.exp %103 : vector<8x128xf32>
    %cst_29 = arith.constant 1.000000e+00 : f32
    %105 = vector.broadcast %cst_29 : f32 to vector<8x128xf32>
    %106 = arith.addf %105, %104 : vector<8x128xf32>
    %107 = arith.divf %105, %106 : vector<8x128xf32>
    %108 = vector.extract_strided_slice %101 {offsets = [0, 128], sizes = [8, 128], strides = [1, 1]} : vector<8x512xf32> to vector<8x128xf32>
    %109 = arith.negf %108 : vector<8x128xf32>
    %110 = math.exp %109 : vector<8x128xf32>
    %cst_30 = arith.constant 1.000000e+00 : f32
    %111 = vector.broadcast %cst_30 : f32 to vector<8x128xf32>
    %112 = arith.addf %111, %110 : vector<8x128xf32>
    %113 = arith.divf %111, %112 : vector<8x128xf32>
    %114 = vector.extract_strided_slice %101 {offsets = [0, 256], sizes = [8, 128], strides = [1, 1]} : vector<8x512xf32> to vector<8x128xf32>
    %115 = math.tanh %114 : vector<8x128xf32>
    %116 = vector.extract_strided_slice %101 {offsets = [0, 384], sizes = [8, 128], strides = [1, 1]} : vector<8x512xf32> to vector<8x128xf32>
    %117 = arith.negf %116 : vector<8x128xf32>
    %118 = math.exp %117 : vector<8x128xf32>
    %cst_31 = arith.constant 1.000000e+00 : f32
    %119 = vector.broadcast %cst_31 : f32 to vector<8x128xf32>
    %120 = arith.addf %119, %118 : vector<8x128xf32>
    %121 = arith.divf %119, %120 : vector<8x128xf32>
    %122 = arith.mulf %113, %96 : vector<8x128xf32>
    %123 = arith.mulf %107, %115 : vector<8x128xf32>
    %124 = arith.addf %122, %123 : vector<8x128xf32>
    %125 = math.tanh %124 : vector<8x128xf32>
    %126 = arith.mulf %121, %125 : vector<8x128xf32>
    %127 = vector.extract_strided_slice %5 {offsets = [32, 0], sizes = [8, 512], strides = [1, 1]} : vector<64x512xf32> to vector<8x512xf32>
    %cst_32 = arith.constant dense<0.000000e+00> : vector<8x512xf32>
    %128 = tpu.matmul %126, %14, %cst_32 {dimension_numbers = #tpu.dot_dimension_numbers<[1], [0], [0], [1], [0, 0, 1, 1], [], []>} : vector<8x128xf32>, vector<128x512xf32>, vector<8x512xf32> -> vector<8x512xf32>
    %129 = arith.addf %127, %128 : vector<8x512xf32>
    %130 = vector.extract_strided_slice %129 {offsets = [0, 0], sizes = [8, 128], strides = [1, 1]} : vector<8x512xf32> to vector<8x128xf32>
    %131 = arith.negf %130 : vector<8x128xf32>
    %132 = math.exp %131 : vector<8x128xf32>
    %cst_33 = arith.constant 1.000000e+00 : f32
    %133 = vector.broadcast %cst_33 : f32 to vector<8x128xf32>
    %134 = arith.addf %133, %132 : vector<8x128xf32>
    %135 = arith.divf %133, %134 : vector<8x128xf32>
    %136 = vector.extract_strided_slice %129 {offsets = [0, 128], sizes = [8, 128], strides = [1, 1]} : vector<8x512xf32> to vector<8x128xf32>
    %137 = arith.negf %136 : vector<8x128xf32>
    %138 = math.exp %137 : vector<8x128xf32>
    %cst_34 = arith.constant 1.000000e+00 : f32
    %139 = vector.broadcast %cst_34 : f32 to vector<8x128xf32>
    %140 = arith.addf %139, %138 : vector<8x128xf32>
    %141 = arith.divf %139, %140 : vector<8x128xf32>
    %142 = vector.extract_strided_slice %129 {offsets = [0, 256], sizes = [8, 128], strides = [1, 1]} : vector<8x512xf32> to vector<8x128xf32>
    %143 = math.tanh %142 : vector<8x128xf32>
    %144 = vector.extract_strided_slice %129 {offsets = [0, 384], sizes = [8, 128], strides = [1, 1]} : vector<8x512xf32> to vector<8x128xf32>
    %145 = arith.negf %144 : vector<8x128xf32>
    %146 = math.exp %145 : vector<8x128xf32>
    %cst_35 = arith.constant 1.000000e+00 : f32
    %147 = vector.broadcast %cst_35 : f32 to vector<8x128xf32>
    %148 = arith.addf %147, %146 : vector<8x128xf32>
    %149 = arith.divf %147, %148 : vector<8x128xf32>
    %150 = arith.mulf %141, %124 : vector<8x128xf32>
    %151 = arith.mulf %135, %143 : vector<8x128xf32>
    %152 = arith.addf %150, %151 : vector<8x128xf32>
    %153 = math.tanh %152 : vector<8x128xf32>
    %154 = arith.mulf %149, %153 : vector<8x128xf32>
    %155 = vector.extract_strided_slice %5 {offsets = [40, 0], sizes = [8, 512], strides = [1, 1]} : vector<64x512xf32> to vector<8x512xf32>
    %cst_36 = arith.constant dense<0.000000e+00> : vector<8x512xf32>
    %156 = tpu.matmul %154, %14, %cst_36 {dimension_numbers = #tpu.dot_dimension_numbers<[1], [0], [0], [1], [0, 0, 1, 1], [], []>} : vector<8x128xf32>, vector<128x512xf32>, vector<8x512xf32> -> vector<8x512xf32>
    %157 = arith.addf %155, %156 : vector<8x512xf32>
    %158 = vector.extract_strided_slice %157 {offsets = [0, 0], sizes = [8, 128], strides = [1, 1]} : vector<8x512xf32> to vector<8x128xf32>
    %159 = arith.negf %158 : vector<8x128xf32>
    %160 = math.exp %159 : vector<8x128xf32>
    %cst_37 = arith.constant 1.000000e+00 : f32
    %161 = vector.broadcast %cst_37 : f32 to vector<8x128xf32>
    %162 = arith.addf %161, %160 : vector<8x128xf32>
    %163 = arith.divf %161, %162 : vector<8x128xf32>
    %164 = vector.extract_strided_slice %157 {offsets = [0, 128], sizes = [8, 128], strides = [1, 1]} : vector<8x512xf32> to vector<8x128xf32>
    %165 = arith.negf %164 : vector<8x128xf32>
    %166 = math.exp %165 : vector<8x128xf32>
    %cst_38 = arith.constant 1.000000e+00 : f32
    %167 = vector.broadcast %cst_38 : f32 to vector<8x128xf32>
    %168 = arith.addf %167, %166 : vector<8x128xf32>
    %169 = arith.divf %167, %168 : vector<8x128xf32>
    %170 = vector.extract_strided_slice %157 {offsets = [0, 256], sizes = [8, 128], strides = [1, 1]} : vector<8x512xf32> to vector<8x128xf32>
    %171 = math.tanh %170 : vector<8x128xf32>
    %172 = vector.extract_strided_slice %157 {offsets = [0, 384], sizes = [8, 128], strides = [1, 1]} : vector<8x512xf32> to vector<8x128xf32>
    %173 = arith.negf %172 : vector<8x128xf32>
    %174 = math.exp %173 : vector<8x128xf32>
    %cst_39 = arith.constant 1.000000e+00 : f32
    %175 = vector.broadcast %cst_39 : f32 to vector<8x128xf32>
    %176 = arith.addf %175, %174 : vector<8x128xf32>
    %177 = arith.divf %175, %176 : vector<8x128xf32>
    %178 = arith.mulf %169, %152 : vector<8x128xf32>
    %179 = arith.mulf %163, %171 : vector<8x128xf32>
    %180 = arith.addf %178, %179 : vector<8x128xf32>
    %181 = math.tanh %180 : vector<8x128xf32>
    %182 = arith.mulf %177, %181 : vector<8x128xf32>
    %183 = vector.extract_strided_slice %5 {offsets = [48, 0], sizes = [8, 512], strides = [1, 1]} : vector<64x512xf32> to vector<8x512xf32>
    %cst_40 = arith.constant dense<0.000000e+00> : vector<8x512xf32>
    %184 = tpu.matmul %182, %14, %cst_40 {dimension_numbers = #tpu.dot_dimension_numbers<[1], [0], [0], [1], [0, 0, 1, 1], [], []>} : vector<8x128xf32>, vector<128x512xf32>, vector<8x512xf32> -> vector<8x512xf32>
    %185 = arith.addf %183, %184 : vector<8x512xf32>
    %186 = vector.extract_strided_slice %185 {offsets = [0, 0], sizes = [8, 128], strides = [1, 1]} : vector<8x512xf32> to vector<8x128xf32>
    %187 = arith.negf %186 : vector<8x128xf32>
    %188 = math.exp %187 : vector<8x128xf32>
    %cst_41 = arith.constant 1.000000e+00 : f32
    %189 = vector.broadcast %cst_41 : f32 to vector<8x128xf32>
    %190 = arith.addf %189, %188 : vector<8x128xf32>
    %191 = arith.divf %189, %190 : vector<8x128xf32>
    %192 = vector.extract_strided_slice %185 {offsets = [0, 128], sizes = [8, 128], strides = [1, 1]} : vector<8x512xf32> to vector<8x128xf32>
    %193 = arith.negf %192 : vector<8x128xf32>
    %194 = math.exp %193 : vector<8x128xf32>
    %cst_42 = arith.constant 1.000000e+00 : f32
    %195 = vector.broadcast %cst_42 : f32 to vector<8x128xf32>
    %196 = arith.addf %195, %194 : vector<8x128xf32>
    %197 = arith.divf %195, %196 : vector<8x128xf32>
    %198 = vector.extract_strided_slice %185 {offsets = [0, 256], sizes = [8, 128], strides = [1, 1]} : vector<8x512xf32> to vector<8x128xf32>
    %199 = math.tanh %198 : vector<8x128xf32>
    %200 = vector.extract_strided_slice %185 {offsets = [0, 384], sizes = [8, 128], strides = [1, 1]} : vector<8x512xf32> to vector<8x128xf32>
    %201 = arith.negf %200 : vector<8x128xf32>
    %202 = math.exp %201 : vector<8x128xf32>
    %cst_43 = arith.constant 1.000000e+00 : f32
    %203 = vector.broadcast %cst_43 : f32 to vector<8x128xf32>
    %204 = arith.addf %203, %202 : vector<8x128xf32>
    %205 = arith.divf %203, %204 : vector<8x128xf32>
    %206 = arith.mulf %197, %180 : vector<8x128xf32>
    %207 = arith.mulf %191, %199 : vector<8x128xf32>
    %208 = arith.addf %206, %207 : vector<8x128xf32>
    %209 = math.tanh %208 : vector<8x128xf32>
    %210 = arith.mulf %205, %209 : vector<8x128xf32>
    %211 = vector.extract_strided_slice %5 {offsets = [56, 0], sizes = [8, 512], strides = [1, 1]} : vector<64x512xf32> to vector<8x512xf32>
    %cst_44 = arith.constant dense<0.000000e+00> : vector<8x512xf32>
    %212 = tpu.matmul %210, %14, %cst_44 {dimension_numbers = #tpu.dot_dimension_numbers<[1], [0], [0], [1], [0, 0, 1, 1], [], []>} : vector<8x128xf32>, vector<128x512xf32>, vector<8x512xf32> -> vector<8x512xf32>
    %213 = arith.addf %211, %212 : vector<8x512xf32>
    %214 = vector.extract_strided_slice %213 {offsets = [0, 0], sizes = [8, 128], strides = [1, 1]} : vector<8x512xf32> to vector<8x128xf32>
    %215 = arith.negf %214 : vector<8x128xf32>
    %216 = math.exp %215 : vector<8x128xf32>
    %cst_45 = arith.constant 1.000000e+00 : f32
    %217 = vector.broadcast %cst_45 : f32 to vector<8x128xf32>
    %218 = arith.addf %217, %216 : vector<8x128xf32>
    %219 = arith.divf %217, %218 : vector<8x128xf32>
    %220 = vector.extract_strided_slice %213 {offsets = [0, 128], sizes = [8, 128], strides = [1, 1]} : vector<8x512xf32> to vector<8x128xf32>
    %221 = arith.negf %220 : vector<8x128xf32>
    %222 = math.exp %221 : vector<8x128xf32>
    %cst_46 = arith.constant 1.000000e+00 : f32
    %223 = vector.broadcast %cst_46 : f32 to vector<8x128xf32>
    %224 = arith.addf %223, %222 : vector<8x128xf32>
    %225 = arith.divf %223, %224 : vector<8x128xf32>
    %226 = vector.extract_strided_slice %213 {offsets = [0, 256], sizes = [8, 128], strides = [1, 1]} : vector<8x512xf32> to vector<8x128xf32>
    %227 = math.tanh %226 : vector<8x128xf32>
    %228 = vector.extract_strided_slice %213 {offsets = [0, 384], sizes = [8, 128], strides = [1, 1]} : vector<8x512xf32> to vector<8x128xf32>
    %229 = arith.negf %228 : vector<8x128xf32>
    %230 = math.exp %229 : vector<8x128xf32>
    %cst_47 = arith.constant 1.000000e+00 : f32
    %231 = vector.broadcast %cst_47 : f32 to vector<8x128xf32>
    %232 = arith.addf %231, %230 : vector<8x128xf32>
    %233 = arith.divf %231, %232 : vector<8x128xf32>
    %234 = arith.mulf %225, %208 : vector<8x128xf32>
    %235 = arith.mulf %219, %227 : vector<8x128xf32>
    %236 = arith.addf %234, %235 : vector<8x128xf32>
    %237 = math.tanh %236 : vector<8x128xf32>
    %238 = arith.mulf %233, %237 : vector<8x128xf32>
    %c0_48 = arith.constant 0 : index
    %c0_49 = arith.constant 0 : index
    %239 = vector.load %arg6[%c0_48, %c0_49] : memref<128x512xf32, #tpu.memory_space<vmem>>, vector<128x512xf32>
    %240 = vector.extract_strided_slice %11 {offsets = [0, 0], sizes = [8, 512], strides = [1, 1]} : vector<56x512xf32> to vector<8x512xf32>
    %cst_50 = arith.constant dense<0.000000e+00> : vector<8x512xf32>
    %241 = tpu.matmul %238, %239, %cst_50 {dimension_numbers = #tpu.dot_dimension_numbers<[1], [0], [0], [1], [0, 0, 1, 1], [], []>} : vector<8x128xf32>, vector<128x512xf32>, vector<8x512xf32> -> vector<8x512xf32>
    %242 = arith.addf %240, %241 : vector<8x512xf32>
    %243 = vector.extract_strided_slice %242 {offsets = [0, 0], sizes = [8, 128], strides = [1, 1]} : vector<8x512xf32> to vector<8x128xf32>
    %244 = arith.negf %243 : vector<8x128xf32>
    %245 = math.exp %244 : vector<8x128xf32>
    %cst_51 = arith.constant 1.000000e+00 : f32
    %246 = vector.broadcast %cst_51 : f32 to vector<8x128xf32>
    %247 = arith.addf %246, %245 : vector<8x128xf32>
    %248 = arith.divf %246, %247 : vector<8x128xf32>
    %249 = vector.extract_strided_slice %242 {offsets = [0, 128], sizes = [8, 128], strides = [1, 1]} : vector<8x512xf32> to vector<8x128xf32>
    %250 = arith.negf %249 : vector<8x128xf32>
    %251 = math.exp %250 : vector<8x128xf32>
    %cst_52 = arith.constant 1.000000e+00 : f32
    %252 = vector.broadcast %cst_52 : f32 to vector<8x128xf32>
    %253 = arith.addf %252, %251 : vector<8x128xf32>
    %254 = arith.divf %252, %253 : vector<8x128xf32>
    %255 = vector.extract_strided_slice %242 {offsets = [0, 256], sizes = [8, 128], strides = [1, 1]} : vector<8x512xf32> to vector<8x128xf32>
    %256 = math.tanh %255 : vector<8x128xf32>
    %257 = vector.extract_strided_slice %242 {offsets = [0, 384], sizes = [8, 128], strides = [1, 1]} : vector<8x512xf32> to vector<8x128xf32>
    %258 = arith.negf %257 : vector<8x128xf32>
    %259 = math.exp %258 : vector<8x128xf32>
    %cst_53 = arith.constant 1.000000e+00 : f32
    %260 = vector.broadcast %cst_53 : f32 to vector<8x128xf32>
    %261 = arith.addf %260, %259 : vector<8x128xf32>
    %262 = arith.divf %260, %261 : vector<8x128xf32>
    %263 = arith.mulf %254, %236 : vector<8x128xf32>
    %264 = arith.mulf %248, %256 : vector<8x128xf32>
    %265 = arith.addf %263, %264 : vector<8x128xf32>
    %266 = math.tanh %265 : vector<8x128xf32>
    %267 = arith.mulf %262, %266 : vector<8x128xf32>
    %268 = vector.extract_strided_slice %11 {offsets = [8, 0], sizes = [8, 512], strides = [1, 1]} : vector<56x512xf32> to vector<8x512xf32>
    %cst_54 = arith.constant dense<0.000000e+00> : vector<8x512xf32>
    %269 = tpu.matmul %267, %239, %cst_54 {dimension_numbers = #tpu.dot_dimension_numbers<[1], [0], [0], [1], [0, 0, 1, 1], [], []>} : vector<8x128xf32>, vector<128x512xf32>, vector<8x512xf32> -> vector<8x512xf32>
    %270 = arith.addf %268, %269 : vector<8x512xf32>
    %271 = vector.extract_strided_slice %270 {offsets = [0, 0], sizes = [8, 128], strides = [1, 1]} : vector<8x512xf32> to vector<8x128xf32>
    %272 = arith.negf %271 : vector<8x128xf32>
    %273 = math.exp %272 : vector<8x128xf32>
    %cst_55 = arith.constant 1.000000e+00 : f32
    %274 = vector.broadcast %cst_55 : f32 to vector<8x128xf32>
    %275 = arith.addf %274, %273 : vector<8x128xf32>
    %276 = arith.divf %274, %275 : vector<8x128xf32>
    %277 = vector.extract_strided_slice %270 {offsets = [0, 128], sizes = [8, 128], strides = [1, 1]} : vector<8x512xf32> to vector<8x128xf32>
    %278 = arith.negf %277 : vector<8x128xf32>
    %279 = math.exp %278 : vector<8x128xf32>
    %cst_56 = arith.constant 1.000000e+00 : f32
    %280 = vector.broadcast %cst_56 : f32 to vector<8x128xf32>
    %281 = arith.addf %280, %279 : vector<8x128xf32>
    %282 = arith.divf %280, %281 : vector<8x128xf32>
    %283 = vector.extract_strided_slice %270 {offsets = [0, 256], sizes = [8, 128], strides = [1, 1]} : vector<8x512xf32> to vector<8x128xf32>
    %284 = math.tanh %283 : vector<8x128xf32>
    %285 = vector.extract_strided_slice %270 {offsets = [0, 384], sizes = [8, 128], strides = [1, 1]} : vector<8x512xf32> to vector<8x128xf32>
    %286 = arith.negf %285 : vector<8x128xf32>
    %287 = math.exp %286 : vector<8x128xf32>
    %cst_57 = arith.constant 1.000000e+00 : f32
    %288 = vector.broadcast %cst_57 : f32 to vector<8x128xf32>
    %289 = arith.addf %288, %287 : vector<8x128xf32>
    %290 = arith.divf %288, %289 : vector<8x128xf32>
    %291 = arith.mulf %282, %265 : vector<8x128xf32>
    %292 = arith.mulf %276, %284 : vector<8x128xf32>
    %293 = arith.addf %291, %292 : vector<8x128xf32>
    %294 = math.tanh %293 : vector<8x128xf32>
    %295 = arith.mulf %290, %294 : vector<8x128xf32>
    %296 = vector.extract_strided_slice %11 {offsets = [16, 0], sizes = [8, 512], strides = [1, 1]} : vector<56x512xf32> to vector<8x512xf32>
    %cst_58 = arith.constant dense<0.000000e+00> : vector<8x512xf32>
    %297 = tpu.matmul %295, %239, %cst_58 {dimension_numbers = #tpu.dot_dimension_numbers<[1], [0], [0], [1], [0, 0, 1, 1], [], []>} : vector<8x128xf32>, vector<128x512xf32>, vector<8x512xf32> -> vector<8x512xf32>
    %298 = arith.addf %296, %297 : vector<8x512xf32>
    %299 = vector.extract_strided_slice %298 {offsets = [0, 0], sizes = [8, 128], strides = [1, 1]} : vector<8x512xf32> to vector<8x128xf32>
    %300 = arith.negf %299 : vector<8x128xf32>
    %301 = math.exp %300 : vector<8x128xf32>
    %cst_59 = arith.constant 1.000000e+00 : f32
    %302 = vector.broadcast %cst_59 : f32 to vector<8x128xf32>
    %303 = arith.addf %302, %301 : vector<8x128xf32>
    %304 = arith.divf %302, %303 : vector<8x128xf32>
    %305 = vector.extract_strided_slice %298 {offsets = [0, 128], sizes = [8, 128], strides = [1, 1]} : vector<8x512xf32> to vector<8x128xf32>
    %306 = arith.negf %305 : vector<8x128xf32>
    %307 = math.exp %306 : vector<8x128xf32>
    %cst_60 = arith.constant 1.000000e+00 : f32
    %308 = vector.broadcast %cst_60 : f32 to vector<8x128xf32>
    %309 = arith.addf %308, %307 : vector<8x128xf32>
    %310 = arith.divf %308, %309 : vector<8x128xf32>
    %311 = vector.extract_strided_slice %298 {offsets = [0, 256], sizes = [8, 128], strides = [1, 1]} : vector<8x512xf32> to vector<8x128xf32>
    %312 = math.tanh %311 : vector<8x128xf32>
    %313 = vector.extract_strided_slice %298 {offsets = [0, 384], sizes = [8, 128], strides = [1, 1]} : vector<8x512xf32> to vector<8x128xf32>
    %314 = arith.negf %313 : vector<8x128xf32>
    %315 = math.exp %314 : vector<8x128xf32>
    %cst_61 = arith.constant 1.000000e+00 : f32
    %316 = vector.broadcast %cst_61 : f32 to vector<8x128xf32>
    %317 = arith.addf %316, %315 : vector<8x128xf32>
    %318 = arith.divf %316, %317 : vector<8x128xf32>
    %319 = arith.mulf %310, %293 : vector<8x128xf32>
    %320 = arith.mulf %304, %312 : vector<8x128xf32>
    %321 = arith.addf %319, %320 : vector<8x128xf32>
    %322 = math.tanh %321 : vector<8x128xf32>
    %323 = arith.mulf %318, %322 : vector<8x128xf32>
    %324 = vector.extract_strided_slice %11 {offsets = [24, 0], sizes = [8, 512], strides = [1, 1]} : vector<56x512xf32> to vector<8x512xf32>
    %cst_62 = arith.constant dense<0.000000e+00> : vector<8x512xf32>
    %325 = tpu.matmul %323, %239, %cst_62 {dimension_numbers = #tpu.dot_dimension_numbers<[1], [0], [0], [1], [0, 0, 1, 1], [], []>} : vector<8x128xf32>, vector<128x512xf32>, vector<8x512xf32> -> vector<8x512xf32>
    %326 = arith.addf %324, %325 : vector<8x512xf32>
    %327 = vector.extract_strided_slice %326 {offsets = [0, 0], sizes = [8, 128], strides = [1, 1]} : vector<8x512xf32> to vector<8x128xf32>
    %328 = arith.negf %327 : vector<8x128xf32>
    %329 = math.exp %328 : vector<8x128xf32>
    %cst_63 = arith.constant 1.000000e+00 : f32
    %330 = vector.broadcast %cst_63 : f32 to vector<8x128xf32>
    %331 = arith.addf %330, %329 : vector<8x128xf32>
    %332 = arith.divf %330, %331 : vector<8x128xf32>
    %333 = vector.extract_strided_slice %326 {offsets = [0, 128], sizes = [8, 128], strides = [1, 1]} : vector<8x512xf32> to vector<8x128xf32>
    %334 = arith.negf %333 : vector<8x128xf32>
    %335 = math.exp %334 : vector<8x128xf32>
    %cst_64 = arith.constant 1.000000e+00 : f32
    %336 = vector.broadcast %cst_64 : f32 to vector<8x128xf32>
    %337 = arith.addf %336, %335 : vector<8x128xf32>
    %338 = arith.divf %336, %337 : vector<8x128xf32>
    %339 = vector.extract_strided_slice %326 {offsets = [0, 256], sizes = [8, 128], strides = [1, 1]} : vector<8x512xf32> to vector<8x128xf32>
    %340 = math.tanh %339 : vector<8x128xf32>
    %341 = vector.extract_strided_slice %326 {offsets = [0, 384], sizes = [8, 128], strides = [1, 1]} : vector<8x512xf32> to vector<8x128xf32>
    %342 = arith.negf %341 : vector<8x128xf32>
    %343 = math.exp %342 : vector<8x128xf32>
    %cst_65 = arith.constant 1.000000e+00 : f32
    %344 = vector.broadcast %cst_65 : f32 to vector<8x128xf32>
    %345 = arith.addf %344, %343 : vector<8x128xf32>
    %346 = arith.divf %344, %345 : vector<8x128xf32>
    %347 = arith.mulf %338, %321 : vector<8x128xf32>
    %348 = arith.mulf %332, %340 : vector<8x128xf32>
    %349 = arith.addf %347, %348 : vector<8x128xf32>
    %350 = math.tanh %349 : vector<8x128xf32>
    %351 = arith.mulf %346, %350 : vector<8x128xf32>
    %352 = vector.extract_strided_slice %11 {offsets = [32, 0], sizes = [8, 512], strides = [1, 1]} : vector<56x512xf32> to vector<8x512xf32>
    %cst_66 = arith.constant dense<0.000000e+00> : vector<8x512xf32>
    %353 = tpu.matmul %351, %239, %cst_66 {dimension_numbers = #tpu.dot_dimension_numbers<[1], [0], [0], [1], [0, 0, 1, 1], [], []>} : vector<8x128xf32>, vector<128x512xf32>, vector<8x512xf32> -> vector<8x512xf32>
    %354 = arith.addf %352, %353 : vector<8x512xf32>
    %355 = vector.extract_strided_slice %354 {offsets = [0, 0], sizes = [8, 128], strides = [1, 1]} : vector<8x512xf32> to vector<8x128xf32>
    %356 = arith.negf %355 : vector<8x128xf32>
    %357 = math.exp %356 : vector<8x128xf32>
    %cst_67 = arith.constant 1.000000e+00 : f32
    %358 = vector.broadcast %cst_67 : f32 to vector<8x128xf32>
    %359 = arith.addf %358, %357 : vector<8x128xf32>
    %360 = arith.divf %358, %359 : vector<8x128xf32>
    %361 = vector.extract_strided_slice %354 {offsets = [0, 128], sizes = [8, 128], strides = [1, 1]} : vector<8x512xf32> to vector<8x128xf32>
    %362 = arith.negf %361 : vector<8x128xf32>
    %363 = math.exp %362 : vector<8x128xf32>
    %cst_68 = arith.constant 1.000000e+00 : f32
    %364 = vector.broadcast %cst_68 : f32 to vector<8x128xf32>
    %365 = arith.addf %364, %363 : vector<8x128xf32>
    %366 = arith.divf %364, %365 : vector<8x128xf32>
    %367 = vector.extract_strided_slice %354 {offsets = [0, 256], sizes = [8, 128], strides = [1, 1]} : vector<8x512xf32> to vector<8x128xf32>
    %368 = math.tanh %367 : vector<8x128xf32>
    %369 = vector.extract_strided_slice %354 {offsets = [0, 384], sizes = [8, 128], strides = [1, 1]} : vector<8x512xf32> to vector<8x128xf32>
    %370 = arith.negf %369 : vector<8x128xf32>
    %371 = math.exp %370 : vector<8x128xf32>
    %cst_69 = arith.constant 1.000000e+00 : f32
    %372 = vector.broadcast %cst_69 : f32 to vector<8x128xf32>
    %373 = arith.addf %372, %371 : vector<8x128xf32>
    %374 = arith.divf %372, %373 : vector<8x128xf32>
    %375 = arith.mulf %366, %349 : vector<8x128xf32>
    %376 = arith.mulf %360, %368 : vector<8x128xf32>
    %377 = arith.addf %375, %376 : vector<8x128xf32>
    %378 = math.tanh %377 : vector<8x128xf32>
    %379 = arith.mulf %374, %378 : vector<8x128xf32>
    %380 = vector.extract_strided_slice %11 {offsets = [40, 0], sizes = [8, 512], strides = [1, 1]} : vector<56x512xf32> to vector<8x512xf32>
    %cst_70 = arith.constant dense<0.000000e+00> : vector<8x512xf32>
    %381 = tpu.matmul %379, %239, %cst_70 {dimension_numbers = #tpu.dot_dimension_numbers<[1], [0], [0], [1], [0, 0, 1, 1], [], []>} : vector<8x128xf32>, vector<128x512xf32>, vector<8x512xf32> -> vector<8x512xf32>
    %382 = arith.addf %380, %381 : vector<8x512xf32>
    %383 = vector.extract_strided_slice %382 {offsets = [0, 0], sizes = [8, 128], strides = [1, 1]} : vector<8x512xf32> to vector<8x128xf32>
    %384 = arith.negf %383 : vector<8x128xf32>
    %385 = math.exp %384 : vector<8x128xf32>
    %cst_71 = arith.constant 1.000000e+00 : f32
    %386 = vector.broadcast %cst_71 : f32 to vector<8x128xf32>
    %387 = arith.addf %386, %385 : vector<8x128xf32>
    %388 = arith.divf %386, %387 : vector<8x128xf32>
    %389 = vector.extract_strided_slice %382 {offsets = [0, 128], sizes = [8, 128], strides = [1, 1]} : vector<8x512xf32> to vector<8x128xf32>
    %390 = arith.negf %389 : vector<8x128xf32>
    %391 = math.exp %390 : vector<8x128xf32>
    %cst_72 = arith.constant 1.000000e+00 : f32
    %392 = vector.broadcast %cst_72 : f32 to vector<8x128xf32>
    %393 = arith.addf %392, %391 : vector<8x128xf32>
    %394 = arith.divf %392, %393 : vector<8x128xf32>
    %395 = vector.extract_strided_slice %382 {offsets = [0, 256], sizes = [8, 128], strides = [1, 1]} : vector<8x512xf32> to vector<8x128xf32>
    %396 = math.tanh %395 : vector<8x128xf32>
    %397 = vector.extract_strided_slice %382 {offsets = [0, 384], sizes = [8, 128], strides = [1, 1]} : vector<8x512xf32> to vector<8x128xf32>
    %398 = arith.negf %397 : vector<8x128xf32>
    %399 = math.exp %398 : vector<8x128xf32>
    %cst_73 = arith.constant 1.000000e+00 : f32
    %400 = vector.broadcast %cst_73 : f32 to vector<8x128xf32>
    %401 = arith.addf %400, %399 : vector<8x128xf32>
    %402 = arith.divf %400, %401 : vector<8x128xf32>
    %403 = arith.mulf %394, %377 : vector<8x128xf32>
    %404 = arith.mulf %388, %396 : vector<8x128xf32>
    %405 = arith.addf %403, %404 : vector<8x128xf32>
    %406 = math.tanh %405 : vector<8x128xf32>
    %407 = arith.mulf %402, %406 : vector<8x128xf32>
    %408 = vector.extract_strided_slice %11 {offsets = [48, 0], sizes = [8, 512], strides = [1, 1]} : vector<56x512xf32> to vector<8x512xf32>
    %cst_74 = arith.constant dense<0.000000e+00> : vector<8x512xf32>
    %409 = tpu.matmul %407, %239, %cst_74 {dimension_numbers = #tpu.dot_dimension_numbers<[1], [0], [0], [1], [0, 0, 1, 1], [], []>} : vector<8x128xf32>, vector<128x512xf32>, vector<8x512xf32> -> vector<8x512xf32>
    %410 = arith.addf %408, %409 : vector<8x512xf32>
    %411 = vector.extract_strided_slice %410 {offsets = [0, 0], sizes = [8, 128], strides = [1, 1]} : vector<8x512xf32> to vector<8x128xf32>
    %412 = arith.negf %411 : vector<8x128xf32>
    %413 = math.exp %412 : vector<8x128xf32>
    %cst_75 = arith.constant 1.000000e+00 : f32
    %414 = vector.broadcast %cst_75 : f32 to vector<8x128xf32>
    %415 = arith.addf %414, %413 : vector<8x128xf32>
    %416 = arith.divf %414, %415 : vector<8x128xf32>
    %417 = vector.extract_strided_slice %410 {offsets = [0, 128], sizes = [8, 128], strides = [1, 1]} : vector<8x512xf32> to vector<8x128xf32>
    %418 = arith.negf %417 : vector<8x128xf32>
    %419 = math.exp %418 : vector<8x128xf32>
    %cst_76 = arith.constant 1.000000e+00 : f32
    %420 = vector.broadcast %cst_76 : f32 to vector<8x128xf32>
    %421 = arith.addf %420, %419 : vector<8x128xf32>
    %422 = arith.divf %420, %421 : vector<8x128xf32>
    %423 = vector.extract_strided_slice %410 {offsets = [0, 256], sizes = [8, 128], strides = [1, 1]} : vector<8x512xf32> to vector<8x128xf32>
    %424 = math.tanh %423 : vector<8x128xf32>
    %425 = vector.extract_strided_slice %410 {offsets = [0, 384], sizes = [8, 128], strides = [1, 1]} : vector<8x512xf32> to vector<8x128xf32>
    %426 = arith.negf %425 : vector<8x128xf32>
    %427 = math.exp %426 : vector<8x128xf32>
    %cst_77 = arith.constant 1.000000e+00 : f32
    %428 = vector.broadcast %cst_77 : f32 to vector<8x128xf32>
    %429 = arith.addf %428, %427 : vector<8x128xf32>
    %430 = arith.divf %428, %429 : vector<8x128xf32>
    %431 = arith.mulf %422, %405 : vector<8x128xf32>
    %432 = arith.mulf %416, %424 : vector<8x128xf32>
    %433 = arith.addf %431, %432 : vector<8x128xf32>
    %434 = math.tanh %433 : vector<8x128xf32>
    %435 = arith.mulf %430, %434 : vector<8x128xf32>
    %436 = tpu.concatenate %267, %295, %323, %351, %379, %407, %435 in 0 : vector<8x128xf32>, vector<8x128xf32>, vector<8x128xf32>, vector<8x128xf32>, vector<8x128xf32>, vector<8x128xf32>, vector<8x128xf32> -> vector<56x128xf32>
    %c0_78 = arith.constant 0 : index
    %c0_79 = arith.constant 0 : index
    %437 = vector.load %arg8[%c0_78, %c0_79] : memref<128x256xf32, #tpu.memory_space<vmem>>, vector<128x256xf32>
    %cst_80 = arith.constant dense<0.000000e+00> : vector<56x256xf32>
    %438 = tpu.matmul %436, %437, %cst_80 {dimension_numbers = #tpu.dot_dimension_numbers<[1], [0], [0], [1], [0, 0, 1, 1], [], []>} : vector<56x128xf32>, vector<128x256xf32>, vector<56x256xf32> -> vector<56x256xf32>
    %c0_81 = arith.constant 0 : index
    %c0_82 = arith.constant 0 : index
    %439 = vector.load %arg9[%c0_81, %c0_82] : memref<1x256xf32, #tpu.memory_space<vmem>>, vector<1x256xf32>
    %440 = vector.broadcast %439 : vector<1x256xf32> to vector<56x256xf32>
    %441 = arith.addf %438, %440 : vector<56x256xf32>
    %442 = vector.extract_strided_slice %441 {offsets = [0, 0], sizes = [8, 256], strides = [1, 1]} : vector<56x256xf32> to vector<8x256xf32>
    %c0_83 = arith.constant 0 : index
    %c0_84 = arith.constant 0 : index
    %443 = vector.load %arg10[%c0_83, %c0_84] : memref<8x1792xf32, #tpu.memory_space<vmem>>, vector<8x256xf32>
    tpu.vector_store %arg10[%c0_83, %c0_84], %442 {strides = array<i32>} : memref<8x1792xf32, #tpu.memory_space<vmem>>, vector<8x256xf32>,
    %444 = vector.extract_strided_slice %441 {offsets = [8, 0], sizes = [8, 256], strides = [1, 1]} : vector<56x256xf32> to vector<8x256xf32>
    %c0_85 = arith.constant 0 : index
    %c256 = arith.constant 256 : index
    %445 = vector.load %arg10[%c0_85, %c256] : memref<8x1792xf32, #tpu.memory_space<vmem>>, vector<8x256xf32>
    tpu.vector_store %arg10[%c0_85, %c256], %444 {strides = array<i32>} : memref<8x1792xf32, #tpu.memory_space<vmem>>, vector<8x256xf32>,
    %446 = vector.extract_strided_slice %441 {offsets = [16, 0], sizes = [8, 256], strides = [1, 1]} : vector<56x256xf32> to vector<8x256xf32>
    %c0_86 = arith.constant 0 : index
    %c512 = arith.constant 512 : index
    %447 = vector.load %arg10[%c0_86, %c512] : memref<8x1792xf32, #tpu.memory_space<vmem>>, vector<8x256xf32>
    tpu.vector_store %arg10[%c0_86, %c512], %446 {strides = array<i32>} : memref<8x1792xf32, #tpu.memory_space<vmem>>, vector<8x256xf32>,
    %448 = vector.extract_strided_slice %441 {offsets = [24, 0], sizes = [8, 256], strides = [1, 1]} : vector<56x256xf32> to vector<8x256xf32>
    %c0_87 = arith.constant 0 : index
    %c768 = arith.constant 768 : index
    %449 = vector.load %arg10[%c0_87, %c768] : memref<8x1792xf32, #tpu.memory_space<vmem>>, vector<8x256xf32>
    tpu.vector_store %arg10[%c0_87, %c768], %448 {strides = array<i32>} : memref<8x1792xf32, #tpu.memory_space<vmem>>, vector<8x256xf32>,
    %450 = vector.extract_strided_slice %441 {offsets = [32, 0], sizes = [8, 256], strides = [1, 1]} : vector<56x256xf32> to vector<8x256xf32>
    %c0_88 = arith.constant 0 : index
    %c1024 = arith.constant 1024 : index
    %451 = vector.load %arg10[%c0_88, %c1024] : memref<8x1792xf32, #tpu.memory_space<vmem>>, vector<8x256xf32>
    tpu.vector_store %arg10[%c0_88, %c1024], %450 {strides = array<i32>} : memref<8x1792xf32, #tpu.memory_space<vmem>>, vector<8x256xf32>,
    %452 = vector.extract_strided_slice %441 {offsets = [40, 0], sizes = [8, 256], strides = [1, 1]} : vector<56x256xf32> to vector<8x256xf32>
    %c0_89 = arith.constant 0 : index
    %c1280 = arith.constant 1280 : index
    %453 = vector.load %arg10[%c0_89, %c1280] : memref<8x1792xf32, #tpu.memory_space<vmem>>, vector<8x256xf32>
    tpu.vector_store %arg10[%c0_89, %c1280], %452 {strides = array<i32>} : memref<8x1792xf32, #tpu.memory_space<vmem>>, vector<8x256xf32>,
    %454 = vector.extract_strided_slice %441 {offsets = [48, 0], sizes = [8, 256], strides = [1, 1]} : vector<56x256xf32> to vector<8x256xf32>
    %c0_90 = arith.constant 0 : index
    %c1536 = arith.constant 1536 : index
    %455 = vector.load %arg10[%c0_90, %c1536] : memref<8x1792xf32, #tpu.memory_space<vmem>>, vector<8x256xf32>
    tpu.vector_store %arg10[%c0_90, %c1536], %454 {strides = array<i32>} : memref<8x1792xf32, #tpu.memory_space<vmem>>, vector<8x256xf32>,
    return
  }
}

</mosaic_0001>

<bundles_post_ra>
// kernel: tpu_custom_call.1
= control target key start
LH: loop header
LB: loop body
LE: loop exit
PB: predicated region body
PF: predicated region fallthrough
CT: control target
= control target key end

     0   :  { %15 = vsyncpa [#allocation3], 0  ;;  %s6483_s0 = inlined_call_operand.hbm [shape: f32[64,128], index: 0, kind: input, shape index: {}]   ;;  %s6484_s1 = inlined_call_operand.hbm [shape: f32[56,128], index: 1, kind: input, shape index: {}]   ;;  %s6485_s2 = inlined_call_operand.hbm [shape: f32[128,512], index: 2, kind: input, shape index: {}]   ;;  %s6486_s3 = inlined_call_operand.hbm [shape: f32[128,512], index: 3, kind: input, shape index: {}]   ;;  %s6487_s4 = inlined_call_operand.vmem [shape: f32[1,512], index: 4, kind: input, shape index: {}]   ;;  %s6488_s5 = inlined_call_operand.hbm [shape: f32[128,512], index: 5, kind: input, shape index: {}]   ;;  %s6489_s6 = inlined_call_operand.hbm [shape: f32[128,512], index: 6, kind: input, shape index: {}]   ;;  %s6490_s7 = inlined_call_operand.vmem [shape: f32[1,512], index: 7, kind: input, shape index: {}]   ;;  %s6491_s8 = inlined_call_operand.hbm [shape: f32[128,256], index: 8, kind: input, shape index: {}]   ;;  %s6492_s9 = inlined_call_operand.vmem [shape: f32[1,256], index: 9, kind: input, shape index: {}]   ;;  %s6493_s10 = inlined_call_operand.hbm [shape: f32[8,1792], index: 10, kind: output, shape index: {}]  }
   0x1   :  { %16 = vsyncpa [#allocation6], 0 }
   0x2   :  { %17 = vsyncpa [#allocation9], 0 }
   0x3   :  { %18 = vsyncpa [#allocation12], 0 }
   0x4   :  { %19 = vsyncpa [#allocation4], 0  ;;  %s5345_s13 = smov [#allocation5]   ;;  %s5159_s17 = scalar_lea.hbm %s6484_s1, 896 }
   0x5   :  { %s37_s14 = sshll.u32 %s5345_s13, 4  ;;  %p5160_p0 = scmp.ne.s32.totalorder %s6484_s1, %s5159_s17  ;;  %s38_s14 = int_to_ptr.vmem [resolvable:$true] %s37_s14 }
   0x6   :  { %p5163_p1 = scmp.lt.u32.totalorder %s5159_s17, %s6484_s1 }
   0x8   :  { %p5165_p2 = pnand %p5163_p1, %p5160_p0 }
   0xa   :  { %5168 = shalt.err (!%p5165_p2)
}
   0xb   :  { %s5169_s22 = scalar_lea.vmem %s38_s14, 896  ;;  %p5174_p4 = scmp.lt.s32.totalorder %s38_s14, %s38_s14 }
   0xc   :  { %p5170_p3 = scmp.ne.s32.totalorder %s38_s14, %s5169_s22  ;;  %p5175_p5 = scmp.lt.s32.totalorder %s5169_s22, %s5169_s22 }
   0xe   :  { %p5176_p6 = por %p5175_p5, %p5174_p4 }
  0x10   :  { %p5177_p7 = pnand %p5176_p6, %p5170_p3 }
  0x12   :  { %5180 = shalt.err (!%p5177_p7)
}
  0x13   :  { %s5346_s23 = smov 128   ;;  %s5347_s24 = smov 8  }
  0x14   :  { %43 = dma.hbm_to_vmem [thread:$0]  %s6484_s1, 896, %s38_s14, [#allocation6], %s5346_s23, %s5346_s23, %s5347_s24  }
  0x15   :  { %s5348_s27 = smov [#allocation8]   ;;  %s5349_s29 = smov [#allocation11]  }
  0x16   :  { %s61_s28 = sshll.u32 %s5348_s27, 4  ;;  %s87_s30 = sshll.u32 %s5349_s29, 4  ;;  %s62_s28 = int_to_ptr.vmem [resolvable:$true] %s61_s28  ;;  %s88_s30 = int_to_ptr.vmem [resolvable:$true] %s87_s30 }
  0x17   :  { %s5181_s13 = scalar_lea.hbm %s6486_s3, 8192 }
  0x18   :  { %p5182_p8 = scmp.ne.s32.totalorder %s6486_s3, %s5181_s13  ;;  %p5185_p9 = scmp.lt.u32.totalorder %s5181_s13, %s6486_s3 }
  0x1a   :  { %p5187_p10 = pnand %p5185_p9, %p5182_p8 }
  0x1c   :  { %5190 = shalt.err (!%p5187_p10)
}
  0x1d   :  { %s5191_s1 = scalar_lea.vmem %s62_s28, 8192  ;;  %p5196_p12 = scmp.lt.s32.totalorder %s62_s28, %s62_s28 }
  0x1e   :  { %p5192_p11 = scmp.ne.s32.totalorder %s62_s28, %s5191_s1  ;;  %p5197_p13 = scmp.lt.s32.totalorder %s5191_s1, %s5191_s1 }
  0x20   :  { %p5198_p0 = por %p5197_p13, %p5196_p12 }
  0x22   :  { %p5199_p1 = pnand %p5198_p0, %p5192_p11 }
  0x24   :  { %5202 = shalt.err (!%p5199_p1)
}
  0x25   :  { %s5350_s14 = smov 512   ;;  %s5351_s19 = smov 32  }
  0x26   :  { %67 = dma.hbm_to_vmem [thread:$0]  %s6486_s3, 8192, %s62_s28, [#allocation9], %s5350_s14, %s5350_s14, %s5351_s19  }
  0x27   :  { %s5203_s26 = scalar_lea.hbm %s6489_s6, 8192 }
  0x28   :  { %p5204_p2 = scmp.ne.s32.totalorder %s6489_s6, %s5203_s26  ;;  %p5207_p3 = scmp.lt.u32.totalorder %s5203_s26, %s6489_s6 }
  0x2a   :  { %p5209_p4 = pnand %p5207_p3, %p5204_p2 }
  0x2c   :  { %5212 = shalt.err (!%p5209_p4)
}
  0x2d   :  { %s5213_s13 = scalar_lea.vmem %s88_s30, 8192  ;;  %p5218_p6 = scmp.lt.s32.totalorder %s88_s30, %s88_s30 }
  0x2e   :  { %p5214_p5 = scmp.ne.s32.totalorder %s88_s30, %s5213_s13  ;;  %p5219_p7 = scmp.lt.s32.totalorder %s5213_s13, %s5213_s13 }
  0x30   :  { %p5220_p8 = por %p5219_p7, %p5218_p6 }
  0x32   :  { %p5221_p9 = pnand %p5220_p8, %p5214_p5 }
  0x34   :  { %5224 = shalt.err (!%p5221_p9)
}
  0x35   :  { %93 = dma.hbm_to_vmem [thread:$0]  %s6489_s6, 8192, %s88_s30, [#allocation12], %s5350_s14, %s5350_s14, %s5351_s19  }
  0x36   :  { %s5352_s15 = smov [#allocation2]   ;;  %s5353_s17 = smov [#allocation7]  }
  0x37   :  { %s25_s16 = sshll.u32 %s5352_s15, 4  ;;  %s49_s18 = sshll.u32 %s5353_s17, 4  ;;  %s26_s16 = int_to_ptr.vmem [resolvable:$true] %s25_s16  ;;  %s50_s18 = int_to_ptr.vmem [resolvable:$true] %s49_s18 }
  0x38   :  { %s5225_s21 = scalar_lea.hbm %s6483_s0, 1024 }
  0x39   :  { %p5226_p10 = scmp.ne.s32.totalorder %s6483_s0, %s5225_s21  ;;  %p5229_p11 = scmp.lt.u32.totalorder %s5225_s21, %s6483_s0 }
  0x3b   :  { %p5231_p12 = pnand %p5229_p11, %p5226_p10 }
  0x3d   :  { %5234 = shalt.err (!%p5231_p12)
}
  0x3e   :  { %s5235_s6 = scalar_lea.vmem %s26_s16, 1024  ;;  %p5240_p0 = scmp.lt.s32.totalorder %s26_s16, %s26_s16 }
  0x3f   :  { %p5236_p13 = scmp.ne.s32.totalorder %s26_s16, %s5235_s6  ;;  %p5241_p1 = scmp.lt.s32.totalorder %s5235_s6, %s5235_s6 }
  0x41   :  { %p5242_p2 = por %p5241_p1, %p5240_p0 }
  0x43   :  { %p5243_p3 = pnand %p5242_p2, %p5236_p13 }
  0x45   :  { %5246 = shalt.err (!%p5243_p3)
}
  0x46   :  { %31 = dma.hbm_to_vmem [thread:$0]  %s6483_s0, 1024, %s26_s16, [#allocation3], %s5346_s23, %s5346_s23, %s5347_s24  }
  0x47   :  { %s5247_s13 = scalar_lea.hbm %s6485_s2, 8192 }
  0x48   :  { %p5248_p4 = scmp.ne.s32.totalorder %s6485_s2, %s5247_s13  ;;  %p5251_p5 = scmp.lt.u32.totalorder %s5247_s13, %s6485_s2 }
  0x4a   :  { %p5253_p6 = pnand %p5251_p5, %p5248_p4 }
  0x4c   :  { %5256 = shalt.err (!%p5253_p6)
}
  0x4d   :  { %s5257_s1 = scalar_lea.vmem %s50_s18, 8192  ;;  %p5262_p8 = scmp.lt.s32.totalorder %s50_s18, %s50_s18 }
  0x4e   :  { %p5258_p7 = scmp.ne.s32.totalorder %s50_s18, %s5257_s1  ;;  %p5263_p9 = scmp.lt.s32.totalorder %s5257_s1, %s5257_s1 }
  0x50   :  { %p5264_p10 = por %p5263_p9, %p5262_p8 }
  0x52   :  { %p5265_p11 = pnand %p5264_p10, %p5258_p7 }
  0x54   :  { %5268 = shalt.err (!%p5265_p11)
}
  0x55   :  { %55 = dma.hbm_to_vmem [thread:$0]  %s6485_s2, 8192, %s50_s18, [#allocation6], %s5350_s14, %s5350_s14, %s5351_s19  }
  0x56   :  { %s5354_s24 = smov [#allocation10]   ;;  %s5355_s20 = smov [#allocation13]  }
  0x57   :  { %s75_s16 = sshll.u32 %s5354_s24, 4  ;;  %s101_s21 = sshll.u32 %s5355_s20, 4  ;;  %s76_s16 = int_to_ptr.vmem [resolvable:$true] %s75_s16  ;;  %s102_s21 = int_to_ptr.vmem [resolvable:$true] %s101_s21 }
  0x58   :  { %s5269_s26 = scalar_lea.hbm %s6488_s5, 8192 }
  0x59   :  { %p5270_p12 = scmp.ne.s32.totalorder %s6488_s5, %s5269_s26  ;;  %p5273_p13 = scmp.lt.u32.totalorder %s5269_s26, %s6488_s5 }
  0x5b   :  { %p5275_p0 = pnand %p5273_p13, %p5270_p12 }
  0x5d   :  { %5278 = shalt.err (!%p5275_p0)
}
  0x5e   :  { %s5279_s2 = scalar_lea.vmem %s76_s16, 8192  ;;  %p5284_p2 = scmp.lt.s32.totalorder %s76_s16, %s76_s16 }
  0x5f   :  { %p5280_p1 = scmp.ne.s32.totalorder %s76_s16, %s5279_s2  ;;  %p5285_p3 = scmp.lt.s32.totalorder %s5279_s2, %s5279_s2 }
  0x61   :  { %p5286_p4 = por %p5285_p3, %p5284_p2 }
  0x63   :  { %p5287_p5 = pnand %p5286_p4, %p5280_p1 }
  0x65   :  { %5290 = shalt.err (!%p5287_p5)
}
  0x66   :  { %81 = dma.hbm_to_vmem [thread:$0]  %s6488_s5, 8192, %s76_s16, [#allocation9], %s5350_s14, %s5350_s14, %s5351_s19  }
  0x67   :  { %s5291_s3 = scalar_lea.hbm %s6491_s8, 4096 }
  0x68   :  { %p5292_p6 = scmp.ne.s32.totalorder %s6491_s8, %s5291_s3  ;;  %p5295_p7 = scmp.lt.u32.totalorder %s5291_s3, %s6491_s8 }
  0x6a   :  { %p5297_p8 = pnand %p5295_p7, %p5292_p6 }
  0x6c   :  { %5300 = shalt.err (!%p5297_p8)
}
  0x6d   :  { %s5301_s0 = scalar_lea.vmem %s102_s21, 4096  ;;  %p5306_p10 = scmp.lt.s32.totalorder %s102_s21, %s102_s21 }
  0x6e   :  { %p5302_p9 = scmp.ne.s32.totalorder %s102_s21, %s5301_s0  ;;  %p5307_p11 = scmp.lt.s32.totalorder %s5301_s0, %s5301_s0 }
  0x70   :  { %p5308_p12 = por %p5307_p11, %p5306_p10 }
  0x72   :  { %p5309_p13 = pnand %p5308_p12, %p5302_p9 }
  0x74   :  { %5312 = shalt.err (!%p5309_p13)
}
  0x75   :  { %s5356_s5 = smov 256   ;;  %s5357_s14 = smov 16  }
  0x76   :  { %107 = dma.hbm_to_vmem [thread:$0]  %s6491_s8, 4096, %s102_s21, [#allocation12], %s5356_s5, %s5356_s5, %s5357_s14  }
  0x77   :  { %5335 = dma.done.wait [#allocation3], 1024  }
  0x78   :  { %5336 = vsyncadd [#allocation3], 4294966272 }
  0x79   :  { %5337 = dma.done.wait [#allocation6], 9088  }
  0x7a   :  { %5338 = vsyncadd [#allocation6], 4294958208 }
  0x7b   :  { %5339 = dma.done.wait [#allocation9], 16384  }
  0x7c   :  { %5340 = vsyncadd [#allocation9], 4294950912 }
  0x7d   :  { %5341 = dma.done.wait [#allocation12], 12288  }
  0x7e   :  { %5342 = vsyncadd [#allocation12], 4294955008  ;;  %v6494_v0 = vmov 0.0   ;;  %v140_v1 = vld [vmem:[#allocation7 + $0x8] sm:$0xff]  ;;  %v139_v6 = vld [vmem:[#allocation7] sm:$0xff] }
  0x7f   :  { %289 = vmatprep.mubr.f32.mxu1 %v6494_v0  ;;  %608 = vmatprep.mubr.f32.mxu0 %v6494_v0  ;;  %v144_v2 = vld [vmem:[#allocation7 + $0x28] sm:$0xff]  ;;  %v143_v7 = vld [vmem:[#allocation7 + $0x20] sm:$0xff] }
  0x80   :  { %v459_v3 = vld [vmem:[#allocation10 + $0x8] sm:$0xff]  ;;  %v3664_v4 = vpack.c.bf16 %v144_v2, %v140_v1  ;;  %v3666_v9 = vpack.c.bf16 %v143_v7, %v139_v6  ;;  %v458_v10 = vld [vmem:[#allocation10] sm:$0xff] }
  0x81   :  { %v463_v5 = vld [vmem:[#allocation10 + $0x28] sm:$0xff]  ;;  %v462_v11 = vld [vmem:[#allocation10 + $0x20] sm:$0xff] }
  0x82   :  { %v3728_v8 = vpack.c.bf16 %v463_v5, %v459_v3  ;;  %v148_v12 = vld [vmem:[#allocation7 + $0x48] sm:$0xff]  ;;  %3665 = vmatprep.subr.bf16.mxu1 %v3664_v4  ;;  %v3730_v13 = vpack.c.bf16 %v462_v11, %v458_v10  ;;  %v147_v19 = vld [vmem:[#allocation7 + $0x40] sm:$0xff] }
  0x83   :  { %v152_v14 = vld [vmem:[#allocation7 + $0x68] sm:$0xff]  ;;  %3667 = vmatpush1.bf16.msra.mxu1 %v3666_v9  ;;  %v151_v20 = vld [vmem:[#allocation7 + $0x60] sm:$0xff] }
  0x84   :  { %v467_v15 = vld [vmem:[#allocation10 + $0x48] sm:$0xff]  ;;  %3729 = vmatprep.subr.bf16.mxu0 %v3728_v8  ;;  %v3668_v17 = vpack.c.bf16 %v152_v14, %v148_v12  ;;  %v466_v21 = vld [vmem:[#allocation10 + $0x40] sm:$0xff]  ;;  %v3670_v22 = vpack.c.bf16 %v151_v20, %v147_v19 }
  0x85   :  { %v471_v16 = vld [vmem:[#allocation10 + $0x68] sm:$0xff]  ;;  %3731 = vmatpush1.bf16.msra.mxu0 %v3730_v13  ;;  %v470_v23 = vld [vmem:[#allocation10 + $0x60] sm:$0xff] }
  0x86   :  { %v3732_v18 = vpack.c.bf16 %v471_v16, %v467_v15  ;;  %v156_v24 = vld [vmem:[#allocation7 + $0x88] sm:$0xff]  ;;  %3669 = vmatprep.subr.bf16.mxu1 %v3668_v17  ;;  %v3734_v26 = vpack.c.bf16 %v470_v23, %v466_v21  ;;  %v155_v30 = vld [vmem:[#allocation7 + $0x80] sm:$0xff] }
  0x87   :  { %v160_v25 = vld [vmem:[#allocation7 + $0xa8] sm:$0xff]  ;;  %v159_v32 = vld [vmem:[#allocation7 + $0xa0] sm:$0xff]  ;;  %3671 = vmatpush1.bf16.msra.mxu1 %v3670_v22 }
  0x88   :  { %3733 = vmatprep.subr.bf16.mxu0 %v3732_v18  ;;  %v3672_v27 = vpack.c.bf16 %v160_v25, %v156_v24  ;;  %v475_v28 = vld [vmem:[#allocation10 + $0x88] sm:$0xff]  ;;  %v474_v33 = vld [vmem:[#allocation10 + $0x80] sm:$0xff]  ;;  %v3674_v35 = vpack.c.bf16 %v159_v32, %v155_v30  ;;  %v142_v32 = vld [vmem:[#allocation7 + $0x18] sm:$0xff] }
  0x89   :  { %v479_v29 = vld [vmem:[#allocation10 + $0xa8] sm:$0xff]  ;;  %v478_v34 = vld [vmem:[#allocation10 + $0xa0] sm:$0xff]  ;;  %3735 = vmatpush1.bf16.msra.mxu0 %v3734_v26 }
  0x8a   :  { %v3736_v31 = vpack.c.bf16 %v479_v29, %v475_v28  ;;  %v164_v36 = vld [vmem:[#allocation7 + $0xc8] sm:$0xff]  ;;  %3673 = vmatprep.subr.bf16.mxu1 %v3672_v27  ;;  %v3738_v39 = vpack.c.bf16 %v478_v34, %v474_v33  ;;  %v163_v42 = vld [vmem:[#allocation7 + $0xc0] sm:$0xff]  ;;  %v146_v33 = vld [vmem:[#allocation7 + $0x38] sm:$0xff] }
  0x8b   :  { %v168_v37 = vld [vmem:[#allocation7 + $0xe8] sm:$0xff]  ;;  %v167_v43 = vld [vmem:[#allocation7 + $0xe0] sm:$0xff]  ;;  %3675 = vmatpush1.bf16.msra.mxu1 %v3674_v35 }
  0x8c   :  { %v483_v38 = vld [vmem:[#allocation10 + $0xc8] sm:$0xff]  ;;  %v3676_v40 = vpack.c.bf16 %v168_v37, %v164_v36  ;;  %3737 = vmatprep.subr.bf16.mxu0 %v3736_v31  ;;  %v482_v45 = vld [vmem:[#allocation10 + $0xc0] sm:$0xff]  ;;  %v3678_v51 = vpack.c.bf16 %v167_v43, %v163_v42 }
  0x8d   :  { %v487_v41 = vld [vmem:[#allocation10 + $0xe8] sm:$0xff]  ;;  %v486_v46 = vld [vmem:[#allocation10 + $0xe0] sm:$0xff]  ;;  %3739 = vmatpush1.bf16.msra.mxu0 %v3738_v39  ;;  %v141_v39 = vld [vmem:[#allocation7 + $0x10] sm:$0xff] }
  0x8e   :  { %v3740_v44 = vpack.c.bf16 %v487_v41, %v483_v38  ;;  %v172_v47 = vld [vmem:[#allocation7 + $0x108] sm:$0xff]  ;;  %3677 = vmatprep.subr.bf16.mxu1 %v3676_v40  ;;  %v3742_v52 = vpack.c.bf16 %v486_v46, %v482_v45  ;;  %v171_v54 = vld [vmem:[#allocation7 + $0x100] sm:$0xff]  ;;  %v3696_v38 = vpack.c.bf16 %v146_v33, %v142_v32  ;;  %v145_v40 = vld [vmem:[#allocation7 + $0x30] sm:$0xff] }
  0x8f   :  { %v176_v48 = vld [vmem:[#allocation7 + $0x128] sm:$0xff]  ;;  %v175_v55 = vld [vmem:[#allocation7 + $0x120] sm:$0xff]  ;;  %3679 = vmatpush1.bf16.msra.mxu1 %v3678_v51  ;;  %v154_v45 = vld [vmem:[#allocation7 + $0x78] sm:$0xff] }
  0x90   :  { %v491_v49 = vld [vmem:[#allocation10 + $0x108] sm:$0xff]  ;;  %v3680_v53 = vpack.c.bf16 %v176_v48, %v172_v47  ;;  %v490_v56 = vld [vmem:[#allocation10 + $0x100] sm:$0xff]  ;;  %3741 = vmatprep.subr.bf16.mxu0 %v3740_v44  ;;  %v3682_v63 = vpack.c.bf16 %v175_v55, %v171_v54  ;;  %v150_v44 = vld [vmem:[#allocation7 + $0x58] sm:$0xff] }
  0x91   :  { %v495_v50 = vld [vmem:[#allocation10 + $0x128] sm:$0xff]  ;;  %v494_v58 = vld [vmem:[#allocation10 + $0x120] sm:$0xff]  ;;  %3743 = vmatpush1.bf16.msra.mxu0 %v3742_v52  ;;  %v149_v52 = vld [vmem:[#allocation7 + $0x50] sm:$0xff]  ;;  %v3700_v55 = vpack.c.bf16 %v154_v45, %v150_v44 }
  0x92   :  { %v3744_v57 = vpack.c.bf16 %v495_v50, %v491_v49  ;;  %v180_v59 = vld [vmem:[#allocation7 + $0x148] sm:$0xff]  ;;  %3681 = vmatprep.subr.bf16.mxu1 %v3680_v53  ;;  %v3746_v1 = vpack.c.bf16 %v494_v58, %v490_v56  ;;  %v179_v3 = vld [vmem:[#allocation7 + $0x140] sm:$0xff]  ;;  %v3698_v49 = vpack.c.bf16 %v145_v40, %v141_v39  ;;  %v153_v53 = vld [vmem:[#allocation7 + $0x70] sm:$0xff] }
  0x93   :  { %v184_v60 = vld [vmem:[#allocation7 + $0x168] sm:$0xff]  ;;  %v183_v4 = vld [vmem:[#allocation7 + $0x160] sm:$0xff]  ;;  %3683 = vmatpush1.bf16.msra.mxu1 %v3682_v63  ;;  %v158_v58 = vld [vmem:[#allocation7 + $0x98] sm:$0xff]  ;;  %v3702_v63 = vpack.c.bf16 %v153_v53, %v149_v52 }
  0x94   :  { %v499_v61 = vld [vmem:[#allocation10 + $0x148] sm:$0xff]  ;;  %v3684_v2 = vpack.c.bf16 %v184_v60, %v180_v59  ;;  %v498_v5 = vld [vmem:[#allocation10 + $0x140] sm:$0xff]  ;;  %3745 = vmatprep.subr.bf16.mxu0 %v3744_v57  ;;  %v3686_v12 = vpack.c.bf16 %v183_v4, %v179_v3  ;;  %v162_v59 = vld [vmem:[#allocation7 + $0xb8] sm:$0xff] }
  0x95   :  { %v503_v62 = vld [vmem:[#allocation10 + $0x168] sm:$0xff]  ;;  %v502_v7 = vld [vmem:[#allocation10 + $0x160] sm:$0xff]  ;;  %3747 = vmatpush1.bf16.msra.mxu0 %v3746_v1  ;;  %v157_v3 = vld [vmem:[#allocation7 + $0x90] sm:$0xff] }
  0x96   :  { %v3748_v6 = vpack.c.bf16 %v503_v62, %v499_v61  ;;  %v188_v8 = vld [vmem:[#allocation7 + $0x188] sm:$0xff]  ;;  %3685 = vmatprep.subr.bf16.mxu1 %v3684_v2  ;;  %v3750_v13 = vpack.c.bf16 %v502_v7, %v498_v5  ;;  %v187_v15 = vld [vmem:[#allocation7 + $0x180] sm:$0xff]  ;;  %v5532_v62 = vld [vmem:[#allocation2 + $0x8] sm:$0xff]  ;;  %v3704_v2 = vpack.c.bf16 %v162_v59, %v158_v58 }
  0x97   :  { %v192_v9 = vld [vmem:[#allocation7 + $0x1a8] sm:$0xff]  ;;  %v191_v16 = vld [vmem:[#allocation7 + $0x1a0] sm:$0xff]  ;;  %3687 = vmatpush1.bf16.msra.mxu1 %v3686_v12  ;;  %v161_v4 = vld [vmem:[#allocation7 + $0xb0] sm:$0xff] }
  0x98   :  { %v507_v10 = vld [vmem:[#allocation10 + $0x188] sm:$0xff]  ;;  %v3688_v14 = vpack.c.bf16 %v192_v9, %v188_v8  ;;  %v506_v17 = vld [vmem:[#allocation10 + $0x180] sm:$0xff]  ;;  %3749 = vmatprep.subr.bf16.mxu0 %v3748_v6  ;;  %v3690_v24 = vpack.c.bf16 %v191_v16, %v187_v15  ;;  %v166_v8 = vld [vmem:[#allocation7 + $0xd8] sm:$0xff] }
  0x99   :  { %v511_v11 = vld [vmem:[#allocation10 + $0x1a8] sm:$0xff]  ;;  %v510_v19 = vld [vmem:[#allocation10 + $0x1a0] sm:$0xff]  ;;  %3751 = vmatpush1.bf16.msra.mxu0 %v3750_v13  ;;  %v170_v9 = vld [vmem:[#allocation7 + $0xf8] sm:$0xff] }
  0x9a   :  { %v3752_v18 = vpack.c.bf16 %v511_v11, %v507_v10  ;;  %v196_v20 = vld [vmem:[#allocation7 + $0x1c8] sm:$0xff]  ;;  %3689 = vmatprep.subr.bf16.mxu1 %v3688_v14  ;;  %v3754_v25 = vpack.c.bf16 %v510_v19, %v506_v17  ;;  %v195_v27 = vld [vmem:[#allocation7 + $0x1c0] sm:$0xff]  ;;  %v5543_v10 = vld [vmem:[#allocation5 + $0x8] sm:$0xff]  ;;  %v3706_v14 = vpack.c.bf16 %v161_v4, %v157_v3  ;;  %v3708_v16 = vpack.c.bf16 %v170_v9, %v166_v8 }
  0x9b   :  { %v200_v21 = vld [vmem:[#allocation7 + $0x1e8] sm:$0xff]  ;;  %v199_v28 = vld [vmem:[#allocation7 + $0x1e0] sm:$0xff]  ;;  %3691 = vmatpush1.bf16.msra.mxu1 %v3690_v24  ;;  %v5546_v13 = vld [vmem:[#allocation2 + $0x10] sm:$0xff] }
  0x9c   :  { %v515_v22 = vld [vmem:[#allocation10 + $0x1c8] sm:$0xff]  ;;  %v3692_v26 = vpack.c.bf16 %v200_v21, %v196_v20  ;;  %v514_v29 = vld [vmem:[#allocation10 + $0x1c0] sm:$0xff]  ;;  %3753 = vmatprep.subr.bf16.mxu0 %v3752_v18  ;;  %v3694_v36 = vpack.c.bf16 %v199_v28, %v195_v27  ;;  %v165_v17 = vld [vmem:[#allocation7 + $0xd0] sm:$0xff] }
  0x9d   :  { %v519_v23 = vld [vmem:[#allocation10 + $0x1e8] sm:$0xff]  ;;  %v518_v31 = vld [vmem:[#allocation10 + $0x1e0] sm:$0xff]  ;;  %3755 = vmatpush1.bf16.msra.mxu0 %v3754_v25  ;;  %v169_v18 = vld [vmem:[#allocation7 + $0xf0] sm:$0xff] }
  0x9e   :  { %v3756_v30 = vpack.c.bf16 %v519_v23, %v515_v22  ;;  %v759_v34 = vld [vmem:[#allocation8 + $0x8] sm:$0xff]  ;;  %3693 = vmatprep.subr.bf16.mxu1 %v3692_v26  ;;  %v3758_v37 = vpack.c.bf16 %v518_v31, %v514_v29  ;;  %v758_v42 = vld [vmem:[#allocation8] sm:$0xff]  ;;  %v174_v22 = vld [vmem:[#allocation7 + $0x118] sm:$0xff]  ;;  %v3710_v28 = vpack.c.bf16 %v169_v18, %v165_v17 }
  0x9f   :  { %v763_v35 = vld [vmem:[#allocation8 + $0x28] sm:$0xff]  ;;  %v762_v43 = vld [vmem:[#allocation8 + $0x20] sm:$0xff]  ;;  %3695 = vmatpush1.bf16.msra.mxu1 %v3694_v36  ;;  %v178_v23 = vld [vmem:[#allocation7 + $0x138] sm:$0xff] }
  0xa0   :  { %3757 = vmatprep.subr.bf16.mxu0 %v3756_v30  ;;  %v5519_v41 = vpack.c.bf16 %v763_v35, %v759_v34  ;;  %v767_v46 = vld [vmem:[#allocation8 + $0x48] sm:$0xff]  ;;  %3697 = vmatprep.subr.bf16.mxu1 %v3696_v38  ;;  %v5525_v51 = vpack.c.bf16 %v762_v43, %v758_v42  ;;  %v766_v54 = vld [vmem:[#allocation8 + $0x40] sm:$0xff]  ;;  %v5557_v24 = vld [vmem:[#allocation5 + $0x10] sm:$0xff]  ;;  %v3712_v30 = vpack.c.bf16 %v178_v23, %v174_v22 }
  0xa1   :  { %v771_v47 = vld [vmem:[#allocation8 + $0x68] sm:$0xff]  ;;  %3759 = vmatpush1.bf16.msra.mxu0 %v3758_v37  ;;  %v770_v57 = vld [vmem:[#allocation8 + $0x60] sm:$0xff]  ;;  %v173_v31 = vld [vmem:[#allocation7 + $0x110] sm:$0xff] }
  0xa2   :  { %v5521_v48 = vld [vmem:[#allocation2] sm:$0xff]  ;;  %3793 = vmatprep.subr.bf16.mxu0 %v5519_v41  ;;  %v5528_v56 = vpack.c.bf16 %v771_v47, %v767_v46  ;;  %v5536_v1 = vpack.c.bf16 %v770_v57, %v766_v54  ;;  %v774_v5 = vld [vmem:[#allocation8 + $0x80] sm:$0xff]  ;;  %v177_v32 = vld [vmem:[#allocation7 + $0x130] sm:$0xff] }
  0xa3   :  { %v5523_v50 = vld [vmem:[#allocation5] sm:$0xff]  ;;  %290 = vmatmul.mubr.f32.vlgmr.msra.gmra.mrb[0].mxu1 %v5521_v48  ;;  %v778_v7 = vld [vmem:[#allocation8 + $0xa0] sm:$0xff]  ;;  %v182_v36 = vld [vmem:[#allocation7 + $0x158] sm:$0xff]  ;;  %v3714_v43 = vpack.c.bf16 %v177_v32, %v173_v31 }
  0xa4   :  { %v775_v60 = vld [vmem:[#allocation8 + $0x88] sm:$0xff]  ;;  %3699 = vmatpush1.bf16.msra.mxu1 %v3698_v49  ;;  %609 = vmatmul.mubr.f32.vlgmr.msra.gmra.mrb[0].mxu0 %v5523_v50  ;;  %v5549_v15 = vpack.c.bf16 %v778_v7, %v774_v5  ;;  %v782_v19 = vld [vmem:[#allocation8 + $0xc0] sm:$0xff]  ;;  %v186_v37 = vld [vmem:[#allocation7 + $0x178] sm:$0xff] }
  0xa5   :  { %v779_v61 = vld [vmem:[#allocation8 + $0xa8] sm:$0xff]  ;;  %3795 = vmatpush1.bf16.msra.mxu0 %v5525_v51  ;;  %295 = vmatprep.mubr.f32.mxu1 %v6494_v0  ;;  %v786_v21 = vld [vmem:[#allocation8 + $0xe0] sm:$0xff]  ;;  %v3716_v45 = vpack.c.bf16 %v186_v37, %v182_v36  ;;  %v181_v46 = vld [vmem:[#allocation7 + $0x150] sm:$0xff] }
  0xa6   :  { %3701 = vmatprep.subr.bf16.mxu1 %v3700_v55  ;;  %3797 = vmatprep.subr.bf16.mxu0 %v5528_v56  ;;  %v5539_v6 = vpack.c.bf16 %v779_v61, %v775_v60  ;;  %v783_v11 = vld [vmem:[#allocation8 + $0xc8] sm:$0xff]  ;;  %v5560_v27 = vld [vmem:[#allocation2 + $0x18] sm:$0xff]  ;;  %v5563_v29 = vpack.c.bf16 %v786_v21, %v782_v19  ;;  %v185_v47 = vld [vmem:[#allocation7 + $0x170] sm:$0xff] }
  0xa7   :  { %296 = vmatmul.mubr.f32.gmra.mrb[2].mxu1 %v5532_v62  ;;  %614 = vmatprep.mubr.f32.mxu0 %v6494_v0  ;;  %v787_v12 = vld [vmem:[#allocation8 + $0xe8] sm:$0xff]  ;;  %v790_v33 = vld [vmem:[#allocation8 + $0x100] sm:$0xff]  ;;  %v190_v54 = vld [vmem:[#allocation7 + $0x198] sm:$0xff]  ;;  %v3718_v61 = vpack.c.bf16 %v185_v47, %v181_v46 }
  0xa8   :  { %3703 = vmatpush1.bf16.msra.mxu1 %v3702_v63  ;;  %301 = vmatprep.mubr.f32.mxu1 %v6494_v0  ;;  %v5553_v20 = vpack.c.bf16 %v787_v12, %v783_v11  ;;  %v791_v25 = vld [vmem:[#allocation8 + $0x108] sm:$0xff]  ;;  %v794_v35 = vld [vmem:[#allocation8 + $0x120] sm:$0xff]  ;;  %v194_v55 = vld [vmem:[#allocation7 + $0x1b8] sm:$0xff] }
  0xa9   :  { %3799 = vmatpush1.bf16.msra.mxu0 %v5536_v1  ;;  %3705 = vmatprep.subr.bf16.mxu1 %v3704_v2  ;;  %v795_v26 = vld [vmem:[#allocation8 + $0x128] sm:$0xff]  ;;  %v5571_v38 = vld [vmem:[#allocation5 + $0x18] sm:$0xff]  ;;  %v5577_v44 = vpack.c.bf16 %v794_v35, %v790_v33  ;;  %v5588_v60 = vld [vmem:[#allocation2 + $0x28] sm:$0xff]  ;;  %v3720_v2 = vpack.c.bf16 %v194_v55, %v190_v54 }
  0xaa   :  { %615 = vmatmul.mubr.f32.gmra.mrb[2].mxu0 %v5543_v10  ;;  %3801 = vmatprep.subr.bf16.mxu0 %v5539_v6  ;;  %v5567_v34 = vpack.c.bf16 %v795_v26, %v791_v25  ;;  %v799_v39 = vld [vmem:[#allocation8 + $0x148] sm:$0xff]  ;;  %v798_v49 = vld [vmem:[#allocation8 + $0x140] sm:$0xff]  ;;  %v189_v3 = vld [vmem:[#allocation7 + $0x190] sm:$0xff] }
  0xab   :  { %302 = vmatmul.mubr.f32.gmra.mrb[4].mxu1 %v5546_v13  ;;  %620 = vmatprep.mubr.f32.mxu0 %v6494_v0  ;;  %v803_v40 = vld [vmem:[#allocation8 + $0x168] sm:$0xff]  ;;  %v802_v53 = vld [vmem:[#allocation8 + $0x160] sm:$0xff]  ;;  %v193_v4 = vld [vmem:[#allocation7 + $0x1b0] sm:$0xff] }
  0xac   :  { %3707 = vmatpush1.bf16.msra.mxu1 %v3706_v14  ;;  %307 = vmatprep.mubr.f32.mxu1 %v6494_v0  ;;  %v5574_v42 = vld [vmem:[#allocation2 + $0x20] sm:$0xff]  ;;  %v5581_v52 = vpack.c.bf16 %v803_v40, %v799_v39  ;;  %v5591_v63 = vpack.c.bf16 %v802_v53, %v798_v49  ;;  %v806_v5 = vld [vmem:[#allocation8 + $0x180] sm:$0xff]  ;;  %v198_v9 = vld [vmem:[#allocation7 + $0x1d8] sm:$0xff]  ;;  %v3722_v18 = vpack.c.bf16 %v193_v4, %v189_v3 }
  0xad   :  { %3803 = vmatpush1.bf16.msra.mxu0 %v5549_v15  ;;  %3709 = vmatprep.subr.bf16.mxu1 %v3708_v16  ;;  %v5585_v57 = vld [vmem:[#allocation5 + $0x20] sm:$0xff]  ;;  %v810_v8 = vld [vmem:[#allocation8 + $0x1a0] sm:$0xff]  ;;  %v202_v11 = vld [vmem:[#allocation7 + $0x1f8] sm:$0xff] }
  0xae   :  { %621 = vmatmul.mubr.f32.gmra.mrb[4].mxu0 %v5557_v24  ;;  %3805 = vmatprep.subr.bf16.mxu0 %v5553_v20  ;;  %v807_v58 = vld [vmem:[#allocation8 + $0x188] sm:$0xff]  ;;  %v5599_v12 = vld [vmem:[#allocation5 + $0x28] sm:$0xff]  ;;  %v5602_v17 = vld [vmem:[#allocation2 + $0x30] sm:$0xff]  ;;  %v5605_v19 = vpack.c.bf16 %v810_v8, %v806_v5  ;;  %v3724_v21 = vpack.c.bf16 %v202_v11, %v198_v9 }
  0xaf   :  { %308 = vmatmul.mubr.f32.gmra.mrb[6].mxu1 %v5560_v27  ;;  %626 = vmatprep.mubr.f32.mxu0 %v6494_v0  ;;  %v811_v59 = vld [vmem:[#allocation8 + $0x1a8] sm:$0xff]  ;;  %v197_v22 = vld [vmem:[#allocation7 + $0x1d0] sm:$0xff]  ;;  %v814_v25 = vld [vmem:[#allocation8 + $0x1c0] sm:$0xff] }
  0xb0   :  { %3711 = vmatpush1.bf16.msra.mxu1 %v3710_v28  ;;  %313 = vmatprep.mubr.f32.mxu1 %v6494_v0  ;;  %v5595_v7 = vpack.c.bf16 %v811_v59, %v807_v58  ;;  %v815_v14 = vld [vmem:[#allocation8 + $0x1c8] sm:$0xff]  ;;  %v201_v23 = vld [vmem:[#allocation7 + $0x1f0] sm:$0xff]  ;;  %v818_v28 = vld [vmem:[#allocation8 + $0x1e0] sm:$0xff] }
  0xb1   :  { %3807 = vmatpush1.bf16.msra.mxu0 %v5563_v29  ;;  %3713 = vmatprep.subr.bf16.mxu1 %v3712_v30  ;;  %v819_v16 = vld [vmem:[#allocation8 + $0x1e8] sm:$0xff]  ;;  %v461_v30 = vld [vmem:[#allocation10 + $0x18] sm:$0xff]  ;;  %v5616_v33 = vld [vmem:[#allocation2 + $0x38] sm:$0xff]  ;;  %v3726_v35 = vpack.c.bf16 %v201_v23, %v197_v22  ;;  %v5619_v36 = vpack.c.bf16 %v818_v28, %v814_v25 }
  0xb2   :  { %627 = vmatmul.mubr.f32.gmra.mrb[6].mxu0 %v5571_v38  ;;  %3809 = vmatprep.subr.bf16.mxu0 %v5567_v34  ;;  %v5609_v26 = vpack.c.bf16 %v819_v16, %v815_v14  ;;  %v465_v31 = vld [vmem:[#allocation10 + $0x38] sm:$0xff]  ;;  %v460_v39 = vld [vmem:[#allocation10 + $0x10] sm:$0xff] }
  0xb3   :  { %314 = vmatmul.mubr.f32.gmra.mrb[8].mxu1 %v5574_v42  ;;  %632 = vmatprep.mubr.f32.mxu0 %v6494_v0  ;;  %v5613_v32 = vld [vmem:[#allocation5 + $0x30] sm:$0xff]  ;;  %v3760_v37 = vpack.c.bf16 %v465_v31, %v461_v30  ;;  %v464_v40 = vld [vmem:[#allocation10 + $0x30] sm:$0xff] }
  0xb4   :  { %3715 = vmatpush1.bf16.msra.mxu1 %v3714_v43  ;;  %319 = vmatprep.mubr.f32.mxu1 %v6494_v0  ;;  %v469_v43 = vld [vmem:[#allocation10 + $0x58] sm:$0xff]  ;;  %v3762_v46 = vpack.c.bf16 %v464_v40, %v460_v39  ;;  %v468_v49 = vld [vmem:[#allocation10 + $0x50] sm:$0xff] }
  0xb5   :  { %3811 = vmatpush1.bf16.msra.mxu0 %v5577_v44  ;;  %3717 = vmatprep.subr.bf16.mxu1 %v3716_v45  ;;  %v473_v45 = vld [vmem:[#allocation10 + $0x78] sm:$0xff]  ;;  %v472_v53 = vld [vmem:[#allocation10 + $0x70] sm:$0xff] }
  0xb6   :  { %633 = vmatmul.mubr.f32.gmra.mrb[8].mxu0 %v5585_v57  ;;  %3813 = vmatprep.subr.bf16.mxu0 %v5581_v52  ;;  %v3764_v47 = vpack.c.bf16 %v473_v45, %v469_v43  ;;  %v477_v54 = vld [vmem:[#allocation10 + $0x98] sm:$0xff]  ;;  %v3766_v58 = vpack.c.bf16 %v472_v53, %v468_v49  ;;  %v484_v8 = vld [vmem:[#allocation10 + $0xd0] sm:$0xff] }
  0xb7   :  { %320 = vmatmul.mubr.f32.gmra.mrb[10].mxu1 %v5588_v60  ;;  %638 = vmatprep.mubr.f32.mxu0 %v6494_v0  ;;  %v481_v55 = vld [vmem:[#allocation10 + $0xb8] sm:$0xff]  ;;  %v488_v9 = vld [vmem:[#allocation10 + $0xf0] sm:$0xff] }
  0xb8   :  { %3719 = vmatpush1.bf16.msra.mxu1 %v3718_v61  ;;  %325 = vmatprep.mubr.f32.mxu1 %v6494_v0  ;;  %v3768_v59 = vpack.c.bf16 %v481_v55, %v477_v54  ;;  %v476_v61 = vld [vmem:[#allocation10 + $0x90] sm:$0xff]  ;;  %v485_v3 = vld [vmem:[#allocation10 + $0xd8] sm:$0xff] }
  0xb9   :  { %3815 = vmatpush1.bf16.msra.mxu0 %v5591_v63  ;;  %3721 = vmatprep.subr.bf16.mxu1 %v3720_v2  ;;  %v480_v2 = vld [vmem:[#allocation10 + $0xb0] sm:$0xff]  ;;  %v489_v4 = vld [vmem:[#allocation10 + $0xf8] sm:$0xff] }
  0xba   :  { %639 = vmatmul.mubr.f32.gmra.mrb[10].mxu0 %v5599_v12  ;;  %3817 = vmatprep.subr.bf16.mxu0 %v5595_v7  ;;  %v3772_v5 = vpack.c.bf16 %v489_v4, %v485_v3  ;;  %v493_v11 = vld [vmem:[#allocation10 + $0x118] sm:$0xff]  ;;  %v500_v28 = vld [vmem:[#allocation10 + $0x150] sm:$0xff] }
  0xbb   :  { %326 = vmatmul.mubr.f32.gmra.mrb[12].mxu1 %v5602_v17  ;;  %644 = vmatprep.mubr.f32.mxu0 %v6494_v0  ;;  %v497_v14 = vld [vmem:[#allocation10 + $0x138] sm:$0xff]  ;;  %v504_v30 = vld [vmem:[#allocation10 + $0x170] sm:$0xff] }
  0xbc   :  { %3723 = vmatpush1.bf16.msra.mxu1 %v3722_v18  ;;  %331 = vmatprep.mubr.f32.mxu1 %v6494_v0  ;;  %v3776_v16 = vpack.c.bf16 %v497_v14, %v493_v11  ;;  %v492_v18 = vld [vmem:[#allocation10 + $0x110] sm:$0xff]  ;;  %v501_v22 = vld [vmem:[#allocation10 + $0x158] sm:$0xff] }
  0xbd   :  { %3819 = vmatpush1.bf16.msra.mxu0 %v5605_v19  ;;  %3725 = vmatprep.subr.bf16.mxu1 %v3724_v21  ;;  %v496_v21 = vld [vmem:[#allocation10 + $0x130] sm:$0xff]  ;;  %v505_v23 = vld [vmem:[#allocation10 + $0x178] sm:$0xff] }
  0xbe   :  { %645 = vmatmul.mubr.f32.gmra.mrb[12].mxu0 %v5613_v32  ;;  %3821 = vmatprep.subr.bf16.mxu0 %v5609_v26  ;;  %v3780_v25 = vpack.c.bf16 %v505_v23, %v501_v22  ;;  %v509_v31 = vld [vmem:[#allocation10 + $0x198] sm:$0xff]  ;;  %v508_v39 = vld [vmem:[#allocation10 + $0x190] sm:$0xff] }
  0xbf   :  { %332 = vmatmul.mubr.f32.gmra.mrb[14].mxu1 %v5616_v33  ;;  %886 = vmatprep.mubr.f32.mxu0 %v6494_v0  ;;  %v512_v40 = vld [vmem:[#allocation10 + $0x1b0] sm:$0xff]  ;;  %v517_v43 = vld [vmem:[#allocation10 + $0x1d8] sm:$0xff] }
  0xc0   :  { %3727 = vmatpush1.bf16.msra.mxu1 %v3726_v35  ;;  %402 = vmatprep.mubr.f32.mxu1 %v6494_v0  ;;  %v513_v35 = vld [vmem:[#allocation10 + $0x1b8] sm:$0xff]  ;;  %v520_v49 = vld [vmem:[#allocation10 + $0x1f0] sm:$0xff] }
  0xc1   :  { %3823 = vmatpush1.bf16.msra.mxu0 %v5619_v36  ;;  %3761 = vmatprep.subr.bf16.mxu1 %v3760_v37  ;;  %v3784_v37 = vpack.c.bf16 %v513_v35, %v509_v31  ;;  %v521_v45 = vld [vmem:[#allocation10 + $0x1f8] sm:$0xff]  ;;  %v768_v4 = vld [vmem:[#allocation8 + $0x50] sm:$0xff] }
  0xc2   :  { %3857 = vmatprep.subr.bf16.mxu0 %v5519_v41  ;;  %v761_v53 = vld [vmem:[#allocation8 + $0x18] sm:$0xff]  ;;  %v776_v11 = vld [vmem:[#allocation8 + $0x90] sm:$0xff] }
  0xc3   :  { %403 = vmatmul.mubr.f32.vlgmr.msra.gmra.mrb[16].mxu1 %v5521_v48  ;;  %v3770_v48 = vpack.c.bf16 %v480_v2, %v476_v61  ;;  %v765_v54 = vld [vmem:[#allocation8 + $0x38] sm:$0xff]  ;;  %v780_v14 = vld [vmem:[#allocation8 + $0xb0] sm:$0xff] }
  0xc4   :  { %887 = vmatmul.mubr.f32.vlgmr.msra.gmra.mrb[14].mxu0 %v6494_v0  ;;  %3763 = vmatpush1.bf16.msra.mxu1 %v3762_v46  ;;  %v3788_v46 = vpack.c.bf16 %v521_v45, %v517_v43  ;;  %v5656_v55 = vpack.c.bf16 %v765_v54, %v761_v53  ;;  %v769_v61 = vld [vmem:[#allocation8 + $0x58] sm:$0xff]  ;;  %v788_v22 = vld [vmem:[#allocation8 + $0xf0] sm:$0xff] }
  0xc5   :  { %408 = vmatprep.mubr.f32.mxu1 %v6494_v0  ;;  %3765 = vmatprep.subr.bf16.mxu1 %v3764_v47  ;;  %v516_v47 = vld [vmem:[#allocation10 + $0x1d0] sm:$0xff]  ;;  %v773_v2 = vld [vmem:[#allocation8 + $0x78] sm:$0xff] }
  0xc6   :  { %3859 = vmatpush1.bf16.msra.mxu0 %v5525_v51  ;;  %1056 = vmatprep.mubr.f32.mxu0 %v6494_v0  ;;  %v5665_v3 = vpack.c.bf16 %v773_v2, %v769_v61  ;;  %v793_v23 = vld [vmem:[#allocation8 + $0x118] sm:$0xff]  ;;  %v816_v54 = vld [vmem:[#allocation8 + $0x1d0] sm:$0xff]  ;;  %v203_v61 = vld [vmem:[%s6487_s4] sm:$0xf] }
  0xc7   :  { %409 = vmatmul.mubr.f32.gmra.mrb[18].mxu1 %v5532_v62  ;;  %3861 = vmatprep.subr.bf16.mxu0 %v5528_v56  ;;  %v3774_v62 = vpack.c.bf16 %v488_v9, %v484_v8  ;;  %v781_v8 = vld [vmem:[#allocation8 + $0xb8] sm:$0xff] }
  0xc8   :  { %3767 = vmatpush1.bf16.msra.mxu1 %v3766_v58  ;;  %414 = vmatprep.mubr.f32.mxu1 %v6494_v0  ;;  %v760_v58 = vld [vmem:[#allocation8 + $0x10] sm:$0xff]  ;;  %v801_v31 = vld [vmem:[#allocation8 + $0x158] sm:$0xff] }
  0xc9   :  { %3769 = vmatprep.subr.bf16.mxu1 %v3768_v59  ;;  %v764_v59 = vld [vmem:[#allocation8 + $0x30] sm:$0xff]  ;;  %v805_v35 = vld [vmem:[#allocation8 + $0x178] sm:$0xff] }
  0xca   :  { %3863 = vmatpush1.bf16.msra.mxu0 %v5536_v1  ;;  %v813_v43 = vld [vmem:[#allocation8 + $0x1b8] sm:$0xff] }
  0xcb   :  { %415 = vmatmul.mubr.f32.gmra.mrb[20].mxu1 %v5546_v13  ;;  %3865 = vmatprep.subr.bf16.mxu0 %v5539_v6  ;;  %v3778_v13 = vpack.c.bf16 %v496_v21, %v492_v18  ;;  %v784_v21 = vld [vmem:[#allocation8 + $0xd0] sm:$0xff] }
  0xcc   :  { %3771 = vmatpush1.bf16.msra.mxu1 %v3770_v48  ;;  %420 = vmatprep.mubr.f32.mxu1 %v6494_v0  ;;  %v772_v48 = vld [vmem:[#allocation8 + $0x70] sm:$0xff] }
  0xcd   :  { %3773 = vmatprep.subr.bf16.mxu1 %v3772_v5  ;;  %v777_v5 = vld [vmem:[#allocation8 + $0x98] sm:$0xff] }
  0xce   :  { %3867 = vmatpush1.bf16.msra.mxu0 %v5549_v15  ;;  %v5675_v9 = vpack.c.bf16 %v781_v8, %v777_v5 }
  0xcf   :  { %421 = vmatmul.mubr.f32.gmra.mrb[22].mxu1 %v5560_v27  ;;  %3869 = vmatprep.subr.bf16.mxu0 %v5553_v20  ;;  %v3782_v27 = vpack.c.bf16 %v504_v30, %v500_v28  ;;  %v792_v28 = vld [vmem:[#allocation8 + $0x110] sm:$0xff] }
  0xd0   :  { %3775 = vmatpush1.bf16.msra.mxu1 %v3774_v62  ;;  %426 = vmatprep.mubr.f32.mxu1 %v6494_v0  ;;  %v785_v62 = vld [vmem:[#allocation8 + $0xd8] sm:$0xff]  ;;  %v796_v30 = vld [vmem:[#allocation8 + $0x130] sm:$0xff] }
  0xd1   :  { %3777 = vmatprep.subr.bf16.mxu1 %v3776_v16  ;;  %v789_v16 = vld [vmem:[#allocation8 + $0xf8] sm:$0xff] }
  0xd2   :  { %3871 = vmatpush1.bf16.msra.mxu0 %v5563_v29  ;;  %v5683_v18 = vpack.c.bf16 %v789_v16, %v785_v62 }
  0xd3   :  { %427 = vmatmul.mubr.f32.gmra.mrb[24].mxu1 %v5574_v42  ;;  %3873 = vmatprep.subr.bf16.mxu0 %v5567_v34  ;;  %v3786_v42 = vpack.c.bf16 %v512_v40, %v508_v39  ;;  %v804_v39 = vld [vmem:[#allocation8 + $0x170] sm:$0xff]  ;;  %v809_v40 = vld [vmem:[#allocation8 + $0x198] sm:$0xff] }
  0xd4   :  { %3779 = vmatpush1.bf16.msra.mxu1 %v3778_v13  ;;  %432 = vmatprep.mubr.f32.mxu1 %v6494_v0  ;;  %v797_v13 = vld [vmem:[#allocation8 + $0x138] sm:$0xff] }
  0xd5   :  { %3781 = vmatprep.subr.bf16.mxu1 %v3780_v25  ;;  %v5687_v25 = vpack.c.bf16 %v788_v22, %v784_v21 }
  0xd6   :  { %3875 = vmatpush1.bf16.msra.mxu0 %v5577_v44 }
  0xd7   :  { %433 = vmatmul.mubr.f32.gmra.mrb[26].mxu1 %v5588_v60  ;;  %3877 = vmatprep.subr.bf16.mxu0 %v5581_v52  ;;  %v3790_v60 = vpack.c.bf16 %v520_v49, %v516_v47  ;;  %v817_v47 = vld [vmem:[#allocation8 + $0x1d8] sm:$0xff] }
  0xd8   :  { %3783 = vmatpush1.bf16.msra.mxu1 %v3782_v27  ;;  %438 = vmatprep.mubr.f32.mxu1 %v6494_v0  ;;  %v5695_v27 = vpack.c.bf16 %v796_v30, %v792_v28  ;;  %v821_v49 = vld [vmem:[#allocation8 + $0x1f8] sm:$0xff] }
  0xd9   :  { %3785 = vmatprep.subr.bf16.mxu1 %v3784_v37  ;;  %v800_v37 = vld [vmem:[#allocation8 + $0x150] sm:$0xff] }
  0xda   :  { %3879 = vmatpush1.bf16.msra.mxu0 %v5591_v63  ;;  %v5703_v45 = vpack.c.bf16 %v804_v39, %v800_v37 }
  0xdb   :  { %439 = vmatmul.mubr.f32.gmra.mrb[28].mxu1 %v5602_v17  ;;  %3881 = vmatprep.subr.bf16.mxu0 %v5595_v7  ;;  %v5662_v17 = vpack.c.bf16 %v764_v59, %v760_v58 }
  0xdc   :  { %3787 = vmatpush1.bf16.msra.mxu1 %v3786_v42  ;;  %444 = vmatprep.mubr.f32.mxu1 %v6494_v0  ;;  %v808_v42 = vld [vmem:[#allocation8 + $0x190] sm:$0xff] }
  0xdd   :  { %3789 = vmatprep.subr.bf16.mxu1 %v3788_v46  ;;  %v812_v46 = vld [vmem:[#allocation8 + $0x1b0] sm:$0xff] }
  0xde   :  { %3883 = vmatpush1.bf16.msra.mxu0 %v5605_v19  ;;  %v5711_v53 = vpack.c.bf16 %v812_v46, %v808_v42 }
  0xdf   :  { %445 = vmatmul.mubr.f32.gmra.mrb[30].mxu1 %v5616_v33  ;;  %3885 = vmatprep.subr.bf16.mxu0 %v5609_v26  ;;  %v5671_v33 = vpack.c.bf16 %v772_v48, %v768_v4 }
  0xe0   :  { %3791 = vmatpush1.bf16.msra.mxu1 %v3790_v60  ;;  %715 = vmatprep.mubr.f32.mxu1 %v6494_v0  ;;  %v820_v60 = vld [vmem:[#allocation8 + $0x1f0] sm:$0xff] }
  0xe1   :  { %3825 = vmatprep.subr.bf16.mxu1 %v5656_v55  ;;  %v5719_v58 = vpack.c.bf16 %v820_v60, %v816_v54 }
  0xe2   :  { %3887 = vmatpush1.bf16.msra.mxu0 %v5619_v36 }
  0xe3   :  { %716 = vmatmul.mubr.f32.vlgmr.msra.gmra.mrb[32].mxu1 %v5523_v50  ;;  %3921 = vmatprep.subr.bf16.mxu0 %v5519_v41  ;;  %v5679_v50 = vpack.c.bf16 %v780_v14, %v776_v11 }
  0xe4   :  { %3827 = vmatpush1.bf16.msra.mxu1 %v5662_v17  ;;  %721 = vmatprep.mubr.f32.mxu1 %v6494_v0 }
  0xe5   :  { %3829 = vmatprep.subr.bf16.mxu1 %v5665_v3 }
  0xe7   :  { %722 = vmatmul.mubr.f32.gmra.mrb[34].mxu1 %v5543_v10  ;;  %v5691_v10 = vpack.c.bf16 %v797_v13, %v793_v23 }
  0xe8   :  { %3831 = vmatpush1.bf16.msra.mxu1 %v5671_v33  ;;  %727 = vmatprep.mubr.f32.mxu1 %v6494_v0 }
  0xe9   :  { %3833 = vmatprep.subr.bf16.mxu1 %v5675_v9 }
  0xeb   :  { %728 = vmatmul.mubr.f32.gmra.mrb[36].mxu1 %v5557_v24  ;;  %v5699_v24 = vpack.c.bf16 %v805_v35, %v801_v31 }
  0xec   :  { %3835 = vmatpush1.bf16.msra.mxu1 %v5679_v50  ;;  %733 = vmatprep.mubr.f32.mxu1 %v6494_v0 }
  0xed   :  { %3837 = vmatprep.subr.bf16.mxu1 %v5683_v18 }
  0xef   :  { %734 = vmatmul.mubr.f32.gmra.mrb[38].mxu1 %v5571_v38  ;;  %v5707_v38 = vpack.c.bf16 %v813_v43, %v809_v40 }
  0xf0   :  { %3839 = vmatpush1.bf16.msra.mxu1 %v5687_v25  ;;  %739 = vmatprep.mubr.f32.mxu1 %v6494_v0 }
  0xf1   :  { %3841 = vmatprep.subr.bf16.mxu1 %v5691_v10 }
  0xf3   :  { %740 = vmatmul.mubr.f32.gmra.mrb[40].mxu1 %v5585_v57  ;;  %v5715_v57 = vpack.c.bf16 %v821_v49, %v817_v47 }
  0xf4   :  { %3843 = vmatpush1.bf16.msra.mxu1 %v5695_v27  ;;  %745 = vmatprep.mubr.f32.mxu1 %v6494_v0 }
  0xf5   :  { %3845 = vmatprep.subr.bf16.mxu1 %v5699_v24 }
  0xf7   :  { %746 = vmatmul.mubr.f32.gmra.mrb[42].mxu1 %v5599_v12  ;;  %v205_v12 = vlaneseq }
  0xf8   :  { %3847 = vmatpush1.bf16.msra.mxu1 %v5703_v45  ;;  %751 = vmatprep.mubr.f32.mxu1 %v6494_v0 }
  0xf9   :  { %3849 = vmatprep.subr.bf16.mxu1 %v5707_v38 }
  0xfb   :  { %752 = vmatmul.mubr.f32.gmra.mrb[44].mxu1 %v5613_v32  ;;  %v5743_v32 = vshrl.u32 %v205_v12, 7 }
  0xfc   :  { %3851 = vmatpush1.bf16.msra.mxu1 %v5711_v53  ;;  %957 = vmatprep.mubr.f32.mxu1 %v6494_v0 }
  0xfd   :  { %3853 = vmatprep.subr.bf16.mxu1 %v5715_v57  ;;  %v5746_v59 = vsub.s32 0, %v5743_v32  ;;  %v5752_v4 = vsub.s32 1, %v5743_v32 }
  0xff   :  { %6502 = vst [vmem:[#allocation20_spill] sm:$0xff] %v5746_v59  ;;  %6503 = vst [vmem:[#allocation21_spill] sm:$0xff] %v5752_v4  ;;  %v208_v5 = vrot.slane %v203_v61, %v5746_v59  ;;  %v212_v8 = vrot.slane %v203_v61, %v5752_v4 }
 0x100   :  { %3855 = vmatpush1.bf16.msra.mxu1 %v5719_v58 }
 0x101   :  { %3889 = vmatprep.subr.bf16.mxu1 %v5656_v55 }
 0x103   :  { %958 = vmatmul.mubr.f32.vlgmr.msra.gmra.mrb[16].mxu1 %v6494_v0 }
 0x104   :  { %3891 = vmatpush1.bf16.msra.mxu1 %v5662_v17  ;;  %1127 = vmatprep.mubr.f32.mxu1 %v6494_v0 }
 0x105   :  { %3893 = vmatprep.subr.bf16.mxu1 %v5665_v3 }
 0x108   :  { %3895 = vmatpush1.bf16.msra.mxu1 %v5671_v33 }
 0x109   :  { %3897 = vmatprep.subr.bf16.mxu1 %v5675_v9 }
 0x10c   :  { %3899 = vmatpush1.bf16.msra.mxu1 %v5679_v50 }
 0x10d   :  { %3901 = vmatprep.subr.bf16.mxu1 %v5683_v18 }
 0x110   :  { %3903 = vmatpush1.bf16.msra.mxu1 %v5687_v25 }
 0x111   :  { %3905 = vmatprep.subr.bf16.mxu1 %v5691_v10 }
 0x114   :  { %3907 = vmatpush1.bf16.msra.mxu1 %v5695_v27 }
 0x115   :  { %3909 = vmatprep.subr.bf16.mxu1 %v5699_v24 }
 0x118   :  { %3911 = vmatpush1.bf16.msra.mxu1 %v5703_v45 }
 0x119   :  { %3913 = vmatprep.subr.bf16.mxu1 %v5707_v38 }
 0x11c   :  { %3915 = vmatpush1.bf16.msra.mxu1 %v5711_v53 }
 0x11d   :  { %3917 = vmatprep.subr.bf16.mxu1 %v5715_v57 }
 0x120   :  { %3919 = vmatpush1.bf16.msra.mxu1 %v5719_v58 }
 0x121   :  { %3953 = vmatprep.subr.bf16.mxu1 %v5656_v55 }
 0x176   :  { %v291_v2 = vpop.f32.mrb[0].mxu1 }
 0x177   :  { %v293_v48 = vpop.f32.mrb[1].mxu1 }
 0x17a   :  { %v297_v11 = vpop.f32.mrb[2].mxu1 }
 0x17b   :  { %v5756_v14 = vadd.f32 %v297_v11, %v208_v5  ;;  %v299_v62 = vpop.f32.mrb[3].mxu1 }
 0x17c   :  { %v5758_v16 = vadd.f32 %v299_v62, %v212_v8 }
 0x17e   :  { %v303_v21 = vpop.f32.mrb[4].mxu1 }
 0x17f   :  { %v5760_v22 = vadd.f32 %v303_v21, %v208_v5  ;;  %v305_v23 = vpop.f32.mrb[5].mxu1 }
 0x180   :  { %v5762_v13 = vadd.f32 %v305_v23, %v212_v8 }
 0x182   :  { %v309_v28 = vpop.f32.mrb[6].mxu1 }
 0x183   :  { %v5764_v30 = vadd.f32 %v309_v28, %v208_v5  ;;  %v311_v31 = vpop.f32.mrb[7].mxu1 }
 0x184   :  { %v5766_v35 = vadd.f32 %v311_v31, %v212_v8  ;;  %v292_v31 = vadd.f32 %v291_v2, %v208_v5 }
 0x186   :  { %v315_v37 = vpop.f32.mrb[8].mxu1 }
 0x187   :  { %v5768_v39 = vadd.f32 %v315_v37, %v208_v5  ;;  %v317_v40 = vpop.f32.mrb[9].mxu1  ;;  %v294_v37 = vadd.f32 %v293_v48, %v212_v8 }
 0x188   :  { %v5770_v43 = vadd.f32 %v317_v40, %v212_v8 }
 0x18a   :  { %v321_v42 = vpop.f32.mrb[10].mxu1 }
 0x18b   :  { %v5772_v46 = vadd.f32 %v321_v42, %v208_v5  ;;  %v323_v47 = vpop.f32.mrb[11].mxu1 }
 0x18c   :  { %v5774_v49 = vadd.f32 %v323_v47, %v212_v8 }
 0x18e   :  { %v327_v54 = vpop.f32.mrb[12].mxu1 }
 0x18f   :  { %v5776_v60 = vadd.f32 %v327_v54, %v208_v5  ;;  %v329_v12 = vpop.f32.mrb[13].mxu1  ;;  %v6500_v54 = vsub.s32 2, %v5743_v32 }
 0x190   :  { %v5778_v11 = vadd.f32 %v329_v12, %v212_v8 }
 0x192   :  { %6504 = vst [vmem:[#allocation22_spill] sm:$0xff] %v5778_v11  ;;  %v333_v62 = vpop.f32.mrb[14].mxu1  ;;  %v6501_v11 = vsub.s32 3, %v5743_v32 }
 0x193   :  { %v5780_v21 = vadd.f32 %v333_v62, %v208_v5  ;;  %v335_v23 = vpop.f32.mrb[15].mxu1 }
 0x194   :  { %v5782_v28 = vadd.f32 %v335_v23, %v212_v8  ;;  %v5788_v23 = vrot.slane %v203_v61, %v6500_v54  ;;  %v5792_v48 = vrot.slane %v203_v61, %v6501_v11 }
 0x195   :  { %6505 = vst [vmem:[#allocation23_spill] sm:$0xff] %v5780_v21 }
 0x197   :  { %v888_v40 = vpop.f32.mrb[14].mxu0 }
 0x198   :  { %v964_v42 = vadd.f32 %v888_v40, %v292_v31  ;;  %v890_v0 = vpop.f32.mrb[15].mxu0 }
 0x199   :  { %v965_v4 = vadd.f32 %v890_v0, %v294_v37 }
 0x19a   :  { %v3619_v59 = vmul.f32 -1.442695, %v964_v42 }
 0x19b   :  { %v3620_v47 = vmul.f32 -1.442695, %v965_v4 }
 0x19d   :  { %4919 = vpow2.f32 %v3620_v47 }
 0x19e   :  { %4921 = vpow2.f32 %v3619_v59 }
 0x1a7   :  { %v4920_v12 = vpop.eup %4919 }
 0x1a8   :  { %v4922_v62 = vpop.eup %4921  ;;  %v977_v21 = vadd.f32 1.0, %v4920_v12 }
 0x1a9   :  { %v971_v2 = vadd.f32 1.0, %v4922_v62 }
 0x1aa   :  { %4923 = vrcp.f32 %v977_v21 }
 0x1ab   :  { %4925 = vrcp.f32 %v971_v2 }
 0x1b4   :  { %v4924_v31 = vpop.eup %4923 }
 0x1b5   :  { %v4926_v37 = vpop.eup %4925  ;;  %v987_v42 = vmul.f32 0.0, %v4924_v31 }
 0x1d6   :  { %v959_v0 = vpop.f32.mrb[16].mxu1 }
 0x1d7   :  { %v4816_v59 = vadd.f32 %v959_v0, %v5788_v23  ;;  %v961_v4 = vpop.f32.mrb[17].mxu1 }
 0x1d8   :  { %v4817_v5 = vadd.f32 %v961_v4, %v5792_v48 }
 0x1d9   :  { %4927 = vtanh.f32 %v4816_v59  ;;  %v6506_v59 = vmov 0.0  }
 0x1da   :  { %v3621_v8 = vmul.f32 -1.442695, %v4817_v5 }
 0x1dc   :  { %4929 = vpow2.f32 %v3621_v8 }
 0x1e3   :  { %v4928_v40 = vpop.eup %4927 }
 0x1e4   :  { %v988_v47 = vmul.f32 %v4928_v40, %v4926_v37 }
 0x1e6   :  { %v4930_v12 = vpop.eup %4929  ;;  %v5796_v62 = vadd.f32 %v988_v47, %v987_v42 }
 0x1e7   :  { %v984_v61 = vadd.f32 1.0, %v4930_v12 }
 0x1e8   :  { %4931 = vtanh.f32 %v5796_v62 }
 0x1e9   :  { %4933 = vrcp.f32 %v984_v61 }
 0x1f2   :  { %v4932_v21 = vpop.eup %4931 }
 0x1f3   :  { %v4934_v0 = vpop.eup %4933 }
 0x1f4   :  { %v991_v2 = vmul.f32 %v4934_v0, %v4932_v21 }
 0x1f6   :  { %1057 = vmatmul.mubr.f32.vlgmr.msra.gmra.mrb[16].mxu0 %v991_v2  ;;  %1128 = vmatmul.mubr.f32.vlgmr.msra.gmra.mrb[18].mxu1 %v991_v2 }
 0x1f7   :  { %3923 = vmatpush1.bf16.msra.mxu0 %v5525_v51  ;;  %3955 = vmatpush1.bf16.msra.mxu1 %v5662_v17 }
 0x1f8   :  { %3925 = vmatprep.subr.bf16.mxu0 %v5528_v56  ;;  %3957 = vmatprep.subr.bf16.mxu1 %v5665_v3 }
 0x1f9   :  { %1226 = vmatprep.mubr.f32.mxu0 %v6506_v59  ;;  %1297 = vmatprep.mubr.f32.mxu1 %v6506_v59 }
 0x1fb   :  { %3927 = vmatpush1.bf16.msra.mxu0 %v5536_v1  ;;  %3959 = vmatpush1.bf16.msra.mxu1 %v5671_v33 }
 0x1fc   :  { %3929 = vmatprep.subr.bf16.mxu0 %v5539_v6  ;;  %3961 = vmatprep.subr.bf16.mxu1 %v5675_v9 }
 0x1ff   :  { %3931 = vmatpush1.bf16.msra.mxu0 %v5549_v15  ;;  %3963 = vmatpush1.bf16.msra.mxu1 %v5679_v50 }
 0x200   :  { %3933 = vmatprep.subr.bf16.mxu0 %v5553_v20  ;;  %3965 = vmatprep.subr.bf16.mxu1 %v5683_v18 }
 0x203   :  { %3935 = vmatpush1.bf16.msra.mxu0 %v5563_v29  ;;  %3967 = vmatpush1.bf16.msra.mxu1 %v5687_v25 }
 0x204   :  { %3937 = vmatprep.subr.bf16.mxu0 %v5567_v34  ;;  %3969 = vmatprep.subr.bf16.mxu1 %v5691_v10 }
 0x207   :  { %3939 = vmatpush1.bf16.msra.mxu0 %v5577_v44  ;;  %3971 = vmatpush1.bf16.msra.mxu1 %v5695_v27 }
 0x208   :  { %3941 = vmatprep.subr.bf16.mxu0 %v5581_v52  ;;  %3973 = vmatprep.subr.bf16.mxu1 %v5699_v24 }
 0x20b   :  { %3943 = vmatpush1.bf16.msra.mxu0 %v5591_v63  ;;  %3975 = vmatpush1.bf16.msra.mxu1 %v5703_v45 }
 0x20c   :  { %3945 = vmatprep.subr.bf16.mxu0 %v5595_v7  ;;  %3977 = vmatprep.subr.bf16.mxu1 %v5707_v38 }
 0x20f   :  { %3947 = vmatpush1.bf16.msra.mxu0 %v5605_v19  ;;  %3979 = vmatpush1.bf16.msra.mxu1 %v5711_v53 }
 0x210   :  { %3949 = vmatprep.subr.bf16.mxu0 %v5609_v26  ;;  %3981 = vmatprep.subr.bf16.mxu1 %v5715_v57 }
 0x213   :  { %3951 = vmatpush1.bf16.msra.mxu0 %v5619_v36  ;;  %3983 = vmatpush1.bf16.msra.mxu1 %v5719_v58 }
 0x214   :  { %3985 = vmatprep.subr.bf16.mxu0 %v5519_v41  ;;  %4017 = vmatprep.subr.bf16.mxu1 %v5656_v55 }
 0x2c9   :  { %v1058_v4 = vpop.f32.mrb[16].mxu0  ;;  %v1129_v5 = vpop.f32.mrb[18].mxu1 }
 0x2ca   :  { %v1134_v8 = vadd.f32 %v1058_v4, %v5756_v14  ;;  %v1060_v31 = vpop.f32.mrb[17].mxu0  ;;  %v1131_v37 = vpop.f32.mrb[19].mxu1  ;;  %v4818_v21 = vadd.f32 %v1129_v5, %v5788_v23 }
 0x2cb   :  { %v1135_v40 = vadd.f32 %v1060_v31, %v5758_v16  ;;  %v4819_v12 = vadd.f32 %v1131_v37, %v5792_v48 }
 0x2cc   :  { %v3622_v42 = vmul.f32 -1.442695, %v1134_v8 }
 0x2cd   :  { %v3623_v47 = vmul.f32 -1.442695, %v1135_v40  ;;  %v3624_v61 = vmul.f32 -1.442695, %v4819_v12 }
 0x2ce   :  { %4935 = vpow2.f32 %v3622_v42 }
 0x2cf   :  { %4937 = vpow2.f32 %v3623_v47 }
 0x2d0   :  { %4939 = vpow2.f32 %v3624_v61 }
 0x2d1   :  { %4941 = vtanh.f32 %v4818_v21 }
 0x2d8   :  { %v4936_v0 = vpop.eup %4935 }
 0x2d9   :  { %v4938_v2 = vpop.eup %4937  ;;  %v1141_v54 = vadd.f32 1.0, %v4936_v0 }
 0x2da   :  { %v1147_v11 = vadd.f32 1.0, %v4938_v2  ;;  %v4940_v14 = vpop.eup %4939 }
 0x2db   :  { %4943 = vrcp.f32 %v1141_v54  ;;  %v4942_v4 = vpop.eup %4941  ;;  %v1154_v40 = vadd.f32 1.0, %v4940_v14 }
 0x2dc   :  { %4945 = vrcp.f32 %v1147_v11 }
 0x2dd   :  { %4947 = vrcp.f32 %v1154_v40 }
 0x2e5   :  { %v4944_v16 = vpop.eup %4943 }
 0x2e6   :  { %v4946_v8 = vpop.eup %4945  ;;  %v1158_v31 = vmul.f32 %v4944_v16, %v4942_v4 }
 0x2e7   :  { %v1157_v42 = vmul.f32 %v4946_v8, %v5796_v62  ;;  %v4948_v5 = vpop.eup %4947 }
 0x2e9   :  { %v5838_v37 = vadd.f32 %v1158_v31, %v1157_v42 }
 0x2eb   :  { %4949 = vtanh.f32 %v5838_v37 }
 0x2f5   :  { %v4950_v47 = vpop.eup %4949 }
 0x2f6   :  { %v1161_v12 = vmul.f32 %v4950_v47, %v4948_v5 }
 0x2f8   :  { %1227 = vmatmul.mubr.f32.vlgmr.msra.gmra.mrb[18].mxu0 %v1161_v12  ;;  %1298 = vmatmul.mubr.f32.vlgmr.msra.gmra.mrb[20].mxu1 %v1161_v12 }
 0x2f9   :  { %3987 = vmatpush1.bf16.msra.mxu0 %v5525_v51  ;;  %4019 = vmatpush1.bf16.msra.mxu1 %v5662_v17 }
 0x2fa   :  { %3989 = vmatprep.subr.bf16.mxu0 %v5528_v56  ;;  %4021 = vmatprep.subr.bf16.mxu1 %v5665_v3 }
 0x2fb   :  { %1396 = vmatprep.mubr.f32.mxu0 %v6506_v59  ;;  %1467 = vmatprep.mubr.f32.mxu1 %v6506_v59 }
 0x2fd   :  { %3991 = vmatpush1.bf16.msra.mxu0 %v5536_v1  ;;  %4023 = vmatpush1.bf16.msra.mxu1 %v5671_v33 }
 0x2fe   :  { %3993 = vmatprep.subr.bf16.mxu0 %v5539_v6  ;;  %4025 = vmatprep.subr.bf16.mxu1 %v5675_v9 }
 0x301   :  { %3995 = vmatpush1.bf16.msra.mxu0 %v5549_v15  ;;  %4027 = vmatpush1.bf16.msra.mxu1 %v5679_v50 }
 0x302   :  { %3997 = vmatprep.subr.bf16.mxu0 %v5553_v20  ;;  %4029 = vmatprep.subr.bf16.mxu1 %v5683_v18 }
 0x305   :  { %3999 = vmatpush1.bf16.msra.mxu0 %v5563_v29  ;;  %4031 = vmatpush1.bf16.msra.mxu1 %v5687_v25 }
 0x306   :  { %4001 = vmatprep.subr.bf16.mxu0 %v5567_v34  ;;  %4033 = vmatprep.subr.bf16.mxu1 %v5691_v10 }
 0x309   :  { %4003 = vmatpush1.bf16.msra.mxu0 %v5577_v44  ;;  %4035 = vmatpush1.bf16.msra.mxu1 %v5695_v27 }
 0x30a   :  { %4005 = vmatprep.subr.bf16.mxu0 %v5581_v52  ;;  %4037 = vmatprep.subr.bf16.mxu1 %v5699_v24 }
 0x30d   :  { %4007 = vmatpush1.bf16.msra.mxu0 %v5591_v63  ;;  %4039 = vmatpush1.bf16.msra.mxu1 %v5703_v45 }
 0x30e   :  { %4009 = vmatprep.subr.bf16.mxu0 %v5595_v7  ;;  %4041 = vmatprep.subr.bf16.mxu1 %v5707_v38 }
 0x311   :  { %4011 = vmatpush1.bf16.msra.mxu0 %v5605_v19  ;;  %4043 = vmatpush1.bf16.msra.mxu1 %v5711_v53 }
 0x312   :  { %4013 = vmatprep.subr.bf16.mxu0 %v5609_v26  ;;  %4045 = vmatprep.subr.bf16.mxu1 %v5715_v57 }
 0x315   :  { %4015 = vmatpush1.bf16.msra.mxu0 %v5619_v36  ;;  %4047 = vmatpush1.bf16.msra.mxu1 %v5719_v58 }
 0x316   :  { %4049 = vmatprep.subr.bf16.mxu0 %v5519_v41  ;;  %4081 = vmatprep.subr.bf16.mxu1 %v5656_v55 }
 0x3cb   :  { %v1228_v11 = vpop.f32.mrb[18].mxu0  ;;  %v1299_v54 = vpop.f32.mrb[20].mxu1 }
 0x3cc   :  { %v1304_v62 = vadd.f32 %v1228_v11, %v5760_v22  ;;  %v1230_v61 = vpop.f32.mrb[19].mxu0  ;;  %v1301_v21 = vpop.f32.mrb[21].mxu1  ;;  %v4820_v8 = vadd.f32 %v1299_v54, %v5788_v23 }
 0x3cd   :  { %v1305_v0 = vadd.f32 %v1230_v61, %v5762_v13  ;;  %v4821_v4 = vadd.f32 %v1301_v21, %v5792_v48 }
 0x3ce   :  { %v3625_v2 = vmul.f32 -1.442695, %v1304_v62 }
 0x3cf   :  { %v3626_v14 = vmul.f32 -1.442695, %v1305_v0  ;;  %v3627_v16 = vmul.f32 -1.442695, %v4821_v4 }
 0x3d0   :  { %4951 = vpow2.f32 %v3625_v2 }
 0x3d1   :  { %4953 = vpow2.f32 %v3626_v14 }
 0x3d2   :  { %4955 = vpow2.f32 %v3627_v16 }
 0x3d3   :  { %4957 = vtanh.f32 %v4820_v8 }
 0x3da   :  { %v4952_v31 = vpop.eup %4951 }
 0x3db   :  { %v4954_v40 = vpop.eup %4953  ;;  %v1311_v42 = vadd.f32 1.0, %v4952_v31 }
 0x3dc   :  { %v1317_v5 = vadd.f32 1.0, %v4954_v40  ;;  %v4956_v22 = vpop.eup %4955 }
 0x3dd   :  { %4959 = vrcp.f32 %v1311_v42  ;;  %v4958_v47 = vpop.eup %4957  ;;  %v1324_v62 = vadd.f32 1.0, %v4956_v22 }
 0x3de   :  { %4961 = vrcp.f32 %v1317_v5 }
 0x3df   :  { %4963 = vrcp.f32 %v1324_v62 }
 0x3e7   :  { %v4960_v13 = vpop.eup %4959 }
 0x3e8   :  { %v4962_v12 = vpop.eup %4961  ;;  %v1328_v11 = vmul.f32 %v4960_v13, %v4958_v47 }
 0x3e9   :  { %v1327_v61 = vmul.f32 %v4962_v12, %v5838_v37  ;;  %v4964_v54 = vpop.eup %4963 }
 0x3eb   :  { %v5880_v21 = vadd.f32 %v1328_v11, %v1327_v61 }
 0x3ed   :  { %4965 = vtanh.f32 %v5880_v21 }
 0x3f7   :  { %v4966_v0 = vpop.eup %4965 }
 0x3f8   :  { %v1331_v2 = vmul.f32 %v4966_v0, %v4964_v54 }
 0x3fa   :  { %1397 = vmatmul.mubr.f32.vlgmr.msra.gmra.mrb[20].mxu0 %v1331_v2  ;;  %1468 = vmatmul.mubr.f32.vlgmr.msra.gmra.mrb[22].mxu1 %v1331_v2 }
 0x3fb   :  { %4051 = vmatpush1.bf16.msra.mxu0 %v5525_v51  ;;  %4083 = vmatpush1.bf16.msra.mxu1 %v5662_v17 }
 0x3fc   :  { %4053 = vmatprep.subr.bf16.mxu0 %v5528_v56  ;;  %4085 = vmatprep.subr.bf16.mxu1 %v5665_v3 }
 0x3fd   :  { %1566 = vmatprep.mubr.f32.mxu0 %v6506_v59  ;;  %1637 = vmatprep.mubr.f32.mxu1 %v6506_v59 }
 0x3ff   :  { %4055 = vmatpush1.bf16.msra.mxu0 %v5536_v1  ;;  %4087 = vmatpush1.bf16.msra.mxu1 %v5671_v33 }
 0x400   :  { %4057 = vmatprep.subr.bf16.mxu0 %v5539_v6  ;;  %4089 = vmatprep.subr.bf16.mxu1 %v5675_v9 }
 0x403   :  { %4059 = vmatpush1.bf16.msra.mxu0 %v5549_v15  ;;  %4091 = vmatpush1.bf16.msra.mxu1 %v5679_v50 }
 0x404   :  { %4061 = vmatprep.subr.bf16.mxu0 %v5553_v20  ;;  %4093 = vmatprep.subr.bf16.mxu1 %v5683_v18 }
 0x407   :  { %4063 = vmatpush1.bf16.msra.mxu0 %v5563_v29  ;;  %4095 = vmatpush1.bf16.msra.mxu1 %v5687_v25 }
 0x408   :  { %4065 = vmatprep.subr.bf16.mxu0 %v5567_v34  ;;  %4097 = vmatprep.subr.bf16.mxu1 %v5691_v10 }
 0x40b   :  { %4067 = vmatpush1.bf16.msra.mxu0 %v5577_v44  ;;  %4099 = vmatpush1.bf16.msra.mxu1 %v5695_v27 }
 0x40c   :  { %4069 = vmatprep.subr.bf16.mxu0 %v5581_v52  ;;  %4101 = vmatprep.subr.bf16.mxu1 %v5699_v24 }
 0x40f   :  { %4071 = vmatpush1.bf16.msra.mxu0 %v5591_v63  ;;  %4103 = vmatpush1.bf16.msra.mxu1 %v5703_v45 }
 0x410   :  { %4073 = vmatprep.subr.bf16.mxu0 %v5595_v7  ;;  %4105 = vmatprep.subr.bf16.mxu1 %v5707_v38 }
 0x413   :  { %4075 = vmatpush1.bf16.msra.mxu0 %v5605_v19  ;;  %4107 = vmatpush1.bf16.msra.mxu1 %v5711_v53 }
 0x414   :  { %4077 = vmatprep.subr.bf16.mxu0 %v5609_v26  ;;  %4109 = vmatprep.subr.bf16.mxu1 %v5715_v57 }
 0x417   :  { %4079 = vmatpush1.bf16.msra.mxu0 %v5619_v36  ;;  %4111 = vmatpush1.bf16.msra.mxu1 %v5719_v58 }
 0x418   :  { %4113 = vmatprep.subr.bf16.mxu0 %v5519_v41  ;;  %4145 = vmatprep.subr.bf16.mxu1 %v5656_v55 }
 0x4cd   :  { %v1398_v37 = vpop.f32.mrb[20].mxu0  ;;  %v1469_v14 = vpop.f32.mrb[22].mxu1 }
 0x4ce   :  { %v1474_v4 = vadd.f32 %v1398_v37, %v5764_v30  ;;  %v1400_v16 = vpop.f32.mrb[21].mxu0  ;;  %v1471_v8 = vpop.f32.mrb[23].mxu1  ;;  %v4822_v47 = vadd.f32 %v1469_v14, %v5788_v23 }
 0x4cf   :  { %v1475_v31 = vadd.f32 %v1400_v16, %v5766_v35  ;;  %v4823_v5 = vadd.f32 %v1471_v8, %v5792_v48 }
 0x4d0   :  { %v3628_v40 = vmul.f32 -1.442695, %v1474_v4 }
 0x4d1   :  { %v3629_v42 = vmul.f32 -1.442695, %v1475_v31  ;;  %v3630_v22 = vmul.f32 -1.442695, %v4823_v5 }
 0x4d2   :  { %4967 = vpow2.f32 %v3628_v40 }
 0x4d3   :  { %4969 = vpow2.f32 %v3629_v42 }
 0x4d4   :  { %4971 = vpow2.f32 %v3630_v22 }
 0x4d5   :  { %4973 = vtanh.f32 %v4822_v47 }
 0x4dc   :  { %v4968_v13 = vpop.eup %4967 }
 0x4dd   :  { %v4970_v12 = vpop.eup %4969  ;;  %v1481_v11 = vadd.f32 1.0, %v4968_v13 }
 0x4de   :  { %v1487_v62 = vadd.f32 1.0, %v4970_v12  ;;  %v4972_v30 = vpop.eup %4971 }
 0x4df   :  { %4975 = vrcp.f32 %v1481_v11  ;;  %v4974_v61 = vpop.eup %4973  ;;  %v1494_v2 = vadd.f32 1.0, %v4972_v30 }
 0x4e0   :  { %4977 = vrcp.f32 %v1487_v62 }
 0x4e1   :  { %4979 = vrcp.f32 %v1494_v2 }
 0x4e9   :  { %v4976_v35 = vpop.eup %4975 }
 0x4ea   :  { %v4978_v54 = vpop.eup %4977  ;;  %v1498_v0 = vmul.f32 %v4976_v35, %v4974_v61 }
 0x4eb   :  { %v1497_v37 = vmul.f32 %v4978_v54, %v5880_v21  ;;  %v4980_v14 = vpop.eup %4979 }
 0x4ed   :  { %v5922_v4 = vadd.f32 %v1498_v0, %v1497_v37 }
 0x4ef   :  { %4981 = vtanh.f32 %v5922_v4 }
 0x4f9   :  { %v4982_v16 = vpop.eup %4981 }
 0x4fa   :  { %v1501_v8 = vmul.f32 %v4982_v16, %v4980_v14 }
 0x4fc   :  { %1567 = vmatmul.mubr.f32.vlgmr.msra.gmra.mrb[22].mxu0 %v1501_v8  ;;  %1638 = vmatmul.mubr.f32.vlgmr.msra.gmra.mrb[24].mxu1 %v1501_v8 }
 0x4fd   :  { %4115 = vmatpush1.bf16.msra.mxu0 %v5525_v51  ;;  %4147 = vmatpush1.bf16.msra.mxu1 %v5662_v17 }
 0x4fe   :  { %4117 = vmatprep.subr.bf16.mxu0 %v5528_v56  ;;  %4149 = vmatprep.subr.bf16.mxu1 %v5665_v3 }
 0x4ff   :  { %1736 = vmatprep.mubr.f32.mxu0 %v6506_v59  ;;  %1807 = vmatprep.mubr.f32.mxu1 %v6506_v59 }
 0x501   :  { %4119 = vmatpush1.bf16.msra.mxu0 %v5536_v1  ;;  %4151 = vmatpush1.bf16.msra.mxu1 %v5671_v33 }
 0x502   :  { %4121 = vmatprep.subr.bf16.mxu0 %v5539_v6  ;;  %4153 = vmatprep.subr.bf16.mxu1 %v5675_v9 }
 0x505   :  { %4123 = vmatpush1.bf16.msra.mxu0 %v5549_v15  ;;  %4155 = vmatpush1.bf16.msra.mxu1 %v5679_v50 }
 0x506   :  { %4125 = vmatprep.subr.bf16.mxu0 %v5553_v20  ;;  %4157 = vmatprep.subr.bf16.mxu1 %v5683_v18 }
 0x509   :  { %4127 = vmatpush1.bf16.msra.mxu0 %v5563_v29  ;;  %4159 = vmatpush1.bf16.msra.mxu1 %v5687_v25 }
 0x50a   :  { %4129 = vmatprep.subr.bf16.mxu0 %v5567_v34  ;;  %4161 = vmatprep.subr.bf16.mxu1 %v5691_v10 }
 0x50d   :  { %4131 = vmatpush1.bf16.msra.mxu0 %v5577_v44  ;;  %4163 = vmatpush1.bf16.msra.mxu1 %v5695_v27 }
 0x50e   :  { %4133 = vmatprep.subr.bf16.mxu0 %v5581_v52  ;;  %4165 = vmatprep.subr.bf16.mxu1 %v5699_v24 }
 0x511   :  { %4135 = vmatpush1.bf16.msra.mxu0 %v5591_v63  ;;  %4167 = vmatpush1.bf16.msra.mxu1 %v5703_v45 }
 0x512   :  { %4137 = vmatprep.subr.bf16.mxu0 %v5595_v7  ;;  %4169 = vmatprep.subr.bf16.mxu1 %v5707_v38 }
 0x515   :  { %4139 = vmatpush1.bf16.msra.mxu0 %v5605_v19  ;;  %4171 = vmatpush1.bf16.msra.mxu1 %v5711_v53 }
 0x516   :  { %4141 = vmatprep.subr.bf16.mxu0 %v5609_v26  ;;  %4173 = vmatprep.subr.bf16.mxu1 %v5715_v57 }
 0x519   :  { %4143 = vmatpush1.bf16.msra.mxu0 %v5619_v36  ;;  %4175 = vmatpush1.bf16.msra.mxu1 %v5719_v58 }
 0x51a   :  { %4177 = vmatprep.subr.bf16.mxu0 %v5519_v41  ;;  %4209 = vmatprep.subr.bf16.mxu1 %v5656_v55 }
 0x5cf   :  { %v1568_v21 = vpop.f32.mrb[22].mxu0  ;;  %v1639_v31 = vpop.f32.mrb[24].mxu1 }
 0x5d0   :  { %v1644_v40 = vadd.f32 %v1568_v21, %v5768_v39  ;;  %v1570_v42 = vpop.f32.mrb[23].mxu0  ;;  %v1641_v5 = vpop.f32.mrb[25].mxu1  ;;  %v4824_v62 = vadd.f32 %v1639_v31, %v5788_v23 }
 0x5d1   :  { %v1645_v22 = vadd.f32 %v1570_v42, %v5770_v43  ;;  %v4825_v12 = vadd.f32 %v1641_v5, %v5792_v48 }
 0x5d2   :  { %v3631_v47 = vmul.f32 -1.442695, %v1644_v40 }
 0x5d3   :  { %v3632_v13 = vmul.f32 -1.442695, %v1645_v22  ;;  %v3633_v11 = vmul.f32 -1.442695, %v4825_v12 }
 0x5d4   :  { %4983 = vpow2.f32 %v3631_v47 }
 0x5d5   :  { %4985 = vpow2.f32 %v3632_v13 }
 0x5d6   :  { %4987 = vpow2.f32 %v3633_v11 }
 0x5d7   :  { %4989 = vtanh.f32 %v4824_v62 }
 0x5de   :  { %v4984_v30 = vpop.eup %4983 }
 0x5df   :  { %v4986_v61 = vpop.eup %4985  ;;  %v1651_v35 = vadd.f32 1.0, %v4984_v30 }
 0x5e0   :  { %v1657_v54 = vadd.f32 1.0, %v4986_v61  ;;  %v4988_v39 = vpop.eup %4987 }
 0x5e1   :  { %4991 = vrcp.f32 %v1651_v35  ;;  %v4990_v0 = vpop.eup %4989  ;;  %v1664_v14 = vadd.f32 1.0, %v4988_v39 }
 0x5e2   :  { %4993 = vrcp.f32 %v1657_v54 }
 0x5e3   :  { %4995 = vrcp.f32 %v1664_v14 }
 0x5eb   :  { %v4992_v43 = vpop.eup %4991 }
 0x5ec   :  { %v4994_v2 = vpop.eup %4993  ;;  %v1668_v37 = vmul.f32 %v4992_v43, %v4990_v0 }
 0x5ed   :  { %v1667_v16 = vmul.f32 %v4994_v2, %v5922_v4  ;;  %v4996_v21 = vpop.eup %4995 }
 0x5ef   :  { %v5964_v8 = vadd.f32 %v1668_v37, %v1667_v16 }
 0x5f1   :  { %4997 = vtanh.f32 %v5964_v8 }
 0x5fb   :  { %v4998_v31 = vpop.eup %4997 }
 0x5fc   :  { %v1671_v40 = vmul.f32 %v4998_v31, %v4996_v21 }
 0x5fe   :  { %1737 = vmatmul.mubr.f32.vlgmr.msra.gmra.mrb[24].mxu0 %v1671_v40  ;;  %1808 = vmatmul.mubr.f32.vlgmr.msra.gmra.mrb[26].mxu1 %v1671_v40  ;;  %v2182_v40 = vld [vmem:[#allocation11] sm:$0xff] }
 0x5ff   :  { %4179 = vmatpush1.bf16.msra.mxu0 %v5525_v51  ;;  %4211 = vmatpush1.bf16.msra.mxu1 %v5662_v17 }
 0x600   :  { %4181 = vmatprep.subr.bf16.mxu0 %v5528_v56  ;;  %4213 = vmatprep.subr.bf16.mxu1 %v5665_v3 }
 0x601   :  { %1906 = vmatprep.mubr.f32.mxu0 %v6506_v59  ;;  %1977 = vmatprep.mubr.f32.mxu1 %v6506_v59 }
 0x603   :  { %4183 = vmatpush1.bf16.msra.mxu0 %v5536_v1  ;;  %4215 = vmatpush1.bf16.msra.mxu1 %v5671_v33 }
 0x604   :  { %4185 = vmatprep.subr.bf16.mxu0 %v5539_v6  ;;  %4217 = vmatprep.subr.bf16.mxu1 %v5675_v9 }
 0x607   :  { %4187 = vmatpush1.bf16.msra.mxu0 %v5549_v15  ;;  %4219 = vmatpush1.bf16.msra.mxu1 %v5679_v50 }
 0x608   :  { %4189 = vmatprep.subr.bf16.mxu0 %v5553_v20  ;;  %4221 = vmatprep.subr.bf16.mxu1 %v5683_v18 }
 0x60b   :  { %4191 = vmatpush1.bf16.msra.mxu0 %v5563_v29  ;;  %4223 = vmatpush1.bf16.msra.mxu1 %v5687_v25 }
 0x60c   :  { %4193 = vmatprep.subr.bf16.mxu0 %v5567_v34  ;;  %4225 = vmatprep.subr.bf16.mxu1 %v5691_v10 }
 0x60f   :  { %4195 = vmatpush1.bf16.msra.mxu0 %v5577_v44  ;;  %4227 = vmatpush1.bf16.msra.mxu1 %v5695_v27 }
 0x610   :  { %4197 = vmatprep.subr.bf16.mxu0 %v5581_v52  ;;  %4229 = vmatprep.subr.bf16.mxu1 %v5699_v24 }
 0x613   :  { %4199 = vmatpush1.bf16.msra.mxu0 %v5591_v63  ;;  %4231 = vmatpush1.bf16.msra.mxu1 %v5703_v45 }
 0x614   :  { %4201 = vmatprep.subr.bf16.mxu0 %v5595_v7  ;;  %4233 = vmatprep.subr.bf16.mxu1 %v5707_v38 }
 0x617   :  { %4203 = vmatpush1.bf16.msra.mxu0 %v5605_v19  ;;  %4235 = vmatpush1.bf16.msra.mxu1 %v5711_v53 }
 0x618   :  { %4205 = vmatprep.subr.bf16.mxu0 %v5609_v26  ;;  %4237 = vmatprep.subr.bf16.mxu1 %v5715_v57 }
 0x61b   :  { %4207 = vmatpush1.bf16.msra.mxu0 %v5619_v36  ;;  %4239 = vmatpush1.bf16.msra.mxu1 %v5719_v58 }
 0x61c   :  { %4241 = vmatprep.subr.bf16.mxu0 %v5519_v41  ;;  %4273 = vmatprep.subr.bf16.mxu1 %v5656_v55 }
 0x6d1   :  { %v1738_v4 = vpop.f32.mrb[24].mxu0  ;;  %v1809_v42 = vpop.f32.mrb[26].mxu1 }
 0x6d2   :  { %v1814_v5 = vadd.f32 %v1738_v4, %v5772_v46  ;;  %v1740_v22 = vpop.f32.mrb[25].mxu0  ;;  %v1811_v47 = vpop.f32.mrb[27].mxu1  ;;  %v4826_v61 = vadd.f32 %v1809_v42, %v5788_v23  ;;  %v2186_v4 = vld [vmem:[#allocation11 + $0x20] sm:$0xff] }
 0x6d3   :  { %v1815_v13 = vadd.f32 %v1740_v22, %v5774_v49  ;;  %v4827_v62 = vadd.f32 %v1811_v47, %v5792_v48  ;;  %v2184_v22 = vld [vmem:[#allocation11 + $0x10] sm:$0xff] }
 0x6d4   :  { %v3634_v12 = vmul.f32 -1.442695, %v1814_v5  ;;  %v6055_v5 = vpack.c.bf16 %v2186_v4, %v2182_v40  ;;  %v2188_v47 = vld [vmem:[#allocation11 + $0x30] sm:$0xff]  ;;  %v2225_v40 = vld [vmem:[#allocation11 + $0x158] sm:$0xff] }
 0x6d5   :  { %v3635_v11 = vmul.f32 -1.442695, %v1815_v13  ;;  %v3636_v30 = vmul.f32 -1.442695, %v4827_v62  ;;  %v6058_v13 = vpack.c.bf16 %v2188_v47, %v2184_v22  ;;  %v2193_v62 = vld [vmem:[#allocation11 + $0x58] sm:$0xff]  ;;  %v2222_v47 = vld [vmem:[#allocation11 + $0x140] sm:$0xff] }
 0x6d6   :  { %4999 = vpow2.f32 %v3634_v12  ;;  %v2191_v12 = vld [vmem:[#allocation11 + $0x48] sm:$0xff]  ;;  %v2229_v22 = vld [vmem:[#allocation11 + $0x178] sm:$0xff] }
 0x6d7   :  { %5001 = vpow2.f32 %v3635_v11  ;;  %v2195_v11 = vld [vmem:[#allocation11 + $0x68] sm:$0xff] }
 0x6d8   :  { %5003 = vpow2.f32 %v3636_v30  ;;  %v6063_v30 = vpack.c.bf16 %v2195_v11, %v2191_v12  ;;  %v2226_v12 = vld [vmem:[#allocation11 + $0x160] sm:$0xff]  ;;  %v6113_v11 = vpack.c.bf16 %v2229_v22, %v2225_v40 }
 0x6d9   :  { %5005 = vtanh.f32 %v4826_v61  ;;  %v2197_v61 = vld [vmem:[#allocation11 + $0x78] sm:$0xff] }
 0x6e0   :  { %v5000_v41 = vpop.eup %4999 }
 0x6e1   :  { %v5002_v35 = vpop.eup %5001  ;;  %v1821_v55 = vadd.f32 1.0, %v5000_v41  ;;  %v2190_v41 = vld [vmem:[#allocation11 + $0x40] sm:$0xff] }
 0x6e2   :  { %v1827_v54 = vadd.f32 1.0, %v5002_v35  ;;  %v5004_v46 = vpop.eup %5003  ;;  %v2194_v35 = vld [vmem:[#allocation11 + $0x60] sm:$0xff] }
 0x6e3   :  { %5007 = vrcp.f32 %v1821_v55  ;;  %v5006_v39 = vpop.eup %5005  ;;  %v1834_v2 = vadd.f32 1.0, %v5004_v46  ;;  %v6065_v55 = vpack.c.bf16 %v2197_v61, %v2193_v62  ;;  %v2192_v46 = vld [vmem:[#allocation11 + $0x50] sm:$0xff]  ;;  %v6115_v62 = vpack.c.bf16 %v2226_v12, %v2222_v47 }
 0x6e4   :  { %5009 = vrcp.f32 %v1827_v54  ;;  %v6067_v54 = vpack.c.bf16 %v2194_v35, %v2190_v41  ;;  %v2224_v61 = vld [vmem:[#allocation11 + $0x150] sm:$0xff]  ;;  %v2231_v35 = vld [vmem:[#allocation11 + $0x188] sm:$0xff] }
 0x6e5   :  { %5011 = vrcp.f32 %v1834_v2  ;;  %v2201_v2 = vld [vmem:[#allocation11 + $0x98] sm:$0xff]  ;;  %v2228_v41 = vld [vmem:[#allocation11 + $0x170] sm:$0xff] }
 0x6ed   :  { %v5008_v49 = vpop.eup %5007 }
 0x6ee   :  { %v5010_v0 = vpop.eup %5009  ;;  %v1838_v43 = vmul.f32 %v5008_v49, %v5006_v39  ;;  %v2196_v39 = vld [vmem:[#allocation11 + $0x70] sm:$0xff] }
 0x6ef   :  { %v1837_v37 = vmul.f32 %v5010_v0, %v5964_v8  ;;  %v5012_v16 = vpop.eup %5011  ;;  %v2189_v8 = vld [vmem:[#allocation11 + $0x38] sm:$0xff]  ;;  %v6070_v49 = vpack.c.bf16 %v2196_v39, %v2192_v46  ;;  %v2199_v0 = vld [vmem:[#allocation11 + $0x88] sm:$0xff]  ;;  %v6118_v46 = vpack.c.bf16 %v2228_v41, %v2224_v61 }
 0x6f0   :  { %v2235_v39 = vld [vmem:[#allocation11 + $0x1a8] sm:$0xff] }
 0x6f1   :  { %v6006_v14 = vadd.f32 %v1838_v43, %v1837_v37  ;;  %v2203_v43 = vld [vmem:[#allocation11 + $0xa8] sm:$0xff] }
 0x6f2   :  { %v6075_v37 = vpack.c.bf16 %v2203_v43, %v2199_v0  ;;  %v2233_v0 = vld [vmem:[#allocation11 + $0x198] sm:$0xff] }
 0x6f3   :  { %5013 = vtanh.f32 %v6006_v14  ;;  %v2237_v43 = vld [vmem:[#allocation11 + $0x1b8] sm:$0xff] }
 0x6fd   :  { %v5014_v21 = vpop.eup %5013 }
 0x6fe   :  { %v1841_v31 = vmul.f32 %v5014_v21, %v5012_v16  ;;  %v2198_v16 = vld [vmem:[#allocation11 + $0x80] sm:$0xff] }
 0x6ff   :  { %v2202_v21 = vld [vmem:[#allocation11 + $0xa0] sm:$0xff] }
 0x700   :  { %1907 = vmatmul.mubr.f32.vlgmr.msra.gmra.mrb[26].mxu0 %v1841_v31  ;;  %1978 = vmatmul.mubr.f32.vlgmr.msra.gmra.mrb[28].mxu1 %v1841_v31 }
 0x701   :  { %4243 = vmatpush1.bf16.msra.mxu0 %v5525_v51  ;;  %4275 = vmatpush1.bf16.msra.mxu1 %v5662_v17 }
 0x702   :  { %4245 = vmatprep.subr.bf16.mxu0 %v5528_v56  ;;  %4277 = vmatprep.subr.bf16.mxu1 %v5665_v3 }
 0x703   :  { %2076 = vmatprep.mubr.f32.mxu0 %v6506_v59  ;;  %2147 = vmatprep.mubr.f32.mxu1 %v6506_v59 }
 0x705   :  { %4247 = vmatpush1.bf16.msra.mxu0 %v5536_v1  ;;  %4279 = vmatpush1.bf16.msra.mxu1 %v5671_v33 }
 0x706   :  { %4249 = vmatprep.subr.bf16.mxu0 %v5539_v6  ;;  %4281 = vmatprep.subr.bf16.mxu1 %v5675_v9 }
 0x709   :  { %4251 = vmatpush1.bf16.msra.mxu0 %v5549_v15  ;;  %4283 = vmatpush1.bf16.msra.mxu1 %v5679_v50 }
 0x70a   :  { %4253 = vmatprep.subr.bf16.mxu0 %v5553_v20  ;;  %4285 = vmatprep.subr.bf16.mxu1 %v5683_v18  ;;  %v6507_v20 = vld [vmem:[#allocation22_spill] sm:$0xff] }
 0x70d   :  { %4255 = vmatpush1.bf16.msra.mxu0 %v5563_v29  ;;  %4287 = vmatpush1.bf16.msra.mxu1 %v5687_v25 }
 0x70e   :  { %4257 = vmatprep.subr.bf16.mxu0 %v5567_v34  ;;  %4289 = vmatprep.subr.bf16.mxu1 %v5691_v10 }
 0x711   :  { %4259 = vmatpush1.bf16.msra.mxu0 %v5577_v44  ;;  %4291 = vmatpush1.bf16.msra.mxu1 %v5695_v27 }
 0x712   :  { %4261 = vmatprep.subr.bf16.mxu0 %v5581_v52  ;;  %4293 = vmatprep.subr.bf16.mxu1 %v5699_v24 }
 0x715   :  { %4263 = vmatpush1.bf16.msra.mxu0 %v5591_v63  ;;  %4295 = vmatpush1.bf16.msra.mxu1 %v5703_v45 }
 0x716   :  { %4265 = vmatprep.subr.bf16.mxu0 %v5595_v7  ;;  %4297 = vmatprep.subr.bf16.mxu1 %v5707_v38 }
 0x719   :  { %4267 = vmatpush1.bf16.msra.mxu0 %v5605_v19  ;;  %4299 = vmatpush1.bf16.msra.mxu1 %v5711_v53  ;;  %v2183_v53 = vld [vmem:[#allocation11 + $0x8] sm:$0xff] }
 0x71a   :  { %4269 = vmatprep.subr.bf16.mxu0 %v5609_v26  ;;  %4301 = vmatprep.subr.bf16.mxu1 %v5715_v57  ;;  %v2187_v57 = vld [vmem:[#allocation11 + $0x28] sm:$0xff] }
 0x71d   :  { %4271 = vmatpush1.bf16.msra.mxu0 %v5619_v36  ;;  %4303 = vmatpush1.bf16.msra.mxu1 %v5719_v58  ;;  %v2185_v58 = vld [vmem:[#allocation11 + $0x18] sm:$0xff] }
 0x71e   :  { %v6053_v42 = vpack.c.bf16 %v2189_v8, %v2185_v58  ;;  %v2223_v58 = vld [vmem:[#allocation11 + $0x148] sm:$0xff] }
 0x71f   :  { %v2227_v8 = vld [vmem:[#allocation11 + $0x168] sm:$0xff] }
 0x720   :  { %4337 = vmatprep.subr.bf16.mxu1 %v6053_v42  ;;  %v6110_v4 = vpack.c.bf16 %v2227_v8, %v2223_v58  ;;  %v6508_v58 = vld [vmem:[#allocation23_spill] sm:$0xff] }
 0x7d3   :  { %v1908_v51 = vpop.f32.mrb[26].mxu0  ;;  %v1979_v56 = vpop.f32.mrb[28].mxu1 }
 0x7d4   :  { %v1984_v1 = vadd.f32 %v1908_v51, %v5776_v60  ;;  %v1910_v6 = vpop.f32.mrb[27].mxu0  ;;  %v1981_v15 = vpop.f32.mrb[29].mxu1  ;;  %v4828_v7 = vadd.f32 %v1979_v56, %v5788_v23  ;;  %v6051_v60 = vpack.c.bf16 %v2187_v57, %v2183_v53  ;;  %v6079_v51 = vpack.c.bf16 %v2202_v21, %v2198_v16  ;;  %v2200_v56 = vld [vmem:[#allocation11 + $0x90] sm:$0xff]  ;;  %v2230_v16 = vld [vmem:[#allocation11 + $0x180] sm:$0xff] }
 0x7d5   :  { %v1985_v29 = vadd.f32 %v1910_v6, %v6507_v20  ;;  %v4829_v52 = vadd.f32 %v1981_v15, %v5792_v48  ;;  %v2207_v15 = vld [vmem:[#allocation11 + $0xc8] sm:$0xff]  ;;  %v2220_v53 = vld [vmem:[#allocation11 + $0x130] sm:$0xff]  ;;  %v2234_v21 = vld [vmem:[#allocation11 + $0x1a0] sm:$0xff] }
 0x7d6   :  { %v3637_v34 = vmul.f32 -1.442695, %v1984_v1  ;;  %4305 = vmatprep.subr.bf16.mxu0 %v6051_v60  ;;  %v2204_v1 = vld [vmem:[#allocation11 + $0xb0] sm:$0xff]  ;;  %v2211_v20 = vld [vmem:[#allocation11 + $0xe8] sm:$0xff] }
 0x7d7   :  { %v3638_v44 = vmul.f32 -1.442695, %v1985_v29  ;;  %v3639_v63 = vmul.f32 -1.442695, %v4829_v52  ;;  %v6082_v6 = vpack.c.bf16 %v2204_v1, %v2200_v56  ;;  %v2209_v29 = vld [vmem:[#allocation11 + $0xd8] sm:$0xff]  ;;  %v2206_v52 = vld [vmem:[#allocation11 + $0xc0] sm:$0xff]  ;;  %v6126_v1 = vpack.c.bf16 %v2234_v21, %v2230_v16 }
 0x7d8   :  { %5015 = vpow2.f32 %v3637_v34  ;;  %v6087_v34 = vpack.c.bf16 %v2211_v20, %v2207_v15  ;;  %v2232_v56 = vld [vmem:[#allocation11 + $0x190] sm:$0xff]  ;;  %v2239_v20 = vld [vmem:[#allocation11 + $0x1c8] sm:$0xff] }
 0x7d9   :  { %5017 = vpow2.f32 %v3638_v44  ;;  %v2213_v44 = vld [vmem:[#allocation11 + $0xf8] sm:$0xff]  ;;  %v2236_v15 = vld [vmem:[#allocation11 + $0x1b0] sm:$0xff] }
 0x7da   :  { %5019 = vpow2.f32 %v3639_v63  ;;  %v2210_v63 = vld [vmem:[#allocation11 + $0xe0] sm:$0xff] }
 0x7db   :  { %5021 = vtanh.f32 %v4828_v7  ;;  %v6089_v7 = vpack.c.bf16 %v2213_v44, %v2209_v29  ;;  %v2243_v29 = vld [vmem:[#allocation11 + $0x1e8] sm:$0xff]  ;;  %v6130_v44 = vpack.c.bf16 %v2236_v15, %v2232_v56 }
 0x7e2   :  { %v5016_v19 = vpop.eup %5015 }
 0x7e3   :  { %v5018_v26 = vpop.eup %5017  ;;  %v1991_v36 = vadd.f32 1.0, %v5016_v19  ;;  %v6091_v19 = vpack.c.bf16 %v2210_v63, %v2206_v52  ;;  %v6132_v52 = vpack.c.bf16 %v2243_v29, %v2239_v20  ;;  %v2241_v63 = vld [vmem:[#allocation11 + $0x1d8] sm:$0xff] }
 0x7e4   :  { %v1997_v17 = vadd.f32 1.0, %v5018_v26  ;;  %v5020_v3 = vpop.eup %5019  ;;  %v2208_v26 = vld [vmem:[#allocation11 + $0xd0] sm:$0xff] }
 0x7e5   :  { %5023 = vrcp.f32 %v1991_v36  ;;  %v5022_v33 = vpop.eup %5021  ;;  %v2004_v25 = vadd.f32 1.0, %v5020_v3  ;;  %v2212_v36 = vld [vmem:[#allocation11 + $0xf0] sm:$0xff]  ;;  %v2215_v3 = vld [vmem:[#allocation11 + $0x108] sm:$0xff] }
 0x7e6   :  { %5025 = vrcp.f32 %v1997_v17  ;;  %v6094_v17 = vpack.c.bf16 %v2212_v36, %v2208_v26  ;;  %v2245_v26 = vld [vmem:[#allocation11 + $0x1f8] sm:$0xff]  ;;  %v2238_v36 = vld [vmem:[#allocation11 + $0x1c0] sm:$0xff] }
 0x7e7   :  { %5027 = vrcp.f32 %v2004_v25  ;;  %v2214_v25 = vld [vmem:[#allocation11 + $0x100] sm:$0xff] }
 0x7ef   :  { %v5024_v9 = vpop.eup %5023 }
 0x7f0   :  { %v5026_v50 = vpop.eup %5025  ;;  %v2008_v18 = vmul.f32 %v5024_v9, %v5022_v33  ;;  %v2219_v33 = vld [vmem:[#allocation11 + $0x128] sm:$0xff]  ;;  %v2217_v9 = vld [vmem:[#allocation11 + $0x118] sm:$0xff] }
 0x7f1   :  { %v2007_v10 = vmul.f32 %v5026_v50, %v6006_v14  ;;  %v5028_v24 = vpop.eup %5027  ;;  %v2205_v14 = vld [vmem:[#allocation11 + $0xb8] sm:$0xff]  ;;  %v6099_v50 = vpack.c.bf16 %v2219_v33, %v2215_v3  ;;  %v6135_v3 = vpack.c.bf16 %v2245_v26, %v2241_v63  ;;  %v2242_v33 = vld [vmem:[#allocation11 + $0x1e0] sm:$0xff] }
 0x7f2   :  { %v6077_v31 = vpack.c.bf16 %v2205_v14, %v2201_v2  ;;  %v6121_v2 = vpack.c.bf16 %v2235_v39, %v2231_v35  ;;  %v6123_v14 = vpack.c.bf16 %v2237_v43, %v2233_v0 }
 0x7f3   :  { %v6046_v27 = vadd.f32 %v2008_v18, %v2007_v10  ;;  %v2221_v18 = vld [vmem:[#allocation11 + $0x138] sm:$0xff]  ;;  %v2218_v10 = vld [vmem:[#allocation11 + $0x120] sm:$0xff] }
 0x7f5   :  { %5029 = vtanh.f32 %v6046_v27 }
 0x7ff   :  { %v5030_v45 = vpop.eup %5029 }
 0x800   :  { %v2011_v38 = vmul.f32 %v5030_v45, %v5028_v24  ;;  %v6101_v24 = vpack.c.bf16 %v2221_v18, %v2217_v9  ;;  %v6103_v45 = vpack.c.bf16 %v2218_v10, %v2214_v25  ;;  %v2240_v9 = vld [vmem:[#allocation11 + $0x1d0] sm:$0xff]  ;;  %v6138_v25 = vpack.c.bf16 %v2242_v33, %v2238_v36 }
 0x801   :  { %v2244_v18 = vld [vmem:[#allocation11 + $0x1f0] sm:$0xff] }
 0x802   :  { %2077 = vmatmul.mubr.f32.vlgmr.msra.gmra.mrb[28].mxu0 %v2011_v38  ;;  %2148 = vmatmul.mubr.f32.vlgmr.msra.gmra.mrb[30].mxu1 %v2011_v38  ;;  %v2216_v38 = vld [vmem:[#allocation11 + $0x110] sm:$0xff]  ;;  %v6142_v10 = vpack.c.bf16 %v2244_v18, %v2240_v9 }
 0x803   :  { %2310 = vmatprep.mubr.f32.mxu0 %v6506_v59  ;;  %2381 = vmatprep.mubr.f32.mxu1 %v6506_v59  ;;  %v6106_v57 = vpack.c.bf16 %v2220_v53, %v2216_v38  ;;  %v6509_v9 = vld [vmem:[#allocation20_spill] sm:$0xff] }
 0x804   :  { %4307 = vmatpush1.bf16.msra.mxu0 %v6055_v5  ;;  %4339 = vmatpush1.bf16.msra.mxu1 %v6058_v13 }
 0x805   :  { %4309 = vmatprep.subr.bf16.mxu0 %v6063_v30  ;;  %4341 = vmatprep.subr.bf16.mxu1 %v6065_v55 }
 0x808   :  { %4311 = vmatpush1.bf16.msra.mxu0 %v6067_v54  ;;  %4343 = vmatpush1.bf16.msra.mxu1 %v6070_v49 }
 0x809   :  { %4313 = vmatprep.subr.bf16.mxu0 %v6075_v37  ;;  %4345 = vmatprep.subr.bf16.mxu1 %v6077_v31 }
 0x80c   :  { %4315 = vmatpush1.bf16.msra.mxu0 %v6079_v51  ;;  %4347 = vmatpush1.bf16.msra.mxu1 %v6082_v6 }
 0x80d   :  { %4317 = vmatprep.subr.bf16.mxu0 %v6087_v34  ;;  %4349 = vmatprep.subr.bf16.mxu1 %v6089_v7 }
 0x810   :  { %4319 = vmatpush1.bf16.msra.mxu0 %v6091_v19  ;;  %4351 = vmatpush1.bf16.msra.mxu1 %v6094_v17 }
 0x811   :  { %4321 = vmatprep.subr.bf16.mxu0 %v6099_v50  ;;  %4353 = vmatprep.subr.bf16.mxu1 %v6101_v24 }
 0x814   :  { %4323 = vmatpush1.bf16.msra.mxu0 %v6103_v45  ;;  %4355 = vmatpush1.bf16.msra.mxu1 %v6106_v57 }
 0x815   :  { %4325 = vmatprep.subr.bf16.mxu0 %v6110_v4  ;;  %4357 = vmatprep.subr.bf16.mxu1 %v6113_v11 }
 0x818   :  { %4327 = vmatpush1.bf16.msra.mxu0 %v6115_v62  ;;  %4359 = vmatpush1.bf16.msra.mxu1 %v6118_v46 }
 0x819   :  { %4329 = vmatprep.subr.bf16.mxu0 %v6121_v2  ;;  %4361 = vmatprep.subr.bf16.mxu1 %v6123_v14 }
 0x81c   :  { %4331 = vmatpush1.bf16.msra.mxu0 %v6126_v1  ;;  %4363 = vmatpush1.bf16.msra.mxu1 %v6130_v44 }
 0x81d   :  { %4333 = vmatprep.subr.bf16.mxu0 %v6132_v52  ;;  %4365 = vmatprep.subr.bf16.mxu1 %v6135_v3 }
 0x820   :  { %4335 = vmatpush1.bf16.msra.mxu0 %v6138_v25  ;;  %4367 = vmatpush1.bf16.msra.mxu1 %v6142_v10 }
 0x821   :  { %4369 = vmatprep.subr.bf16.mxu0 %v6051_v60  ;;  %4401 = vmatprep.subr.bf16.mxu1 %v6053_v42 }
 0x8d5   :  { %v2078_v38 = vpop.f32.mrb[28].mxu0  ;;  %v2149_v53 = vpop.f32.mrb[30].mxu1 }
 0x8d6   :  { %v2154_v8 = vadd.f32 %v2078_v38, %v6508_v58  ;;  %v2080_v40 = vpop.f32.mrb[29].mxu0  ;;  %v2151_v22 = vpop.f32.mrb[31].mxu1  ;;  %v4830_v39 = vadd.f32 %v2149_v53, %v5788_v23  ;;  %v6510_v38 = vld [vmem:[#allocation21_spill] sm:$0xff] }
 0x8d7   :  { %v2155_v47 = vadd.f32 %v2080_v40, %v5782_v28  ;;  %v4831_v41 = vadd.f32 %v2151_v22, %v5792_v48 }
 0x8d8   :  { %v3640_v12 = vmul.f32 -1.442695, %v2154_v8 }
 0x8d9   :  { %v3641_v61 = vmul.f32 -1.442695, %v2155_v47  ;;  %v3642_v35 = vmul.f32 -1.442695, %v4831_v41 }
 0x8da   :  { %5031 = vpow2.f32 %v3640_v12 }
 0x8db   :  { %5033 = vpow2.f32 %v3641_v61 }
 0x8dc   :  { %5035 = vpow2.f32 %v3642_v35  ;;  %v6511_v35 = vsub.s32 3, %v5743_v32 }
 0x8dd   :  { %5037 = vtanh.f32 %v4830_v39 }
 0x8e4   :  { %v5032_v0 = vpop.eup %5031 }
 0x8e5   :  { %v5034_v43 = vpop.eup %5033  ;;  %v2161_v16 = vadd.f32 1.0, %v5032_v0 }
 0x8e6   :  { %v2167_v21 = vadd.f32 1.0, %v5034_v43  ;;  %v5036_v56 = vpop.eup %5035  ;;  %v6512_v43 = vsub.s32 2, %v5743_v32 }
 0x8e7   :  { %5039 = vrcp.f32 %v2161_v16  ;;  %v5038_v15 = vpop.eup %5037  ;;  %v2174_v63 = vadd.f32 1.0, %v5036_v56 }
 0x8e8   :  { %5041 = vrcp.f32 %v2167_v21 }
 0x8e9   :  { %5043 = vrcp.f32 %v2174_v63 }
 0x8f1   :  { %v5040_v28 = vpop.eup %5039 }
 0x8f2   :  { %v5042_v20 = vpop.eup %5041  ;;  %v2178_v29 = vmul.f32 %v5040_v28, %v5038_v15 }
 0x8f3   :  { %v2177_v26 = vmul.f32 %v5042_v20, %v6046_v27  ;;  %v5044_v23 = vpop.eup %5043  ;;  %v522_v27 = vld [vmem:[%s6490_s7] sm:$0xf] }
 0x8f4   :  { %v6195_v18 = vrot.slane %v522_v27, %v6509_v9  ;;  %v6198_v53 = vrot.slane %v522_v27, %v6510_v38  ;;  %v6204_v39 = vrot.slane %v522_v27, %v6511_v35  ;;  %v6209_v16 = vrot.slane %v522_v27, %v6512_v43 }
 0x8f5   :  { %v6154_v48 = vadd.f32 %v2178_v29, %v2177_v26 }
 0x8f7   :  { %5045 = vtanh.f32 %v6154_v48 }
 0x901   :  { %v5046_v36 = vpop.eup %5045 }
 0x902   :  { %v2181_v33 = vmul.f32 %v5046_v36, %v5044_v23 }
 0x904   :  { %2311 = vmatmul.mubr.f32.vlgmr.msra.gmra.mrb[0].mxu0 %v2181_v33  ;;  %2382 = vmatmul.mubr.f32.vlgmr.msra.gmra.mrb[32].mxu1 %v2181_v33 }
 0x905   :  { %4371 = vmatpush1.bf16.msra.mxu0 %v6055_v5  ;;  %4403 = vmatpush1.bf16.msra.mxu1 %v6058_v13 }
 0x906   :  { %4373 = vmatprep.subr.bf16.mxu0 %v6063_v30  ;;  %4405 = vmatprep.subr.bf16.mxu1 %v6065_v55 }
 0x907   :  { %2480 = vmatprep.mubr.f32.mxu0 %v6506_v59  ;;  %2551 = vmatprep.mubr.f32.mxu1 %v6506_v59 }
 0x909   :  { %4375 = vmatpush1.bf16.msra.mxu0 %v6067_v54  ;;  %4407 = vmatpush1.bf16.msra.mxu1 %v6070_v49 }
 0x90a   :  { %4377 = vmatprep.subr.bf16.mxu0 %v6075_v37  ;;  %4409 = vmatprep.subr.bf16.mxu1 %v6077_v31 }
 0x90d   :  { %4379 = vmatpush1.bf16.msra.mxu0 %v6079_v51  ;;  %4411 = vmatpush1.bf16.msra.mxu1 %v6082_v6 }
 0x90e   :  { %4381 = vmatprep.subr.bf16.mxu0 %v6087_v34  ;;  %4413 = vmatprep.subr.bf16.mxu1 %v6089_v7 }
 0x911   :  { %4383 = vmatpush1.bf16.msra.mxu0 %v6091_v19  ;;  %4415 = vmatpush1.bf16.msra.mxu1 %v6094_v17 }
 0x912   :  { %4385 = vmatprep.subr.bf16.mxu0 %v6099_v50  ;;  %4417 = vmatprep.subr.bf16.mxu1 %v6101_v24 }
 0x915   :  { %4387 = vmatpush1.bf16.msra.mxu0 %v6103_v45  ;;  %4419 = vmatpush1.bf16.msra.mxu1 %v6106_v57 }
 0x916   :  { %4389 = vmatprep.subr.bf16.mxu0 %v6110_v4  ;;  %4421 = vmatprep.subr.bf16.mxu1 %v6113_v11 }
 0x919   :  { %4391 = vmatpush1.bf16.msra.mxu0 %v6115_v62  ;;  %4423 = vmatpush1.bf16.msra.mxu1 %v6118_v46 }
 0x91a   :  { %4393 = vmatprep.subr.bf16.mxu0 %v6121_v2  ;;  %4425 = vmatprep.subr.bf16.mxu1 %v6123_v14 }
 0x91d   :  { %4395 = vmatpush1.bf16.msra.mxu0 %v6126_v1  ;;  %4427 = vmatpush1.bf16.msra.mxu1 %v6130_v44 }
 0x91e   :  { %4397 = vmatprep.subr.bf16.mxu0 %v6132_v52  ;;  %4429 = vmatprep.subr.bf16.mxu1 %v6135_v3 }
 0x921   :  { %4399 = vmatpush1.bf16.msra.mxu0 %v6138_v25  ;;  %4431 = vmatpush1.bf16.msra.mxu1 %v6142_v10 }
 0x922   :  { %4433 = vmatprep.subr.bf16.mxu0 %v6051_v60  ;;  %4465 = vmatprep.subr.bf16.mxu1 %v6053_v42 }
 0x9d7   :  { %v2312_v58 = vpop.f32.mrb[0].mxu0  ;;  %v2383_v8 = vpop.f32.mrb[32].mxu1 }
 0x9d8   :  { %v4832_v40 = vadd.f32 %v2312_v58, %v6195_v18  ;;  %v2314_v22 = vpop.f32.mrb[1].mxu0  ;;  %v2385_v47 = vpop.f32.mrb[33].mxu1  ;;  %v4846_v56 = vadd.f32 %v2383_v8, %v6209_v16 }
 0x9d9   :  { %v4833_v12 = vadd.f32 %v2314_v22, %v6198_v53  ;;  %v4847_v0 = vadd.f32 %v2385_v47, %v6204_v39 }
 0x9da   :  { %v3643_v61 = vmul.f32 -1.442695, %v4832_v40 }
 0x9db   :  { %v3644_v41 = vmul.f32 -1.442695, %v4833_v12  ;;  %v3645_v21 = vmul.f32 -1.442695, %v4847_v0 }
 0x9dc   :  { %5047 = vpow2.f32 %v3643_v61 }
 0x9dd   :  { %5049 = vpow2.f32 %v3644_v41 }
 0x9de   :  { %5051 = vpow2.f32 %v3645_v21 }
 0x9df   :  { %5053 = vtanh.f32 %v4846_v56 }
 0x9e6   :  { %v5048_v15 = vpop.eup %5047 }
 0x9e7   :  { %v5050_v28 = vpop.eup %5049  ;;  %v2395_v20 = vadd.f32 1.0, %v5048_v15 }
 0x9e8   :  { %v2401_v29 = vadd.f32 1.0, %v5050_v28  ;;  %v5052_v63 = vpop.eup %5051 }
 0x9e9   :  { %5055 = vrcp.f32 %v2395_v20  ;;  %v5054_v26 = vpop.eup %5053  ;;  %v2408_v58 = vadd.f32 1.0, %v5052_v63 }
 0x9ea   :  { %5057 = vrcp.f32 %v2401_v29 }
 0x9eb   :  { %5059 = vrcp.f32 %v2408_v58 }
 0x9f3   :  { %v5056_v23 = vpop.eup %5055 }
 0x9f4   :  { %v5058_v36 = vpop.eup %5057  ;;  %v2412_v33 = vmul.f32 %v5056_v23, %v5054_v26 }
 0x9f5   :  { %v2411_v32 = vmul.f32 %v5058_v36, %v6154_v48  ;;  %v5060_v8 = vpop.eup %5059 }
 0x9f7   :  { %v6213_v27 = vadd.f32 %v2412_v33, %v2411_v32 }
 0x9f9   :  { %5061 = vtanh.f32 %v6213_v27 }
 0xa03   :  { %v5062_v40 = vpop.eup %5061 }
 0xa04   :  { %v6216_v22 = vmul.f32 %v5062_v40, %v5060_v8 }
 0xa06   :  { %2481 = vmatmul.mubr.f32.vlgmr.msra.gmra.mrb[2].mxu0 %v6216_v22  ;;  %2552 = vmatmul.mubr.f32.vlgmr.msra.gmra.mrb[34].mxu1 %v6216_v22 }
 0xa07   :  { %4435 = vmatpush1.bf16.msra.mxu0 %v6055_v5  ;;  %4467 = vmatpush1.bf16.msra.mxu1 %v6058_v13 }
 0xa08   :  { %4437 = vmatprep.subr.bf16.mxu0 %v6063_v30  ;;  %4469 = vmatprep.subr.bf16.mxu1 %v6065_v55 }
 0xa09   :  { %2650 = vmatprep.mubr.f32.mxu0 %v6506_v59  ;;  %2721 = vmatprep.mubr.f32.mxu1 %v6506_v59 }
 0xa0b   :  { %4439 = vmatpush1.bf16.msra.mxu0 %v6067_v54  ;;  %4471 = vmatpush1.bf16.msra.mxu1 %v6070_v49 }
 0xa0c   :  { %4441 = vmatprep.subr.bf16.mxu0 %v6075_v37  ;;  %4473 = vmatprep.subr.bf16.mxu1 %v6077_v31 }
 0xa0f   :  { %4443 = vmatpush1.bf16.msra.mxu0 %v6079_v51  ;;  %4475 = vmatpush1.bf16.msra.mxu1 %v6082_v6 }
 0xa10   :  { %4445 = vmatprep.subr.bf16.mxu0 %v6087_v34  ;;  %4477 = vmatprep.subr.bf16.mxu1 %v6089_v7 }
 0xa13   :  { %4447 = vmatpush1.bf16.msra.mxu0 %v6091_v19  ;;  %4479 = vmatpush1.bf16.msra.mxu1 %v6094_v17 }
 0xa14   :  { %4449 = vmatprep.subr.bf16.mxu0 %v6099_v50  ;;  %4481 = vmatprep.subr.bf16.mxu1 %v6101_v24 }
 0xa17   :  { %4451 = vmatpush1.bf16.msra.mxu0 %v6103_v45  ;;  %4483 = vmatpush1.bf16.msra.mxu1 %v6106_v57 }
 0xa18   :  { %4453 = vmatprep.subr.bf16.mxu0 %v6110_v4  ;;  %4485 = vmatprep.subr.bf16.mxu1 %v6113_v11 }
 0xa1b   :  { %4455 = vmatpush1.bf16.msra.mxu0 %v6115_v62  ;;  %4487 = vmatpush1.bf16.msra.mxu1 %v6118_v46 }
 0xa1c   :  { %4457 = vmatprep.subr.bf16.mxu0 %v6121_v2  ;;  %4489 = vmatprep.subr.bf16.mxu1 %v6123_v14 }
 0xa1f   :  { %4459 = vmatpush1.bf16.msra.mxu0 %v6126_v1  ;;  %4491 = vmatpush1.bf16.msra.mxu1 %v6130_v44 }
 0xa20   :  { %4461 = vmatprep.subr.bf16.mxu0 %v6132_v52  ;;  %4493 = vmatprep.subr.bf16.mxu1 %v6135_v3 }
 0xa23   :  { %4463 = vmatpush1.bf16.msra.mxu0 %v6138_v25  ;;  %4495 = vmatpush1.bf16.msra.mxu1 %v6142_v10 }
 0xa24   :  { %4497 = vmatprep.subr.bf16.mxu0 %v6051_v60  ;;  %4529 = vmatprep.subr.bf16.mxu1 %v6053_v42 }
 0xad9   :  { %v2482_v48 = vpop.f32.mrb[2].mxu0  ;;  %v2553_v47 = vpop.f32.mrb[34].mxu1 }
 0xada   :  { %v4834_v12 = vadd.f32 %v2482_v48, %v6195_v18  ;;  %v2484_v61 = vpop.f32.mrb[3].mxu0  ;;  %v2555_v41 = vpop.f32.mrb[35].mxu1  ;;  %v4848_v15 = vadd.f32 %v2553_v47, %v6209_v16 }
 0xadb   :  { %v4835_v35 = vadd.f32 %v2484_v61, %v6198_v53  ;;  %v4849_v21 = vadd.f32 %v2555_v41, %v6204_v39 }
 0xadc   :  { %v3646_v0 = vmul.f32 -1.442695, %v4834_v12 }
 0xadd   :  { %v3647_v43 = vmul.f32 -1.442695, %v4835_v35  ;;  %v3648_v56 = vmul.f32 -1.442695, %v4849_v21 }
 0xade   :  { %5063 = vpow2.f32 %v3646_v0 }
 0xadf   :  { %5065 = vpow2.f32 %v3647_v43 }
 0xae0   :  { %5067 = vpow2.f32 %v3648_v56 }
 0xae1   :  { %5069 = vtanh.f32 %v4848_v15 }
 0xae8   :  { %v5064_v28 = vpop.eup %5063 }
 0xae9   :  { %v5066_v20 = vpop.eup %5065  ;;  %v2565_v29 = vadd.f32 1.0, %v5064_v28 }
 0xaea   :  { %v2571_v63 = vadd.f32 1.0, %v5066_v20  ;;  %v5068_v26 = vpop.eup %5067 }
 0xaeb   :  { %5071 = vrcp.f32 %v2565_v29  ;;  %v5070_v23 = vpop.eup %5069  ;;  %v2578_v32 = vadd.f32 1.0, %v5068_v26 }
 0xaec   :  { %5073 = vrcp.f32 %v2571_v63 }
 0xaed   :  { %5075 = vrcp.f32 %v2578_v32 }
 0xaf5   :  { %v5072_v36 = vpop.eup %5071 }
 0xaf6   :  { %v5074_v33 = vpop.eup %5073  ;;  %v2582_v58 = vmul.f32 %v5072_v36, %v5070_v23 }
 0xaf7   :  { %v2581_v8 = vmul.f32 %v5074_v33, %v6213_v27  ;;  %v5076_v48 = vpop.eup %5075 }
 0xaf9   :  { %v6259_v40 = vadd.f32 %v2582_v58, %v2581_v8 }
 0xafb   :  { %5077 = vtanh.f32 %v6259_v40 }
 0xb05   :  { %v5078_v47 = vpop.eup %5077 }
 0xb06   :  { %v6262_v12 = vmul.f32 %v5078_v47, %v5076_v48 }
 0xb08   :  { %2651 = vmatmul.mubr.f32.vlgmr.msra.gmra.mrb[4].mxu0 %v6262_v12  ;;  %2722 = vmatmul.mubr.f32.vlgmr.msra.gmra.mrb[36].mxu1 %v6262_v12 }
 0xb09   :  { %4499 = vmatpush1.bf16.msra.mxu0 %v6055_v5  ;;  %4531 = vmatpush1.bf16.msra.mxu1 %v6058_v13 }
 0xb0a   :  { %4501 = vmatprep.subr.bf16.mxu0 %v6063_v30  ;;  %4533 = vmatprep.subr.bf16.mxu1 %v6065_v55 }
 0xb0b   :  { %2820 = vmatprep.mubr.f32.mxu0 %v6506_v59  ;;  %2891 = vmatprep.mubr.f32.mxu1 %v6506_v59 }
 0xb0d   :  { %4503 = vmatpush1.bf16.msra.mxu0 %v6067_v54  ;;  %4535 = vmatpush1.bf16.msra.mxu1 %v6070_v49 }
 0xb0e   :  { %4505 = vmatprep.subr.bf16.mxu0 %v6075_v37  ;;  %4537 = vmatprep.subr.bf16.mxu1 %v6077_v31 }
 0xb11   :  { %4507 = vmatpush1.bf16.msra.mxu0 %v6079_v51  ;;  %4539 = vmatpush1.bf16.msra.mxu1 %v6082_v6 }
 0xb12   :  { %4509 = vmatprep.subr.bf16.mxu0 %v6087_v34  ;;  %4541 = vmatprep.subr.bf16.mxu1 %v6089_v7 }
 0xb15   :  { %4511 = vmatpush1.bf16.msra.mxu0 %v6091_v19  ;;  %4543 = vmatpush1.bf16.msra.mxu1 %v6094_v17 }
 0xb16   :  { %4513 = vmatprep.subr.bf16.mxu0 %v6099_v50  ;;  %4545 = vmatprep.subr.bf16.mxu1 %v6101_v24 }
 0xb19   :  { %4515 = vmatpush1.bf16.msra.mxu0 %v6103_v45  ;;  %4547 = vmatpush1.bf16.msra.mxu1 %v6106_v57 }
 0xb1a   :  { %4517 = vmatprep.subr.bf16.mxu0 %v6110_v4  ;;  %4549 = vmatprep.subr.bf16.mxu1 %v6113_v11 }
 0xb1d   :  { %4519 = vmatpush1.bf16.msra.mxu0 %v6115_v62  ;;  %4551 = vmatpush1.bf16.msra.mxu1 %v6118_v46 }
 0xb1e   :  { %4521 = vmatprep.subr.bf16.mxu0 %v6121_v2  ;;  %4553 = vmatprep.subr.bf16.mxu1 %v6123_v14 }
 0xb21   :  { %4523 = vmatpush1.bf16.msra.mxu0 %v6126_v1  ;;  %4555 = vmatpush1.bf16.msra.mxu1 %v6130_v44 }
 0xb22   :  { %4525 = vmatprep.subr.bf16.mxu0 %v6132_v52  ;;  %4557 = vmatprep.subr.bf16.mxu1 %v6135_v3 }
 0xb25   :  { %4527 = vmatpush1.bf16.msra.mxu0 %v6138_v25  ;;  %4559 = vmatpush1.bf16.msra.mxu1 %v6142_v10 }
 0xb26   :  { %4561 = vmatprep.subr.bf16.mxu0 %v6051_v60  ;;  %4593 = vmatprep.subr.bf16.mxu1 %v6053_v42 }
 0xbdb   :  { %v2652_v27 = vpop.f32.mrb[4].mxu0  ;;  %v2723_v61 = vpop.f32.mrb[36].mxu1 }
 0xbdc   :  { %v4836_v41 = vadd.f32 %v2652_v27, %v6195_v18  ;;  %v2654_v35 = vpop.f32.mrb[5].mxu0  ;;  %v2725_v0 = vpop.f32.mrb[37].mxu1  ;;  %v4850_v20 = vadd.f32 %v2723_v61, %v6209_v16 }
 0xbdd   :  { %v4837_v43 = vadd.f32 %v2654_v35, %v6198_v53  ;;  %v4851_v15 = vadd.f32 %v2725_v0, %v6204_v39 }
 0xbde   :  { %v3649_v21 = vmul.f32 -1.442695, %v4836_v41 }
 0xbdf   :  { %v3650_v56 = vmul.f32 -1.442695, %v4837_v43  ;;  %v3651_v28 = vmul.f32 -1.442695, %v4851_v15 }
 0xbe0   :  { %5079 = vpow2.f32 %v3649_v21 }
 0xbe1   :  { %5081 = vpow2.f32 %v3650_v56 }
 0xbe2   :  { %5083 = vpow2.f32 %v3651_v28 }
 0xbe3   :  { %5085 = vtanh.f32 %v4850_v20 }
 0xbea   :  { %v5080_v29 = vpop.eup %5079 }
 0xbeb   :  { %v5082_v63 = vpop.eup %5081  ;;  %v2735_v26 = vadd.f32 1.0, %v5080_v29 }
 0xbec   :  { %v2741_v23 = vadd.f32 1.0, %v5082_v63  ;;  %v5084_v36 = vpop.eup %5083 }
 0xbed   :  { %5087 = vrcp.f32 %v2735_v26  ;;  %v5086_v33 = vpop.eup %5085  ;;  %v2748_v48 = vadd.f32 1.0, %v5084_v36 }
 0xbee   :  { %5089 = vrcp.f32 %v2741_v23 }
 0xbef   :  { %5091 = vrcp.f32 %v2748_v48 }
 0xbf7   :  { %v5088_v58 = vpop.eup %5087 }
 0xbf8   :  { %v5090_v32 = vpop.eup %5089  ;;  %v2752_v8 = vmul.f32 %v5088_v58, %v5086_v33 }
 0xbf9   :  { %v2751_v47 = vmul.f32 %v5090_v32, %v6259_v40  ;;  %v5092_v61 = vpop.eup %5091 }
 0xbfb   :  { %v6305_v27 = vadd.f32 %v2752_v8, %v2751_v47 }
 0xbfd   :  { %5093 = vtanh.f32 %v6305_v27 }
 0xc07   :  { %v5094_v41 = vpop.eup %5093 }
 0xc08   :  { %v6308_v35 = vmul.f32 %v5094_v41, %v5092_v61 }
 0xc0a   :  { %2821 = vmatmul.mubr.f32.vlgmr.msra.gmra.mrb[6].mxu0 %v6308_v35  ;;  %2892 = vmatmul.mubr.f32.vlgmr.msra.gmra.mrb[38].mxu1 %v6308_v35 }
 0xc0b   :  { %4563 = vmatpush1.bf16.msra.mxu0 %v6055_v5  ;;  %4595 = vmatpush1.bf16.msra.mxu1 %v6058_v13 }
 0xc0c   :  { %4565 = vmatprep.subr.bf16.mxu0 %v6063_v30  ;;  %4597 = vmatprep.subr.bf16.mxu1 %v6065_v55 }
 0xc0d   :  { %2990 = vmatprep.mubr.f32.mxu0 %v6506_v59  ;;  %3061 = vmatprep.mubr.f32.mxu1 %v6506_v59 }
 0xc0f   :  { %4567 = vmatpush1.bf16.msra.mxu0 %v6067_v54  ;;  %4599 = vmatpush1.bf16.msra.mxu1 %v6070_v49 }
 0xc10   :  { %4569 = vmatprep.subr.bf16.mxu0 %v6075_v37  ;;  %4601 = vmatprep.subr.bf16.mxu1 %v6077_v31 }
 0xc13   :  { %4571 = vmatpush1.bf16.msra.mxu0 %v6079_v51  ;;  %4603 = vmatpush1.bf16.msra.mxu1 %v6082_v6 }
 0xc14   :  { %4573 = vmatprep.subr.bf16.mxu0 %v6087_v34  ;;  %4605 = vmatprep.subr.bf16.mxu1 %v6089_v7 }
 0xc17   :  { %4575 = vmatpush1.bf16.msra.mxu0 %v6091_v19  ;;  %4607 = vmatpush1.bf16.msra.mxu1 %v6094_v17 }
 0xc18   :  { %4577 = vmatprep.subr.bf16.mxu0 %v6099_v50  ;;  %4609 = vmatprep.subr.bf16.mxu1 %v6101_v24 }
 0xc1b   :  { %4579 = vmatpush1.bf16.msra.mxu0 %v6103_v45  ;;  %4611 = vmatpush1.bf16.msra.mxu1 %v6106_v57 }
 0xc1c   :  { %4581 = vmatprep.subr.bf16.mxu0 %v6110_v4  ;;  %4613 = vmatprep.subr.bf16.mxu1 %v6113_v11 }
 0xc1f   :  { %4583 = vmatpush1.bf16.msra.mxu0 %v6115_v62  ;;  %4615 = vmatpush1.bf16.msra.mxu1 %v6118_v46 }
 0xc20   :  { %4585 = vmatprep.subr.bf16.mxu0 %v6121_v2  ;;  %4617 = vmatprep.subr.bf16.mxu1 %v6123_v14 }
 0xc23   :  { %4587 = vmatpush1.bf16.msra.mxu0 %v6126_v1  ;;  %4619 = vmatpush1.bf16.msra.mxu1 %v6130_v44 }
 0xc24   :  { %4589 = vmatprep.subr.bf16.mxu0 %v6132_v52  ;;  %4621 = vmatprep.subr.bf16.mxu1 %v6135_v3 }
 0xc27   :  { %4591 = vmatpush1.bf16.msra.mxu0 %v6138_v25  ;;  %4623 = vmatpush1.bf16.msra.mxu1 %v6142_v10 }
 0xc28   :  { %4625 = vmatprep.subr.bf16.mxu0 %v6051_v60  ;;  %4657 = vmatprep.subr.bf16.mxu1 %v6053_v42 }
 0xcdd   :  { %v2822_v40 = vpop.f32.mrb[6].mxu0  ;;  %v2893_v0 = vpop.f32.mrb[38].mxu1 }
 0xcde   :  { %v4838_v43 = vadd.f32 %v2822_v40, %v6195_v18  ;;  %v2824_v21 = vpop.f32.mrb[7].mxu0  ;;  %v2895_v56 = vpop.f32.mrb[39].mxu1  ;;  %v4852_v26 = vadd.f32 %v2893_v0, %v6209_v16 }
 0xcdf   :  { %v4839_v15 = vadd.f32 %v2824_v21, %v6198_v53  ;;  %v4853_v29 = vadd.f32 %v2895_v56, %v6204_v39 }
 0xce0   :  { %v3652_v28 = vmul.f32 -1.442695, %v4838_v43 }
 0xce1   :  { %v3653_v20 = vmul.f32 -1.442695, %v4839_v15  ;;  %v3654_v63 = vmul.f32 -1.442695, %v4853_v29 }
 0xce2   :  { %5095 = vpow2.f32 %v3652_v28 }
 0xce3   :  { %5097 = vpow2.f32 %v3653_v20 }
 0xce4   :  { %5099 = vpow2.f32 %v3654_v63 }
 0xce5   :  { %5101 = vtanh.f32 %v4852_v26 }
 0xcec   :  { %v5096_v23 = vpop.eup %5095 }
 0xced   :  { %v5098_v36 = vpop.eup %5097  ;;  %v2905_v33 = vadd.f32 1.0, %v5096_v23 }
 0xcee   :  { %v2911_v58 = vadd.f32 1.0, %v5098_v36  ;;  %v5100_v32 = vpop.eup %5099 }
 0xcef   :  { %5103 = vrcp.f32 %v2905_v33  ;;  %v5102_v8 = vpop.eup %5101  ;;  %v2918_v41 = vadd.f32 1.0, %v5100_v32 }
 0xcf0   :  { %5105 = vrcp.f32 %v2911_v58 }
 0xcf1   :  { %5107 = vrcp.f32 %v2918_v41 }
 0xcf9   :  { %v5104_v48 = vpop.eup %5103 }
 0xcfa   :  { %v5106_v47 = vpop.eup %5105  ;;  %v2922_v61 = vmul.f32 %v5104_v48, %v5102_v8 }
 0xcfb   :  { %v2921_v40 = vmul.f32 %v5106_v47, %v6305_v27  ;;  %v5108_v0 = vpop.eup %5107 }
 0xcfd   :  { %v6351_v43 = vadd.f32 %v2922_v61, %v2921_v40 }
 0xcff   :  { %5109 = vtanh.f32 %v6351_v43 }
 0xd09   :  { %v5110_v21 = vpop.eup %5109 }
 0xd0a   :  { %v6354_v56 = vmul.f32 %v5110_v21, %v5108_v0 }
 0xd0c   :  { %2991 = vmatmul.mubr.f32.vlgmr.msra.gmra.mrb[8].mxu0 %v6354_v56  ;;  %3062 = vmatmul.mubr.f32.vlgmr.msra.gmra.mrb[40].mxu1 %v6354_v56 }
 0xd0d   :  { %4627 = vmatpush1.bf16.msra.mxu0 %v6055_v5  ;;  %4659 = vmatpush1.bf16.msra.mxu1 %v6058_v13 }
 0xd0e   :  { %4629 = vmatprep.subr.bf16.mxu0 %v6063_v30  ;;  %4661 = vmatprep.subr.bf16.mxu1 %v6065_v55 }
 0xd0f   :  { %3160 = vmatprep.mubr.f32.mxu0 %v6506_v59  ;;  %3231 = vmatprep.mubr.f32.mxu1 %v6506_v59 }
 0xd11   :  { %4631 = vmatpush1.bf16.msra.mxu0 %v6067_v54  ;;  %4663 = vmatpush1.bf16.msra.mxu1 %v6070_v49 }
 0xd12   :  { %4633 = vmatprep.subr.bf16.mxu0 %v6075_v37  ;;  %4665 = vmatprep.subr.bf16.mxu1 %v6077_v31 }
 0xd15   :  { %4635 = vmatpush1.bf16.msra.mxu0 %v6079_v51  ;;  %4667 = vmatpush1.bf16.msra.mxu1 %v6082_v6 }
 0xd16   :  { %4637 = vmatprep.subr.bf16.mxu0 %v6087_v34  ;;  %4669 = vmatprep.subr.bf16.mxu1 %v6089_v7 }
 0xd19   :  { %4639 = vmatpush1.bf16.msra.mxu0 %v6091_v19  ;;  %4671 = vmatpush1.bf16.msra.mxu1 %v6094_v17 }
 0xd1a   :  { %4641 = vmatprep.subr.bf16.mxu0 %v6099_v50  ;;  %4673 = vmatprep.subr.bf16.mxu1 %v6101_v24 }
 0xd1d   :  { %4643 = vmatpush1.bf16.msra.mxu0 %v6103_v45  ;;  %4675 = vmatpush1.bf16.msra.mxu1 %v6106_v57 }
 0xd1e   :  { %4645 = vmatprep.subr.bf16.mxu0 %v6110_v4  ;;  %4677 = vmatprep.subr.bf16.mxu1 %v6113_v11 }
 0xd21   :  { %4647 = vmatpush1.bf16.msra.mxu0 %v6115_v62  ;;  %4679 = vmatpush1.bf16.msra.mxu1 %v6118_v46 }
 0xd22   :  { %4649 = vmatprep.subr.bf16.mxu0 %v6121_v2  ;;  %4681 = vmatprep.subr.bf16.mxu1 %v6123_v14 }
 0xd25   :  { %4651 = vmatpush1.bf16.msra.mxu0 %v6126_v1  ;;  %4683 = vmatpush1.bf16.msra.mxu1 %v6130_v44 }
 0xd26   :  { %4653 = vmatprep.subr.bf16.mxu0 %v6132_v52  ;;  %4685 = vmatprep.subr.bf16.mxu1 %v6135_v3 }
 0xd29   :  { %4655 = vmatpush1.bf16.msra.mxu0 %v6138_v25  ;;  %4687 = vmatpush1.bf16.msra.mxu1 %v6142_v10 }
 0xd2a   :  { %4689 = vmatprep.subr.bf16.mxu0 %v6051_v60  ;;  %4721 = vmatprep.subr.bf16.mxu1 %v6053_v42 }
 0xddf   :  { %v2992_v27 = vpop.f32.mrb[8].mxu0  ;;  %v3063_v15 = vpop.f32.mrb[40].mxu1 }
 0xde0   :  { %v4840_v28 = vadd.f32 %v2992_v27, %v6195_v18  ;;  %v2994_v20 = vpop.f32.mrb[9].mxu0  ;;  %v3065_v29 = vpop.f32.mrb[41].mxu1  ;;  %v4854_v58 = vadd.f32 %v3063_v15, %v6209_v16 }
 0xde1   :  { %v4841_v63 = vadd.f32 %v2994_v20, %v6198_v53  ;;  %v4855_v36 = vadd.f32 %v3065_v29, %v6204_v39 }
 0xde2   :  { %v3655_v26 = vmul.f32 -1.442695, %v4840_v28 }
 0xde3   :  { %v3656_v23 = vmul.f32 -1.442695, %v4841_v63  ;;  %v3657_v33 = vmul.f32 -1.442695, %v4855_v36  ;;  %v3440_v36 = vld [vmem:[#allocation13 + $0x20] sm:$0xff] }
 0xde4   :  { %5111 = vpow2.f32 %v3655_v26 }
 0xde5   :  { %5113 = vpow2.f32 %v3656_v23 }
 0xde6   :  { %5115 = vpow2.f32 %v3657_v33  ;;  %v3442_v33 = vld [vmem:[#allocation13 + $0x30] sm:$0xff] }
 0xde7   :  { %5117 = vtanh.f32 %v4854_v58  ;;  %v3445_v58 = vld [vmem:[#allocation13 + $0x48] sm:$0xff] }
 0xdee   :  { %v5112_v60 = vpop.eup %5111 }
 0xdef   :  { %v5114_v32 = vpop.eup %5113  ;;  %v3075_v42 = vadd.f32 1.0, %v5112_v60  ;;  %v3447_v60 = vld [vmem:[#allocation13 + $0x58] sm:$0xff] }
 0xdf0   :  { %v3081_v8 = vadd.f32 1.0, %v5114_v32  ;;  %v5116_v48 = vpop.eup %5115  ;;  %v4758_v32 = vpack.c.bf16 %v3442_v33, %v3440_v36 }
 0xdf1   :  { %5119 = vrcp.f32 %v3075_v42  ;;  %v5118_v47 = vpop.eup %5117  ;;  %v3088_v0 = vadd.f32 1.0, %v5116_v48  ;;  %v4760_v42 = vpack.c.bf16 %v3447_v60, %v3445_v58  ;;  %v3446_v48 = vld [vmem:[#allocation13 + $0x50] sm:$0xff] }
 0xdf2   :  { %5121 = vrcp.f32 %v3081_v8  ;;  %v3444_v8 = vld [vmem:[#allocation13 + $0x40] sm:$0xff] }
 0xdf3   :  { %5123 = vrcp.f32 %v3088_v0  ;;  %v3448_v0 = vld [vmem:[#allocation13 + $0x60] sm:$0xff] }
 0xdfb   :  { %v5120_v61 = vpop.eup %5119 }
 0xdfc   :  { %v5122_v41 = vpop.eup %5121  ;;  %v3092_v40 = vmul.f32 %v5120_v61, %v5118_v47  ;;  %v3449_v47 = vld [vmem:[#allocation13 + $0x68] sm:$0xff]  ;;  %v3451_v61 = vld [vmem:[#allocation13 + $0x78] sm:$0xff] }
 0xdfd   :  { %v3091_v21 = vmul.f32 %v5122_v41, %v6351_v43  ;;  %v5124_v15 = vpop.eup %5123  ;;  %v4762_v41 = vpack.c.bf16 %v3446_v48, %v3444_v8 }
 0xdff   :  { %v6397_v27 = vadd.f32 %v3092_v40, %v3091_v21  ;;  %v4764_v40 = vpack.c.bf16 %v3451_v61, %v3449_v47  ;;  %v3450_v21 = vld [vmem:[#allocation13 + $0x70] sm:$0xff] }
 0xe01   :  { %5125 = vtanh.f32 %v6397_v27 }
 0xe0b   :  { %v5126_v28 = vpop.eup %5125 }
 0xe0c   :  { %v6400_v20 = vmul.f32 %v5126_v28, %v5124_v15  ;;  %v3455_v15 = vld [vmem:[#allocation13 + $0x98] sm:$0xff]  ;;  %v4766_v28 = vpack.c.bf16 %v3450_v21, %v3448_v0 }
 0xe0e   :  { %3161 = vmatmul.mubr.f32.vlgmr.msra.gmra.mrb[10].mxu0 %v6400_v20  ;;  %3232 = vmatmul.mubr.f32.vlgmr.msra.gmra.mrb[42].mxu1 %v6400_v20 }
 0xe0f   :  { %4691 = vmatpush1.bf16.msra.mxu0 %v6055_v5  ;;  %4723 = vmatpush1.bf16.msra.mxu1 %v6058_v13  ;;  %v3437_v5 = vld [vmem:[#allocation13 + $0x8] sm:$0xff]  ;;  %v3439_v13 = vld [vmem:[#allocation13 + $0x18] sm:$0xff] }
 0xe10   :  { %4693 = vmatprep.subr.bf16.mxu0 %v6063_v30  ;;  %4725 = vmatprep.subr.bf16.mxu1 %v6065_v55  ;;  %v4752_v30 = vpack.c.bf16 %v3439_v13, %v3437_v5  ;;  %v3452_v13 = vld [vmem:[#allocation13 + $0x80] sm:$0xff] }
 0xe11   :  { %3330 = vmatprep.mubr.f32.mxu0 %v6506_v59  ;;  %3401 = vmatprep.mubr.f32.mxu1 %v6506_v59 }
 0xe13   :  { %4695 = vmatpush1.bf16.msra.mxu0 %v6067_v54  ;;  %4727 = vmatpush1.bf16.msra.mxu1 %v6070_v49 }
 0xe14   :  { %4697 = vmatprep.subr.bf16.mxu0 %v6075_v37  ;;  %4729 = vmatprep.subr.bf16.mxu1 %v6077_v31 }
 0xe17   :  { %4699 = vmatpush1.bf16.msra.mxu0 %v6079_v51  ;;  %4731 = vmatpush1.bf16.msra.mxu1 %v6082_v6 }
 0xe18   :  { %4701 = vmatprep.subr.bf16.mxu0 %v6087_v34  ;;  %4733 = vmatprep.subr.bf16.mxu1 %v6089_v7 }
 0xe1b   :  { %4703 = vmatpush1.bf16.msra.mxu0 %v6091_v19  ;;  %4735 = vmatpush1.bf16.msra.mxu1 %v6094_v17 }
 0xe1c   :  { %4705 = vmatprep.subr.bf16.mxu0 %v6099_v50  ;;  %4737 = vmatprep.subr.bf16.mxu1 %v6101_v24 }
 0xe1f   :  { %4707 = vmatpush1.bf16.msra.mxu0 %v6103_v45  ;;  %4739 = vmatpush1.bf16.msra.mxu1 %v6106_v57 }
 0xe20   :  { %4709 = vmatprep.subr.bf16.mxu0 %v6110_v4  ;;  %4741 = vmatprep.subr.bf16.mxu1 %v6113_v11 }
 0xe23   :  { %4711 = vmatpush1.bf16.msra.mxu0 %v6115_v62  ;;  %4743 = vmatpush1.bf16.msra.mxu1 %v6118_v46 }
 0xe24   :  { %4713 = vmatprep.subr.bf16.mxu0 %v6121_v2  ;;  %4745 = vmatprep.subr.bf16.mxu1 %v6123_v14 }
 0xe27   :  { %4715 = vmatpush1.bf16.msra.mxu0 %v6126_v1  ;;  %4747 = vmatpush1.bf16.msra.mxu1 %v6130_v44 }
 0xe28   :  { %4717 = vmatprep.subr.bf16.mxu0 %v6132_v52  ;;  %4749 = vmatprep.subr.bf16.mxu1 %v6135_v3  ;;  %v3436_v52 = vld [vmem:[#allocation13] sm:$0xff]  ;;  %v3438_v3 = vld [vmem:[#allocation13 + $0x10] sm:$0xff] }
 0xe29   :  { %v4754_v63 = vpack.c.bf16 %v3438_v3, %v3436_v52 }
 0xe2b   :  { %4719 = vmatpush1.bf16.msra.mxu0 %v6138_v25  ;;  %4751 = vmatpush1.bf16.msra.mxu1 %v6142_v10  ;;  %v3441_v25 = vld [vmem:[#allocation13 + $0x28] sm:$0xff]  ;;  %v3443_v10 = vld [vmem:[#allocation13 + $0x38] sm:$0xff] }
 0xe2c   :  { %4753 = vmatprep.subr.bf16.mxu0 %v4752_v30  ;;  %v4756_v23 = vpack.c.bf16 %v3443_v10, %v3441_v25  ;;  %v3454_v30 = vld [vmem:[#allocation13 + $0x90] sm:$0xff] }
 0xee1   :  { %v3162_v55 = vpop.f32.mrb[10].mxu0  ;;  %v3233_v54 = vpop.f32.mrb[42].mxu1 }
 0xee2   :  { %v4842_v49 = vadd.f32 %v3162_v55, %v6195_v18  ;;  %v3164_v37 = vpop.f32.mrb[11].mxu0  ;;  %v3235_v31 = vpop.f32.mrb[43].mxu1  ;;  %v4856_v17 = vadd.f32 %v3233_v54, %v6209_v16  ;;  %v3457_v55 = vld [vmem:[#allocation13 + $0xa8] sm:$0xff]  ;;  %v3459_v54 = vld [vmem:[#allocation13 + $0xb8] sm:$0xff] }
 0xee3   :  { %v4843_v51 = vadd.f32 %v3164_v37, %v6198_v53  ;;  %v4857_v7 = vadd.f32 %v3235_v31, %v6204_v39  ;;  %v4772_v37 = vpack.c.bf16 %v3459_v54, %v3457_v55  ;;  %v3456_v31 = vld [vmem:[#allocation13 + $0xa0] sm:$0xff] }
 0xee4   :  { %v3658_v6 = vmul.f32 -1.442695, %v4842_v49  ;;  %v4770_v49 = vpack.c.bf16 %v3454_v30, %v3452_v13 }
 0xee5   :  { %v3659_v34 = vmul.f32 -1.442695, %v4843_v51  ;;  %v3660_v19 = vmul.f32 -1.442695, %v4857_v7  ;;  %v3458_v51 = vld [vmem:[#allocation13 + $0xb0] sm:$0xff] }
 0xee6   :  { %5127 = vpow2.f32 %v3658_v6  ;;  %v3461_v6 = vld [vmem:[#allocation13 + $0xc8] sm:$0xff]  ;;  %v4774_v7 = vpack.c.bf16 %v3458_v51, %v3456_v31 }
 0xee7   :  { %5129 = vpow2.f32 %v3659_v34  ;;  %v3463_v34 = vld [vmem:[#allocation13 + $0xd8] sm:$0xff] }
 0xee8   :  { %5131 = vpow2.f32 %v3660_v19  ;;  %v4776_v19 = vpack.c.bf16 %v3463_v34, %v3461_v6 }
 0xee9   :  { %5133 = vtanh.f32 %v4856_v17  ;;  %v3460_v17 = vld [vmem:[#allocation13 + $0xc0] sm:$0xff] }
 0xef0   :  { %v5128_v50 = vpop.eup %5127 }
 0xef1   :  { %v5130_v24 = vpop.eup %5129  ;;  %v3245_v45 = vadd.f32 1.0, %v5128_v50  ;;  %v3462_v50 = vld [vmem:[#allocation13 + $0xd0] sm:$0xff] }
 0xef2   :  { %v3251_v57 = vadd.f32 1.0, %v5130_v24  ;;  %v5132_v4 = vpop.eup %5131  ;;  %v3465_v24 = vld [vmem:[#allocation13 + $0xe8] sm:$0xff] }
 0xef3   :  { %5135 = vrcp.f32 %v3245_v45  ;;  %v5134_v11 = vpop.eup %5133  ;;  %v3258_v14 = vadd.f32 1.0, %v5132_v4  ;;  %v3467_v45 = vld [vmem:[#allocation13 + $0xf8] sm:$0xff] }
 0xef4   :  { %5137 = vrcp.f32 %v3251_v57  ;;  %v4778_v57 = vpack.c.bf16 %v3462_v50, %v3460_v17  ;;  %v4780_v4 = vpack.c.bf16 %v3467_v45, %v3465_v24 }
 0xef5   :  { %5139 = vrcp.f32 %v3258_v14 }
 0xefd   :  { %v5136_v62 = vpop.eup %5135 }
 0xefe   :  { %v5138_v46 = vpop.eup %5137  ;;  %v3262_v2 = vmul.f32 %v5136_v62, %v5134_v11  ;;  %v3464_v11 = vld [vmem:[#allocation13 + $0xe0] sm:$0xff]  ;;  %v3466_v62 = vld [vmem:[#allocation13 + $0xf0] sm:$0xff] }
 0xeff   :  { %v3261_v1 = vmul.f32 %v5138_v46, %v6397_v27  ;;  %v5140_v43 = vpop.eup %5139  ;;  %v3453_v27 = vld [vmem:[#allocation13 + $0x88] sm:$0xff]  ;;  %v4782_v46 = vpack.c.bf16 %v3466_v62, %v3464_v11 }
 0xf00   :  { %v4768_v5 = vpack.c.bf16 %v3455_v15, %v3453_v27 }
 0xf01   :  { %v6441_v44 = vadd.f32 %v3262_v2, %v3261_v1 }
 0xf03   :  { %5141 = vtanh.f32 %v6441_v44 }
 0xf0d   :  { %v5142_v29 = vpop.eup %5141 }
 0xf0e   :  { %v6444_v26 = vmul.f32 %v5142_v29, %v5140_v43 }
 0xf10   :  { %3331 = vmatmul.mubr.f32.vlgmr.msra.gmra.mrb[12].mxu0 %v6444_v26  ;;  %3402 = vmatmul.mubr.f32.vlgmr.msra.gmra.mrb[44].mxu1 %v6444_v26 }
 0xf11   :  { %4755 = vmatpush1.bf16.msra.mxu0 %v4754_v63  ;;  %3544 = vmatprep.mubr.f32.mxu0 %v6506_v59 }
 0xf12   :  { %4757 = vmatprep.subr.bf16.mxu0 %v4756_v23 }
 0xf15   :  { %4759 = vmatpush1.bf16.msra.mxu0 %v4758_v32 }
 0xf16   :  { %4761 = vmatprep.subr.bf16.mxu0 %v4760_v42 }
 0xf19   :  { %4763 = vmatpush1.bf16.msra.mxu0 %v4762_v41 }
 0xf1a   :  { %4765 = vmatprep.subr.bf16.mxu0 %v4764_v40 }
 0xf1d   :  { %4767 = vmatpush1.bf16.msra.mxu0 %v4766_v28 }
 0xf1e   :  { %4769 = vmatprep.subr.bf16.mxu0 %v4768_v5 }
 0xf21   :  { %4771 = vmatpush1.bf16.msra.mxu0 %v4770_v49 }
 0xf22   :  { %4773 = vmatprep.subr.bf16.mxu0 %v4772_v37 }
 0xf25   :  { %4775 = vmatpush1.bf16.msra.mxu0 %v4774_v7 }
 0xf26   :  { %4777 = vmatprep.subr.bf16.mxu0 %v4776_v19 }
 0xf29   :  { %4779 = vmatpush1.bf16.msra.mxu0 %v4778_v57 }
 0xf2a   :  { %4781 = vmatprep.subr.bf16.mxu0 %v4780_v4 }
 0xf2d   :  { %4783 = vmatpush1.bf16.msra.mxu0 %v4782_v46 }
 0xf30   :  { %3545 = vmatmul.mubr.f32.vlgmr.msra.gmra.mrb[30].mxu0 %v6216_v22 }
 0xf31   :  { %3550 = vmatprep.mubr.f32.mxu0 %v6506_v59 }
 0xf34   :  { %3551 = vmatmul.mubr.f32.gmra.mrb[32].mxu0 %v6262_v12 }
 0xf35   :  { %3556 = vmatprep.mubr.f32.mxu0 %v6506_v59 }
 0xf38   :  { %3557 = vmatmul.mubr.f32.gmra.mrb[34].mxu0 %v6308_v35 }
 0xf39   :  { %3562 = vmatprep.mubr.f32.mxu0 %v6506_v59 }
 0xf3c   :  { %3563 = vmatmul.mubr.f32.gmra.mrb[36].mxu0 %v6354_v56 }
 0xf3d   :  { %3568 = vmatprep.mubr.f32.mxu0 %v6506_v59 }
 0xf40   :  { %3569 = vmatmul.mubr.f32.gmra.mrb[38].mxu0 %v6400_v20 }
 0xf41   :  { %3574 = vmatprep.mubr.f32.mxu0 %v6506_v59 }
 0xf44   :  { %3575 = vmatmul.mubr.f32.gmra.mrb[40].mxu0 %v6444_v26 }
 0xf45   :  { %3580 = vmatprep.mubr.f32.mxu0 %v6506_v59 }
 0xfe3   :  { %v3332_v22 = vpop.f32.mrb[12].mxu0  ;;  %v3403_v12 = vpop.f32.mrb[44].mxu1 }
 0xfe4   :  { %v4844_v2 = vadd.f32 %v3332_v22, %v6195_v18  ;;  %v3334_v14 = vpop.f32.mrb[13].mxu0  ;;  %v3405_v35 = vpop.f32.mrb[45].mxu1  ;;  %v4858_v25 = vadd.f32 %v3403_v12, %v6209_v16 }
 0xfe5   :  { %v4845_v1 = vadd.f32 %v3334_v14, %v6198_v53  ;;  %v4859_v20 = vadd.f32 %v3405_v35, %v6204_v39  ;;  %v3468_v53 = vld [vmem:[%s6492_s9] sm:$0x3]  ;;  %s5359_s9 = smov [#allocation14]  }
 0xfe6   :  { %v3661_v52 = vmul.f32 -1.442695, %v4844_v2  ;;  %v3473_v16 = vrot.slane %v3468_v53, %v6509_v9  ;;  %v3477_v58 = vrot.slane %v3468_v53, %v6510_v38  ;;  %s3607_s21 = sshll.u32 %s5359_s9, 4  ;;  %s3608_s21 = int_to_ptr.vmem [resolvable:$true] %s3607_s21 }
 0xfe7   :  { %v3662_v56 = vmul.f32 -1.442695, %v4845_v1  ;;  %v3663_v3 = vmul.f32 -1.442695, %v4859_v20  ;;  %s5313_s22 = scalar_lea.vmem %s3608_s21, 1792  ;;  %p5318_p1 = scmp.lt.s32.totalorder %s3608_s21, %s3608_s21 }
 0xfe8   :  { %5143 = vpow2.f32 %v3661_v52  ;;  %p5314_p0 = scmp.ne.s32.totalorder %s3608_s21, %s5313_s22  ;;  %p5319_p2 = scmp.lt.s32.totalorder %s5313_s22, %s5313_s22 }
 0xfe9   :  { %5145 = vpow2.f32 %v3662_v56 }
 0xfea   :  { %5147 = vpow2.f32 %v3663_v3  ;;  %p5320_p3 = por %p5319_p2, %p5318_p1 }
 0xfeb   :  { %5149 = vtanh.f32 %v4858_v25 }
 0xfec   :  { %p5321_p4 = pnand %p5320_p3, %p5314_p0 }
 0xff2   :  { %v5144_v10 = vpop.eup %5143 }
 0xff3   :  { %v5146_v43 = vpop.eup %5145  ;;  %v3415_v59 = vadd.f32 1.0, %v5144_v10 }
 0xff4   :  { %v3421_v29 = vadd.f32 1.0, %v5146_v43  ;;  %v5148_v18 = vpop.eup %5147 }
 0xff5   :  { %5151 = vrcp.f32 %v3415_v59  ;;  %v5150_v63 = vpop.eup %5149  ;;  %v3428_v36 = vadd.f32 1.0, %v5148_v18 }
 0xff6   :  { %5153 = vrcp.f32 %v3421_v29 }
 0xff7   :  { %5155 = vrcp.f32 %v3428_v36 }
 0xfff   :  { %v5152_v26 = vpop.eup %5151 }
0x1000   :  { %v5154_v23 = vpop.eup %5153  ;;  %v3432_v39 = vmul.f32 %v5152_v26, %v5150_v63 }
0x1001   :  { %v3431_v33 = vmul.f32 %v5154_v23, %v6441_v44  ;;  %v5156_v38 = vpop.eup %5155 }
0x1003   :  { %v3546_v60 = vpop.f32.mrb[30].mxu0  ;;  %v3433_v32 = vadd.f32 %v3432_v39, %v3431_v33 }
0x1004   :  { %v3547_v42 = vadd.f32 %v3546_v60, %v3473_v16  ;;  %v3548_v8 = vpop.f32.mrb[31].mxu0 }
0x1005   :  { %v3549_v48 = vadd.f32 %v3548_v8, %v3477_v58  ;;  %5157 = vtanh.f32 %v3433_v32 }
0x1006   :  { %3587 = vst [vmem:[#allocation14] sm:$0xff] %v3547_v42 }
0x1007   :  { %3588 = vst [vmem:[#allocation14 + $0x8] sm:$0xff] %v3549_v48  ;;  %v3552_v47 = vpop.f32.mrb[32].mxu0 }
0x1008   :  { %v3553_v61 = vadd.f32 %v3552_v47, %v3473_v16  ;;  %v3554_v41 = vpop.f32.mrb[33].mxu0 }
0x1009   :  { %v3555_v40 = vadd.f32 %v3554_v41, %v3477_v58 }
0x100a   :  { %3589 = vst [vmem:[#allocation14 + $0x10] sm:$0xff] %v3553_v61 }
0x100b   :  { %3590 = vst [vmem:[#allocation14 + $0x18] sm:$0xff] %v3555_v40  ;;  %v3558_v9 = vpop.f32.mrb[34].mxu0 }
0x100c   :  { %v3559_v0 = vadd.f32 %v3558_v9, %v3473_v16  ;;  %v3560_v44 = vpop.f32.mrb[35].mxu0 }
0x100d   :  { %v3561_v21 = vadd.f32 %v3560_v44, %v3477_v58 }
0x100e   :  { %3591 = vst [vmem:[#allocation14 + $0x20] sm:$0xff] %v3559_v0 }
0x100f   :  { %v5158_v27 = vpop.eup %5157  ;;  %3592 = vst [vmem:[#allocation14 + $0x28] sm:$0xff] %v3561_v21  ;;  %v3564_v15 = vpop.f32.mrb[36].mxu0 }
0x1010   :  { %v3565_v28 = vadd.f32 %v3564_v15, %v3473_v16  ;;  %v3566_v5 = vpop.f32.mrb[37].mxu0  ;;  %v3435_v13 = vmul.f32 %v5158_v27, %v5156_v38 }
0x1011   :  { %v3567_v30 = vadd.f32 %v3566_v5, %v3477_v58 }
0x1012   :  { %3593 = vst [vmem:[#allocation14 + $0x30] sm:$0xff] %v3565_v28  ;;  %3581 = vmatmul.mubr.f32.gmra.mrb[42].mxu0 %v3435_v13 }
0x1013   :  { %3594 = vst [vmem:[#allocation14 + $0x38] sm:$0xff] %v3567_v30  ;;  %v3570_v55 = vpop.f32.mrb[38].mxu0 }
0x1014   :  { %v3571_v54 = vadd.f32 %v3570_v55, %v3473_v16  ;;  %v3572_v49 = vpop.f32.mrb[39].mxu0 }
0x1015   :  { %v3573_v37 = vadd.f32 %v3572_v49, %v3477_v58 }
0x1016   :  { %3595 = vst [vmem:[#allocation14 + $0x40] sm:$0xff] %v3571_v54 }
0x1017   :  { %3596 = vst [vmem:[#allocation14 + $0x48] sm:$0xff] %v3573_v37  ;;  %v3576_v31 = vpop.f32.mrb[40].mxu0 }
0x1018   :  { %v3577_v51 = vadd.f32 %v3576_v31, %v3473_v16  ;;  %v3578_v6 = vpop.f32.mrb[41].mxu0 }
0x1019   :  { %v3579_v34 = vadd.f32 %v3578_v6, %v3477_v58 }
0x101a   :  { %3597 = vst [vmem:[#allocation14 + $0x50] sm:$0xff] %v3577_v51 }
0x101b   :  { %3598 = vst [vmem:[#allocation14 + $0x58] sm:$0xff] %v3579_v34 }
0x10e5   :  { %v3582_v7 = vpop.f32.mrb[42].mxu0 }
0x10e6   :  { %v3583_v19 = vadd.f32 %v3582_v7, %v3473_v16  ;;  %v3584_v17 = vpop.f32.mrb[43].mxu0 }
0x10e7   :  { %v3585_v50 = vadd.f32 %v3584_v17, %v3477_v58 }
0x10e8   :  { %3599 = vst [vmem:[#allocation14 + $0x60] sm:$0xff] %v3583_v19 }
0x10e9   :  { %3600 = vst [vmem:[#allocation14 + $0x68] sm:$0xff] %v3585_v50 }
0x10ea   :  { %5324 = shalt.err (!%p5321_p4)
}
0x10eb   :  { %s5325_s27 = scalar_lea.hbm %s6493_s10, 1792 }
0x10ec   :  { %p5326_p5 = scmp.ne.s32.totalorder %s6493_s10, %s5325_s27  ;;  %p5329_p6 = scmp.lt.u32.totalorder %s5325_s27, %s6493_s10 }
0x10ee   :  { %p5331_p7 = pnand %p5329_p6, %p5326_p5 }
0x10f0   :  { %5334 = shalt.err (!%p5331_p7)
}
0x10f1   :  { %3610 = dma.vmem_to_hbm [thread:$0]  %s3608_s21, 1792, %s6493_s10, [#allocation4]  }
0x10f2   :  { %5343 = dma.done.wait [#allocation4], 1792  }
0x10f3   :  { %5344 = vsyncadd [#allocation4], 4294965504 }
0x10f4   :  { %3614 = vsyncpa [#allocation3], 1 }
0x10f5   :  { %3615 = vsyncpa [#allocation6], 1 }
0x10f6   :  { %3616 = vsyncpa [#allocation9], 1 }
0x10f7   :  { %3617 = vsyncpa [#allocation12], 1 }
0x10f8   :  { %3618 = vsyncpa [#allocation4], 1 }

</bundles_post_ra>
